<compile_context>
chip_gen: v7x
topology: tpu7x:2x2x1
jax: 0.10.0
libtpu: 0.0.40
codegen_flags: <defaults>
</compile_context>

<pallas_src>
import math

import jax
import jax.numpy as jnp
from jax import lax
from jax.experimental import pallas as pl
from jax.experimental.pallas import tpu as pltpu


def _round_up(x, m):
    return (x + m - 1) // m * m


# ---------------------------------------------------------------------------
# Fused bidirectional GRU layer kernel (one pallas_call per layer).
# ---------------------------------------------------------------------------
def _make_bigru_kernel(T, Bp, Dp, Hp, with_sum, unroll):
    G = 3 * Hp  # lane width of one direction's gate block

    def kernel(x_ref, mask_ref, wih_ref, whh_ref, bih_ref, bhh_ref, *refs):
        if with_sum:
            sum_ref, hfin_ref, buf_ref, gi_ref = refs
        else:
            out_ref, hfin_ref, gi_ref = refs
            buf_ref = out_ref

        # ---- hoisted input projection: one large MXU matmul for the whole
        #      sequence and BOTH directions (does not depend on h) ----------
        x = x_ref[...].reshape(T * Bp, Dp).astype(jnp.bfloat16)
        gi = jnp.dot(x, wih_ref[...], preferred_element_type=jnp.float32)
        gi_ref[...] = gi + bih_ref[...]                       # (T*Bp, 2*3*Hp)

        # hoist weight loads out of the recurrence
        whh_f = whh_ref[0]                                    # (Hp, 3Hp) bf16
        whh_b = whh_ref[1]
        bhh_f = bhh_ref[0]                                    # (1, 3Hp) f32
        bhh_b = bhh_ref[1]

        def gru_cell(gi_t, h, whh, bhh):
            gh = jnp.dot(h.astype(jnp.bfloat16), whh,
                         preferred_element_type=jnp.float32) + bhh
            # PyTorch GRU gate order: r, z, n (lane-aligned Hp-wide blocks)
            r = jax.nn.sigmoid(gi_t[:, 0:Hp] + gh[:, 0:Hp])
            z = jax.nn.sigmoid(gi_t[:, Hp:2 * Hp] + gh[:, Hp:2 * Hp])
            n = jnp.tanh(gi_t[:, 2 * Hp:3 * Hp] + r * gh[:, 2 * Hp:3 * Hp])
            return (1.0 - z) * n + z * h

        def step(s, carry):
            h_f, h_b = carry
            t_f = s
            t_b = T - 1 - s
            of = pl.multiple_of(t_f * Bp, Bp)
            ob = pl.multiple_of(t_b * Bp, Bp)

            gi_f = gi_ref[pl.ds(of, Bp), 0:G]                 # (Bp, 3Hp)
            gi_b = gi_ref[pl.ds(ob, Bp), G:2 * G]
            m_f = mask_ref[t_f]                               # (Bp, 1) {0,1}
            m_b = mask_ref[t_b]

            hf_new = gru_cell(gi_f, h_f, whh_f, bhh_f)
            hb_new = gru_cell(gi_b, h_b, whh_b, bhh_b)

            # padded positions are written as zeros (pad_packed_sequence)
            buf_ref[t_f, :, 0:Hp] = m_f * hf_new
            buf_ref[t_b, :, Hp:2 * Hp] = m_b * hb_new

            # masked state carry (packed-sequence semantics)
            h_f = h_f + m_f * (hf_new - h_f)
            h_b = h_b + m_b * (hb_new - h_b)
            return (h_f, h_b)

        h0 = jnp.zeros((Bp, Hp), jnp.float32)
        h_f, h_b = lax.fori_loop(0, T, step, (h0, h0), unroll=unroll)
        hfin_ref[0] = h_f
        hfin_ref[1] = h_b

        if with_sum:
            # fused fw+bw epilogue: only (T,Bp,Hp) leaves VMEM for last layer
            b = buf_ref[...]
            sum_ref[...] = b[:, :, 0:Hp] + b[:, :, Hp:2 * Hp]

    return kernel


def _bi_gru_layer(x, mask, wih, whh, bih, bhh, *, Hp, with_sum):
    """x: (T, Bp, Dp) f32; mask: (T, Bp, 1) f32; weights pre-padded/bf16."""
    T, Bp, Dp = x.shape
    unroll = True if T <= 16 else 4
    kernel = _make_bigru_kernel(T, Bp, Dp, Hp, with_sum, unroll)

    vmem = pl.BlockSpec(memory_space=pltpu.MemorySpace.VMEM)
    hfin_shape = jax.ShapeDtypeStruct((2, Bp, Hp), jnp.float32)

    scratch = [pltpu.VMEM((T * Bp, 2 * 3 * Hp), jnp.float32)]  # hoisted GI
    if with_sum:
        out_shape = (jax.ShapeDtypeStruct((T, Bp, Hp), jnp.float32), hfin_shape)
        scratch = [pltpu.VMEM((T, Bp, 2 * Hp), jnp.float32)] + scratch
    else:
        out_shape = (jax.ShapeDtypeStruct((T, Bp, 2 * Hp), jnp.float32),
                     hfin_shape)

    # TODO(synk): for large T, tile time with an "arbitrary" grid axis and
    # carry h in VMEM scratch (double-buffered) to stay within v7x's 64 MiB.
    return pl.pallas_call(
        kernel,
        out_shape=out_shape,
        in_specs=[vmem] * 6,
        out_specs=(vmem, vmem),
        scratch_shapes=scratch,
    )(x, mask, wih, whh, bih, bhh)


# ---------------------------------------------------------------------------
# One-time weight preparation (pad to lane-aligned gate blocks, cast to bf16)
# ---------------------------------------------------------------------------
def _prep_layer_weights(p, layer, E, Ep, H, Hp):
    def pad_in_rows(w_t):  # (D, 3H) -> (Dp, 3H), per-direction row blocks
        if layer == 0:
            return jnp.pad(w_t, ((0, Ep - w_t.shape[0]), (0, 0)))
        fw = jnp.pad(w_t[:H], ((0, Hp - H), (0, 0)))
        bw = jnp.pad(w_t[H:], ((0, Hp - H), (0, 0)))
        return jnp.concatenate([fw, bw], axis=0)

    def pad_gate_cols(w):  # (rows, 3H) -> (rows, 3Hp), lane-aligned gates
        gs = [jnp.pad(w[:, g * H:(g + 1) * H], ((0, 0), (0, Hp - H)))
              for g in range(3)]
        return jnp.concatenate(gs, axis=1)

    def pad_bias(b):       # (3H,) -> (1, 3Hp)
        gs = [jnp.pad(b[g * H:(g + 1) * H], (0, Hp - H)) for g in range(3)]
        return jnp.concatenate(gs).reshape(1, 3 * Hp)

    def prep_dir(w_ih, w_hh, b_ih, b_hh):
        wih = pad_gate_cols(pad_in_rows(jnp.asarray(w_ih, jnp.float32).T))
        whh = pad_gate_cols(jnp.pad(jnp.asarray(w_hh, jnp.float32).T,
                                    ((0, Hp - H), (0, 0))))
        return (wih, whh,
                pad_bias(jnp.asarray(b_ih, jnp.float32)),
                pad_bias(jnp.asarray(b_hh, jnp.float32)))

    wif, whf, bif, bhf = prep_dir(p["w_ih_f"], p["w_hh_f"],
                                  p["b_ih_f"], p["b_hh_f"])
    wib, whb, bib, bhb = prep_dir(p["w_ih_b"], p["w_hh_b"],
                                  p["b_ih_b"], p["b_hh_b"])

    wih = jnp.concatenate([wif, wib], axis=1).astype(jnp.bfloat16)  # (Dp,6Hp)
    whh = jnp.stack([whf, whb], axis=0).astype(jnp.bfloat16)        # (2,Hp,3Hp)
    bih = jnp.concatenate([bif, bib], axis=1)                       # (1,6Hp)
    bhh = jnp.stack([bhf, bhb], axis=0)                             # (2,1,3Hp)
    return wih, whh, bih, bhh


def prepare_encoder_params(params):
    H = params["hidden_size"]
    Hp = _round_up(H, 128)
    emb = params["embedding"]
    E = emb.shape[1]
    Ep = _round_up(E, 128)
    layers = []
    for layer in range(params["n_layers"]):
        wih, whh, bih, bhh = _prep_layer_weights(params["gru"][layer], layer,
                                                 E, Ep, H, Hp)
        layers.append(dict(wih=wih, whh=whh, bih=bih, bhh=bhh))
    return dict(embedding=emb, layers=layers, n_layers=params["n_layers"],
                H=H, Hp=Hp, E=E, Ep=Ep)


# ---------------------------------------------------------------------------
# EncoderRNN forward (eval mode: dropout layers are identity)
# ---------------------------------------------------------------------------
def encoder_rnn_forward(enc, input_seqs, input_lengths):
    T, B = input_seqs.shape
    H, Hp, E, Ep = enc["H"], enc["Hp"], enc["E"], enc["Ep"]
    Bp = _round_up(max(B, 8), 8)

    # embedding lookup (padding_idx=0 row is zero) -- plain-XLA gather glue
    embedded = enc["embedding"][input_seqs]                 # (T, B, E)
    # TODO(synk): em_dropout / inter-layer GRU dropout are identity (eval).

    # pad batch -> 8 sublanes and feature -> 128 lanes for dense vreg tiles
    x = jnp.zeros((T, Bp, Ep), jnp.float32).at[:, :B, :E].set(
        embedded.astype(jnp.float32))

    lens = jnp.zeros((Bp,), jnp.int32).at[:B].set(
        input_lengths.astype(jnp.int32))
    mask = (jnp.arange(T, dtype=jnp.int32)[:, None] < lens[None, :]
            ).astype(jnp.float32)[:, :, None]               # (T, Bp, 1)

    hiddens = []
    outputs = None
    for layer in range(enc["n_layers"]):
        p = enc["layers"][layer]
        with_sum = layer == enc["n_layers"] - 1
        out, hfin = _bi_gru_layer(x, mask, p["wih"], p["whh"], p["bih"],
                                  p["bhh"], Hp=Hp, with_sum=with_sum)
        hiddens += [hfin[0, :B, :H], hfin[1, :B, :H]]
        if with_sum:
            outputs = out[:, :B, :H]                         # (T, B, H)
        else:
            x = out                 # (T, Bp, 2Hp): fw|bw already concatenated
    hidden = jnp.stack(hiddens, axis=0)                      # (n_layers*2,B,H)
    return outputs, hidden


# ---------------------------------------------------------------------------
# Deterministic parameter init (shapes follow nn.Embedding / nn.GRU)
# ---------------------------------------------------------------------------
def init_params(key, input_size, embedding_size, hidden_size, n_layers=2):
    keys = iter(jax.random.split(key, 64))
    k = 1.0 / math.sqrt(hidden_size)

    emb = jax.random.normal(next(keys), (input_size, embedding_size),
                            dtype=jnp.float32)
    emb = emb.at[0].set(0.0)                                 # padding_idx=0

    def u(shape):
        return jax.random.uniform(next(keys), shape, jnp.float32, -k, k)

    gru = []
    for layer in range(n_layers):
        d_in = embedding_size if layer == 0 else 2 * hidden_size
        gru.append(dict(
            w_ih_f=u((3 * hidden_size, d_in)),
            w_hh_f=u((3 * hidden_size, hidden_size)),
            b_ih_f=u((3 * hidden_size,)),
            b_hh_f=u((3 * hidden_size,)),
            w_ih_b=u((3 * hidden_size, d_in)),
            w_hh_b=u((3 * hidden_size, hidden_size)),
            b_ih_b=u((3 * hidden_size,)),
            b_hh_b=u((3 * hidden_size,)),
        ))

    return dict(embedding=emb, gru=gru,
                n_layers=n_layers, hidden_size=hidden_size)


# ---------------------------------------------------------------------------
if __name__ == "__main__":
    VOCAB, EMB, HID, LAYERS = 50, 32, 32, 2
    T, B = 8, 2

    key = jax.random.PRNGKey(0)
    k_param, k_seq = jax.random.split(key)

    params = init_params(k_param, VOCAB, EMB, HID, LAYERS)
    enc = prepare_encoder_params(params)     # pad/transpose/cast weights once

    # lengths must be sorted descending (pack_padded_sequence convention)
    input_lengths = jnp.array([8, 5], dtype=jnp.int32)             # (B,)
    tok = jax.random.randint(k_seq, (T, B), 1, VOCAB, dtype=jnp.int32)
    t_idx = jnp.arange(T, dtype=jnp.int32)[:, None]                # (T, 1)
    input_seqs = jnp.where(t_idx < input_lengths[None, :], tok, 0)  # (T, B)

    outputs, hidden = encoder_rnn_forward(enc, input_seqs, input_lengths)
    jax.block_until_ready((outputs, hidden))

    assert outputs.shape == (T, B, HID)
    assert hidden.shape == (LAYERS * 2, B, HID)
    assert bool(jnp.all(jnp.isfinite(outputs))) and bool(
        jnp.all(jnp.isfinite(hidden)))
    print("KERNEL_OK")
</pallas_src>

<mosaic_0001>
module attributes {stable_mosaic.version = 11 : i64} {
  func.func @kernel(%arg0: memref<8x8x128xf32, #tpu.memory_space<vmem>>, %arg1: memref<8x8x1xf32, #tpu.memory_space<vmem>>, %arg2: memref<128x768xbf16, #tpu.memory_space<vmem>>, %arg3: memref<2x128x384xbf16, #tpu.memory_space<vmem>>, %arg4: memref<1x768xf32, #tpu.memory_space<vmem>>, %arg5: memref<2x1x384xf32, #tpu.memory_space<vmem>>, %arg6: memref<8x8x256xf32, #tpu.memory_space<vmem>>, %arg7: memref<2x8x128xf32, #tpu.memory_space<vmem>>, %arg8: memref<64x768xf32, #tpu.memory_space<vmem>>) attributes {dimension_semantics = [], scalar_prefetch = 0 : i64, scratch_operands = 1 : i64, tpu.core_type = #tpu.core_type<tc>} {
    %c0 = arith.constant 0 : index
    %c0_0 = arith.constant 0 : index
    %c0_1 = arith.constant 0 : index
    %0 = vector.load %arg0[%c0, %c0_0, %c0_1] : memref<8x8x128xf32, #tpu.memory_space<vmem>>, vector<8x8x128xf32>
    %1 = vector.shape_cast %0 : vector<8x8x128xf32> to vector<64x128xf32>
    %2 = arith.truncf %1 : vector<64x128xf32> to vector<64x128xbf16>
    %c0_2 = arith.constant 0 : index
    %c0_3 = arith.constant 0 : index
    %3 = vector.load %arg2[%c0_2, %c0_3] : memref<128x768xbf16, #tpu.memory_space<vmem>>, vector<128x768xbf16>
    %cst = arith.constant dense<0.000000e+00> : vector<64x768xf32>
    %4 = tpu.matmul %2, %3, %cst {dimension_numbers = #tpu.dot_dimension_numbers<[1], [0], [0], [1], [0, 0, 1, 1], [], []>} : vector<64x128xbf16>, vector<128x768xbf16>, vector<64x768xf32> -> vector<64x768xf32>
    %c0_4 = arith.constant 0 : index
    %c0_5 = arith.constant 0 : index
    %5 = vector.load %arg4[%c0_4, %c0_5] : memref<1x768xf32, #tpu.memory_space<vmem>>, vector<1x768xf32>
    %6 = vector.broadcast %5 : vector<1x768xf32> to vector<64x768xf32>
    %7 = arith.addf %4, %6 : vector<64x768xf32>
    %c0_6 = arith.constant 0 : index
    %c0_7 = arith.constant 0 : index
    %8 = vector.load %arg8[%c0_6, %c0_7] : memref<64x768xf32, #tpu.memory_space<vmem>>, vector<64x768xf32>
    tpu.vector_store %arg8[%c0_6, %c0_7], %7 {strides = array<i32>} : memref<64x768xf32, #tpu.memory_space<vmem>>, vector<64x768xf32>,
    %c0_8 = arith.constant 0 : index
    %c0_9 = arith.constant 0 : index
    %c0_10 = arith.constant 0 : index
    %9 = vector.load %arg3[%c0_8, %c0_9, %c0_10] : memref<2x128x384xbf16, #tpu.memory_space<vmem>>, vector<1x128x384xbf16>
    %10 = vector.shape_cast %9 : vector<1x128x384xbf16> to vector<128x384xbf16>
    %c1 = arith.constant 1 : index
    %c0_11 = arith.constant 0 : index
    %c0_12 = arith.constant 0 : index
    %11 = vector.load %arg3[%c1, %c0_11, %c0_12] : memref<2x128x384xbf16, #tpu.memory_space<vmem>>, vector<1x128x384xbf16>
    %12 = vector.shape_cast %11 : vector<1x128x384xbf16> to vector<128x384xbf16>
    %c0_13 = arith.constant 0 : index
    %c0_14 = arith.constant 0 : index
    %c0_15 = arith.constant 0 : index
    %13 = vector.load %arg5[%c0_13, %c0_14, %c0_15] : memref<2x1x384xf32, #tpu.memory_space<vmem>>, vector<1x1x384xf32>
    %14 = vector.shape_cast %13 : vector<1x1x384xf32> to vector<1x384xf32>
    %c1_16 = arith.constant 1 : index
    %c0_17 = arith.constant 0 : index
    %c0_18 = arith.constant 0 : index
    %15 = vector.load %arg5[%c1_16, %c0_17, %c0_18] : memref<2x1x384xf32, #tpu.memory_space<vmem>>, vector<1x1x384xf32>
    %16 = vector.shape_cast %15 : vector<1x1x384xf32> to vector<1x384xf32>
    %cst_19 = arith.constant 0.000000e+00 : f32
    %17 = vector.broadcast %cst_19 : f32 to vector<8x128xf32>
    %c0_i32 = arith.constant 0 : i32
    %c7_i32 = arith.constant 7 : i32
    %18 = arith.subi %c7_i32, %c0_i32 : i32
    %c8_i32 = arith.constant 8 : i32
    %19 = arith.muli %c0_i32, %c8_i32 : i32
    %20 = tpu.assume_multiple %19, 8 : i32
    %c8_i32_20 = arith.constant 8 : i32
    %21 = arith.muli %18, %c8_i32_20 : i32
    %22 = tpu.assume_multiple %21, 8 : i32
    %23 = arith.index_cast %20 : i32 to index
    %c0_21 = arith.constant 0 : index
    %24 = vector.load %arg8[%23, %c0_21] : memref<64x768xf32, #tpu.memory_space<vmem>>, vector<8x384xf32>
    %25 = arith.index_cast %22 : i32 to index
    %c384 = arith.constant 384 : index
    %26 = vector.load %arg8[%25, %c384] : memref<64x768xf32, #tpu.memory_space<vmem>>, vector<8x384xf32>
    %27 = arith.index_cast %c0_i32 : i32 to index
    %c0_22 = arith.constant 0 : index
    %c0_23 = arith.constant 0 : index
    %28 = vector.load %arg1[%27, %c0_22, %c0_23] : memref<8x8x1xf32, #tpu.memory_space<vmem>>, vector<1x8x1xf32>
    %29 = vector.shape_cast %28 : vector<1x8x1xf32> to vector<8x1xf32>
    %30 = arith.index_cast %18 : i32 to index
    %c0_24 = arith.constant 0 : index
    %c0_25 = arith.constant 0 : index
    %31 = vector.load %arg1[%30, %c0_24, %c0_25] : memref<8x8x1xf32, #tpu.memory_space<vmem>>, vector<1x8x1xf32>
    %32 = vector.shape_cast %31 : vector<1x8x1xf32> to vector<8x1xf32>
    %33 = arith.truncf %17 : vector<8x128xf32> to vector<8x128xbf16>
    %cst_26 = arith.constant dense<0.000000e+00> : vector<8x384xf32>
    %34 = tpu.matmul %33, %10, %cst_26 {dimension_numbers = #tpu.dot_dimension_numbers<[1], [0], [0], [1], [0, 0, 1, 1], [], []>} : vector<8x128xbf16>, vector<128x384xbf16>, vector<8x384xf32> -> vector<8x384xf32>
    %35 = vector.broadcast %14 : vector<1x384xf32> to vector<8x384xf32>
    %36 = arith.addf %34, %35 : vector<8x384xf32>
    %37 = vector.extract_strided_slice %24 {offsets = [0, 0], sizes = [8, 128], strides = [1, 1]} : vector<8x384xf32> to vector<8x128xf32>
    %38 = vector.extract_strided_slice %36 {offsets = [0, 0], sizes = [8, 128], strides = [1, 1]} : vector<8x384xf32> to vector<8x128xf32>
    %39 = arith.addf %37, %38 : vector<8x128xf32>
    %40 = arith.negf %39 : vector<8x128xf32>
    %41 = math.exp %40 : vector<8x128xf32>
    %cst_27 = arith.constant 1.000000e+00 : f32
    %42 = vector.broadcast %cst_27 : f32 to vector<8x128xf32>
    %43 = arith.addf %42, %41 : vector<8x128xf32>
    %44 = arith.divf %42, %43 : vector<8x128xf32>
    %45 = vector.extract_strided_slice %24 {offsets = [0, 128], sizes = [8, 128], strides = [1, 1]} : vector<8x384xf32> to vector<8x128xf32>
    %46 = vector.extract_strided_slice %36 {offsets = [0, 128], sizes = [8, 128], strides = [1, 1]} : vector<8x384xf32> to vector<8x128xf32>
    %47 = arith.addf %45, %46 : vector<8x128xf32>
    %48 = arith.negf %47 : vector<8x128xf32>
    %49 = math.exp %48 : vector<8x128xf32>
    %cst_28 = arith.constant 1.000000e+00 : f32
    %50 = vector.broadcast %cst_28 : f32 to vector<8x128xf32>
    %51 = arith.addf %50, %49 : vector<8x128xf32>
    %52 = arith.divf %50, %51 : vector<8x128xf32>
    %53 = vector.extract_strided_slice %24 {offsets = [0, 256], sizes = [8, 128], strides = [1, 1]} : vector<8x384xf32> to vector<8x128xf32>
    %54 = vector.extract_strided_slice %36 {offsets = [0, 256], sizes = [8, 128], strides = [1, 1]} : vector<8x384xf32> to vector<8x128xf32>
    %55 = arith.mulf %44, %54 : vector<8x128xf32>
    %56 = arith.addf %53, %55 : vector<8x128xf32>
    %57 = math.tanh %56 : vector<8x128xf32>
    %cst_29 = arith.constant 1.000000e+00 : f32
    %58 = vector.broadcast %cst_29 : f32 to vector<8x128xf32>
    %59 = arith.subf %58, %52 : vector<8x128xf32>
    %60 = arith.mulf %59, %57 : vector<8x128xf32>
    %61 = arith.mulf %52, %17 : vector<8x128xf32>
    %62 = arith.addf %60, %61 : vector<8x128xf32>
    %63 = arith.truncf %17 : vector<8x128xf32> to vector<8x128xbf16>
    %cst_30 = arith.constant dense<0.000000e+00> : vector<8x384xf32>
    %64 = tpu.matmul %63, %12, %cst_30 {dimension_numbers = #tpu.dot_dimension_numbers<[1], [0], [0], [1], [0, 0, 1, 1], [], []>} : vector<8x128xbf16>, vector<128x384xbf16>, vector<8x384xf32> -> vector<8x384xf32>
    %65 = vector.broadcast %16 : vector<1x384xf32> to vector<8x384xf32>
    %66 = arith.addf %64, %65 : vector<8x384xf32>
    %67 = vector.extract_strided_slice %26 {offsets = [0, 0], sizes = [8, 128], strides = [1, 1]} : vector<8x384xf32> to vector<8x128xf32>
    %68 = vector.extract_strided_slice %66 {offsets = [0, 0], sizes = [8, 128], strides = [1, 1]} : vector<8x384xf32> to vector<8x128xf32>
    %69 = arith.addf %67, %68 : vector<8x128xf32>
    %70 = arith.negf %69 : vector<8x128xf32>
    %71 = math.exp %70 : vector<8x128xf32>
    %cst_31 = arith.constant 1.000000e+00 : f32
    %72 = vector.broadcast %cst_31 : f32 to vector<8x128xf32>
    %73 = arith.addf %72, %71 : vector<8x128xf32>
    %74 = arith.divf %72, %73 : vector<8x128xf32>
    %75 = vector.extract_strided_slice %26 {offsets = [0, 128], sizes = [8, 128], strides = [1, 1]} : vector<8x384xf32> to vector<8x128xf32>
    %76 = vector.extract_strided_slice %66 {offsets = [0, 128], sizes = [8, 128], strides = [1, 1]} : vector<8x384xf32> to vector<8x128xf32>
    %77 = arith.addf %75, %76 : vector<8x128xf32>
    %78 = arith.negf %77 : vector<8x128xf32>
    %79 = math.exp %78 : vector<8x128xf32>
    %cst_32 = arith.constant 1.000000e+00 : f32
    %80 = vector.broadcast %cst_32 : f32 to vector<8x128xf32>
    %81 = arith.addf %80, %79 : vector<8x128xf32>
    %82 = arith.divf %80, %81 : vector<8x128xf32>
    %83 = vector.extract_strided_slice %26 {offsets = [0, 256], sizes = [8, 128], strides = [1, 1]} : vector<8x384xf32> to vector<8x128xf32>
    %84 = vector.extract_strided_slice %66 {offsets = [0, 256], sizes = [8, 128], strides = [1, 1]} : vector<8x384xf32> to vector<8x128xf32>
    %85 = arith.mulf %74, %84 : vector<8x128xf32>
    %86 = arith.addf %83, %85 : vector<8x128xf32>
    %87 = math.tanh %86 : vector<8x128xf32>
    %cst_33 = arith.constant 1.000000e+00 : f32
    %88 = vector.broadcast %cst_33 : f32 to vector<8x128xf32>
    %89 = arith.subf %88, %82 : vector<8x128xf32>
    %90 = arith.mulf %89, %87 : vector<8x128xf32>
    %91 = arith.mulf %82, %17 : vector<8x128xf32>
    %92 = arith.addf %90, %91 : vector<8x128xf32>
    %93 = vector.broadcast %29 : vector<8x1xf32> to vector<8x128xf32>
    %94 = arith.mulf %93, %62 : vector<8x128xf32>
    %95 = arith.index_cast %c0_i32 : i32 to index
    %c0_34 = arith.constant 0 : index
    %c0_35 = arith.constant 0 : index
    %96 = vector.load %arg6[%95, %c0_34, %c0_35] : memref<8x8x256xf32, #tpu.memory_space<vmem>>, vector<1x8x128xf32>
    %97 = vector.shape_cast %96 : vector<1x8x128xf32> to vector<8x128xf32>
    %98 = vector.shape_cast %94 : vector<8x128xf32> to vector<1x8x128xf32>
    tpu.vector_store %arg6[%95, %c0_34, %c0_35], %98 {strides = array<i32>} : memref<8x8x256xf32, #tpu.memory_space<vmem>>, vector<1x8x128xf32>,
    %99 = vector.broadcast %32 : vector<8x1xf32> to vector<8x128xf32>
    %100 = arith.mulf %99, %92 : vector<8x128xf32>
    %101 = arith.index_cast %18 : i32 to index
    %c0_36 = arith.constant 0 : index
    %c128 = arith.constant 128 : index
    %102 = vector.load %arg6[%101, %c0_36, %c128] : memref<8x8x256xf32, #tpu.memory_space<vmem>>, vector<1x8x128xf32>
    %103 = vector.shape_cast %102 : vector<1x8x128xf32> to vector<8x128xf32>
    %104 = vector.shape_cast %100 : vector<8x128xf32> to vector<1x8x128xf32>
    tpu.vector_store %arg6[%101, %c0_36, %c128], %104 {strides = array<i32>} : memref<8x8x256xf32, #tpu.memory_space<vmem>>, vector<1x8x128xf32>,
    %105 = arith.subf %62, %17 : vector<8x128xf32>
    %106 = vector.broadcast %29 : vector<8x1xf32> to vector<8x128xf32>
    %107 = arith.mulf %106, %105 : vector<8x128xf32>
    %108 = arith.addf %17, %107 : vector<8x128xf32>
    %109 = arith.subf %92, %17 : vector<8x128xf32>
    %110 = vector.broadcast %32 : vector<8x1xf32> to vector<8x128xf32>
    %111 = arith.mulf %110, %109 : vector<8x128xf32>
    %112 = arith.addf %17, %111 : vector<8x128xf32>
    %c1_i32 = arith.constant 1 : i32
    %c7_i32_37 = arith.constant 7 : i32
    %113 = arith.subi %c7_i32_37, %c1_i32 : i32
    %c8_i32_38 = arith.constant 8 : i32
    %114 = arith.muli %c1_i32, %c8_i32_38 : i32
    %115 = tpu.assume_multiple %114, 8 : i32
    %c8_i32_39 = arith.constant 8 : i32
    %116 = arith.muli %113, %c8_i32_39 : i32
    %117 = tpu.assume_multiple %116, 8 : i32
    %118 = arith.index_cast %115 : i32 to index
    %c0_40 = arith.constant 0 : index
    %119 = vector.load %arg8[%118, %c0_40] : memref<64x768xf32, #tpu.memory_space<vmem>>, vector<8x384xf32>
    %120 = arith.index_cast %117 : i32 to index
    %c384_41 = arith.constant 384 : index
    %121 = vector.load %arg8[%120, %c384_41] : memref<64x768xf32, #tpu.memory_space<vmem>>, vector<8x384xf32>
    %122 = arith.index_cast %c1_i32 : i32 to index
    %c0_42 = arith.constant 0 : index
    %c0_43 = arith.constant 0 : index
    %123 = vector.load %arg1[%122, %c0_42, %c0_43] : memref<8x8x1xf32, #tpu.memory_space<vmem>>, vector<1x8x1xf32>
    %124 = vector.shape_cast %123 : vector<1x8x1xf32> to vector<8x1xf32>
    %125 = arith.index_cast %113 : i32 to index
    %c0_44 = arith.constant 0 : index
    %c0_45 = arith.constant 0 : index
    %126 = vector.load %arg1[%125, %c0_44, %c0_45] : memref<8x8x1xf32, #tpu.memory_space<vmem>>, vector<1x8x1xf32>
    %127 = vector.shape_cast %126 : vector<1x8x1xf32> to vector<8x1xf32>
    %128 = arith.truncf %108 : vector<8x128xf32> to vector<8x128xbf16>
    %cst_46 = arith.constant dense<0.000000e+00> : vector<8x384xf32>
    %129 = tpu.matmul %128, %10, %cst_46 {dimension_numbers = #tpu.dot_dimension_numbers<[1], [0], [0], [1], [0, 0, 1, 1], [], []>} : vector<8x128xbf16>, vector<128x384xbf16>, vector<8x384xf32> -> vector<8x384xf32>
    %130 = vector.broadcast %14 : vector<1x384xf32> to vector<8x384xf32>
    %131 = arith.addf %129, %130 : vector<8x384xf32>
    %132 = vector.extract_strided_slice %119 {offsets = [0, 0], sizes = [8, 128], strides = [1, 1]} : vector<8x384xf32> to vector<8x128xf32>
    %133 = vector.extract_strided_slice %131 {offsets = [0, 0], sizes = [8, 128], strides = [1, 1]} : vector<8x384xf32> to vector<8x128xf32>
    %134 = arith.addf %132, %133 : vector<8x128xf32>
    %135 = arith.negf %134 : vector<8x128xf32>
    %136 = math.exp %135 : vector<8x128xf32>
    %cst_47 = arith.constant 1.000000e+00 : f32
    %137 = vector.broadcast %cst_47 : f32 to vector<8x128xf32>
    %138 = arith.addf %137, %136 : vector<8x128xf32>
    %139 = arith.divf %137, %138 : vector<8x128xf32>
    %140 = vector.extract_strided_slice %119 {offsets = [0, 128], sizes = [8, 128], strides = [1, 1]} : vector<8x384xf32> to vector<8x128xf32>
    %141 = vector.extract_strided_slice %131 {offsets = [0, 128], sizes = [8, 128], strides = [1, 1]} : vector<8x384xf32> to vector<8x128xf32>
    %142 = arith.addf %140, %141 : vector<8x128xf32>
    %143 = arith.negf %142 : vector<8x128xf32>
    %144 = math.exp %143 : vector<8x128xf32>
    %cst_48 = arith.constant 1.000000e+00 : f32
    %145 = vector.broadcast %cst_48 : f32 to vector<8x128xf32>
    %146 = arith.addf %145, %144 : vector<8x128xf32>
    %147 = arith.divf %145, %146 : vector<8x128xf32>
    %148 = vector.extract_strided_slice %119 {offsets = [0, 256], sizes = [8, 128], strides = [1, 1]} : vector<8x384xf32> to vector<8x128xf32>
    %149 = vector.extract_strided_slice %131 {offsets = [0, 256], sizes = [8, 128], strides = [1, 1]} : vector<8x384xf32> to vector<8x128xf32>
    %150 = arith.mulf %139, %149 : vector<8x128xf32>
    %151 = arith.addf %148, %150 : vector<8x128xf32>
    %152 = math.tanh %151 : vector<8x128xf32>
    %cst_49 = arith.constant 1.000000e+00 : f32
    %153 = vector.broadcast %cst_49 : f32 to vector<8x128xf32>
    %154 = arith.subf %153, %147 : vector<8x128xf32>
    %155 = arith.mulf %154, %152 : vector<8x128xf32>
    %156 = arith.mulf %147, %108 : vector<8x128xf32>
    %157 = arith.addf %155, %156 : vector<8x128xf32>
    %158 = arith.truncf %112 : vector<8x128xf32> to vector<8x128xbf16>
    %cst_50 = arith.constant dense<0.000000e+00> : vector<8x384xf32>
    %159 = tpu.matmul %158, %12, %cst_50 {dimension_numbers = #tpu.dot_dimension_numbers<[1], [0], [0], [1], [0, 0, 1, 1], [], []>} : vector<8x128xbf16>, vector<128x384xbf16>, vector<8x384xf32> -> vector<8x384xf32>
    %160 = vector.broadcast %16 : vector<1x384xf32> to vector<8x384xf32>
    %161 = arith.addf %159, %160 : vector<8x384xf32>
    %162 = vector.extract_strided_slice %121 {offsets = [0, 0], sizes = [8, 128], strides = [1, 1]} : vector<8x384xf32> to vector<8x128xf32>
    %163 = vector.extract_strided_slice %161 {offsets = [0, 0], sizes = [8, 128], strides = [1, 1]} : vector<8x384xf32> to vector<8x128xf32>
    %164 = arith.addf %162, %163 : vector<8x128xf32>
    %165 = arith.negf %164 : vector<8x128xf32>
    %166 = math.exp %165 : vector<8x128xf32>
    %cst_51 = arith.constant 1.000000e+00 : f32
    %167 = vector.broadcast %cst_51 : f32 to vector<8x128xf32>
    %168 = arith.addf %167, %166 : vector<8x128xf32>
    %169 = arith.divf %167, %168 : vector<8x128xf32>
    %170 = vector.extract_strided_slice %121 {offsets = [0, 128], sizes = [8, 128], strides = [1, 1]} : vector<8x384xf32> to vector<8x128xf32>
    %171 = vector.extract_strided_slice %161 {offsets = [0, 128], sizes = [8, 128], strides = [1, 1]} : vector<8x384xf32> to vector<8x128xf32>
    %172 = arith.addf %170, %171 : vector<8x128xf32>
    %173 = arith.negf %172 : vector<8x128xf32>
    %174 = math.exp %173 : vector<8x128xf32>
    %cst_52 = arith.constant 1.000000e+00 : f32
    %175 = vector.broadcast %cst_52 : f32 to vector<8x128xf32>
    %176 = arith.addf %175, %174 : vector<8x128xf32>
    %177 = arith.divf %175, %176 : vector<8x128xf32>
    %178 = vector.extract_strided_slice %121 {offsets = [0, 256], sizes = [8, 128], strides = [1, 1]} : vector<8x384xf32> to vector<8x128xf32>
    %179 = vector.extract_strided_slice %161 {offsets = [0, 256], sizes = [8, 128], strides = [1, 1]} : vector<8x384xf32> to vector<8x128xf32>
    %180 = arith.mulf %169, %179 : vector<8x128xf32>
    %181 = arith.addf %178, %180 : vector<8x128xf32>
    %182 = math.tanh %181 : vector<8x128xf32>
    %cst_53 = arith.constant 1.000000e+00 : f32
    %183 = vector.broadcast %cst_53 : f32 to vector<8x128xf32>
    %184 = arith.subf %183, %177 : vector<8x128xf32>
    %185 = arith.mulf %184, %182 : vector<8x128xf32>
    %186 = arith.mulf %177, %112 : vector<8x128xf32>
    %187 = arith.addf %185, %186 : vector<8x128xf32>
    %188 = vector.broadcast %124 : vector<8x1xf32> to vector<8x128xf32>
    %189 = arith.mulf %188, %157 : vector<8x128xf32>
    %190 = arith.index_cast %c1_i32 : i32 to index
    %c0_54 = arith.constant 0 : index
    %c0_55 = arith.constant 0 : index
    %191 = vector.load %arg6[%190, %c0_54, %c0_55] : memref<8x8x256xf32, #tpu.memory_space<vmem>>, vector<1x8x128xf32>
    %192 = vector.shape_cast %191 : vector<1x8x128xf32> to vector<8x128xf32>
    %193 = vector.shape_cast %189 : vector<8x128xf32> to vector<1x8x128xf32>
    tpu.vector_store %arg6[%190, %c0_54, %c0_55], %193 {strides = array<i32>} : memref<8x8x256xf32, #tpu.memory_space<vmem>>, vector<1x8x128xf32>,
    %194 = vector.broadcast %127 : vector<8x1xf32> to vector<8x128xf32>
    %195 = arith.mulf %194, %187 : vector<8x128xf32>
    %196 = arith.index_cast %113 : i32 to index
    %c0_56 = arith.constant 0 : index
    %c128_57 = arith.constant 128 : index
    %197 = vector.load %arg6[%196, %c0_56, %c128_57] : memref<8x8x256xf32, #tpu.memory_space<vmem>>, vector<1x8x128xf32>
    %198 = vector.shape_cast %197 : vector<1x8x128xf32> to vector<8x128xf32>
    %199 = vector.shape_cast %195 : vector<8x128xf32> to vector<1x8x128xf32>
    tpu.vector_store %arg6[%196, %c0_56, %c128_57], %199 {strides = array<i32>} : memref<8x8x256xf32, #tpu.memory_space<vmem>>, vector<1x8x128xf32>,
    %200 = arith.subf %157, %108 : vector<8x128xf32>
    %201 = vector.broadcast %124 : vector<8x1xf32> to vector<8x128xf32>
    %202 = arith.mulf %201, %200 : vector<8x128xf32>
    %203 = arith.addf %108, %202 : vector<8x128xf32>
    %204 = arith.subf %187, %112 : vector<8x128xf32>
    %205 = vector.broadcast %127 : vector<8x1xf32> to vector<8x128xf32>
    %206 = arith.mulf %205, %204 : vector<8x128xf32>
    %207 = arith.addf %112, %206 : vector<8x128xf32>
    %c2_i32 = arith.constant 2 : i32
    %c7_i32_58 = arith.constant 7 : i32
    %208 = arith.subi %c7_i32_58, %c2_i32 : i32
    %c8_i32_59 = arith.constant 8 : i32
    %209 = arith.muli %c2_i32, %c8_i32_59 : i32
    %210 = tpu.assume_multiple %209, 8 : i32
    %c8_i32_60 = arith.constant 8 : i32
    %211 = arith.muli %208, %c8_i32_60 : i32
    %212 = tpu.assume_multiple %211, 8 : i32
    %213 = arith.index_cast %210 : i32 to index
    %c0_61 = arith.constant 0 : index
    %214 = vector.load %arg8[%213, %c0_61] : memref<64x768xf32, #tpu.memory_space<vmem>>, vector<8x384xf32>
    %215 = arith.index_cast %212 : i32 to index
    %c384_62 = arith.constant 384 : index
    %216 = vector.load %arg8[%215, %c384_62] : memref<64x768xf32, #tpu.memory_space<vmem>>, vector<8x384xf32>
    %217 = arith.index_cast %c2_i32 : i32 to index
    %c0_63 = arith.constant 0 : index
    %c0_64 = arith.constant 0 : index
    %218 = vector.load %arg1[%217, %c0_63, %c0_64] : memref<8x8x1xf32, #tpu.memory_space<vmem>>, vector<1x8x1xf32>
    %219 = vector.shape_cast %218 : vector<1x8x1xf32> to vector<8x1xf32>
    %220 = arith.index_cast %208 : i32 to index
    %c0_65 = arith.constant 0 : index
    %c0_66 = arith.constant 0 : index
    %221 = vector.load %arg1[%220, %c0_65, %c0_66] : memref<8x8x1xf32, #tpu.memory_space<vmem>>, vector<1x8x1xf32>
    %222 = vector.shape_cast %221 : vector<1x8x1xf32> to vector<8x1xf32>
    %223 = arith.truncf %203 : vector<8x128xf32> to vector<8x128xbf16>
    %cst_67 = arith.constant dense<0.000000e+00> : vector<8x384xf32>
    %224 = tpu.matmul %223, %10, %cst_67 {dimension_numbers = #tpu.dot_dimension_numbers<[1], [0], [0], [1], [0, 0, 1, 1], [], []>} : vector<8x128xbf16>, vector<128x384xbf16>, vector<8x384xf32> -> vector<8x384xf32>
    %225 = vector.broadcast %14 : vector<1x384xf32> to vector<8x384xf32>
    %226 = arith.addf %224, %225 : vector<8x384xf32>
    %227 = vector.extract_strided_slice %214 {offsets = [0, 0], sizes = [8, 128], strides = [1, 1]} : vector<8x384xf32> to vector<8x128xf32>
    %228 = vector.extract_strided_slice %226 {offsets = [0, 0], sizes = [8, 128], strides = [1, 1]} : vector<8x384xf32> to vector<8x128xf32>
    %229 = arith.addf %227, %228 : vector<8x128xf32>
    %230 = arith.negf %229 : vector<8x128xf32>
    %231 = math.exp %230 : vector<8x128xf32>
    %cst_68 = arith.constant 1.000000e+00 : f32
    %232 = vector.broadcast %cst_68 : f32 to vector<8x128xf32>
    %233 = arith.addf %232, %231 : vector<8x128xf32>
    %234 = arith.divf %232, %233 : vector<8x128xf32>
    %235 = vector.extract_strided_slice %214 {offsets = [0, 128], sizes = [8, 128], strides = [1, 1]} : vector<8x384xf32> to vector<8x128xf32>
    %236 = vector.extract_strided_slice %226 {offsets = [0, 128], sizes = [8, 128], strides = [1, 1]} : vector<8x384xf32> to vector<8x128xf32>
    %237 = arith.addf %235, %236 : vector<8x128xf32>
    %238 = arith.negf %237 : vector<8x128xf32>
    %239 = math.exp %238 : vector<8x128xf32>
    %cst_69 = arith.constant 1.000000e+00 : f32
    %240 = vector.broadcast %cst_69 : f32 to vector<8x128xf32>
    %241 = arith.addf %240, %239 : vector<8x128xf32>
    %242 = arith.divf %240, %241 : vector<8x128xf32>
    %243 = vector.extract_strided_slice %214 {offsets = [0, 256], sizes = [8, 128], strides = [1, 1]} : vector<8x384xf32> to vector<8x128xf32>
    %244 = vector.extract_strided_slice %226 {offsets = [0, 256], sizes = [8, 128], strides = [1, 1]} : vector<8x384xf32> to vector<8x128xf32>
    %245 = arith.mulf %234, %244 : vector<8x128xf32>
    %246 = arith.addf %243, %245 : vector<8x128xf32>
    %247 = math.tanh %246 : vector<8x128xf32>
    %cst_70 = arith.constant 1.000000e+00 : f32
    %248 = vector.broadcast %cst_70 : f32 to vector<8x128xf32>
    %249 = arith.subf %248, %242 : vector<8x128xf32>
    %250 = arith.mulf %249, %247 : vector<8x128xf32>
    %251 = arith.mulf %242, %203 : vector<8x128xf32>
    %252 = arith.addf %250, %251 : vector<8x128xf32>
    %253 = arith.truncf %207 : vector<8x128xf32> to vector<8x128xbf16>
    %cst_71 = arith.constant dense<0.000000e+00> : vector<8x384xf32>
    %254 = tpu.matmul %253, %12, %cst_71 {dimension_numbers = #tpu.dot_dimension_numbers<[1], [0], [0], [1], [0, 0, 1, 1], [], []>} : vector<8x128xbf16>, vector<128x384xbf16>, vector<8x384xf32> -> vector<8x384xf32>
    %255 = vector.broadcast %16 : vector<1x384xf32> to vector<8x384xf32>
    %256 = arith.addf %254, %255 : vector<8x384xf32>
    %257 = vector.extract_strided_slice %216 {offsets = [0, 0], sizes = [8, 128], strides = [1, 1]} : vector<8x384xf32> to vector<8x128xf32>
    %258 = vector.extract_strided_slice %256 {offsets = [0, 0], sizes = [8, 128], strides = [1, 1]} : vector<8x384xf32> to vector<8x128xf32>
    %259 = arith.addf %257, %258 : vector<8x128xf32>
    %260 = arith.negf %259 : vector<8x128xf32>
    %261 = math.exp %260 : vector<8x128xf32>
    %cst_72 = arith.constant 1.000000e+00 : f32
    %262 = vector.broadcast %cst_72 : f32 to vector<8x128xf32>
    %263 = arith.addf %262, %261 : vector<8x128xf32>
    %264 = arith.divf %262, %263 : vector<8x128xf32>
    %265 = vector.extract_strided_slice %216 {offsets = [0, 128], sizes = [8, 128], strides = [1, 1]} : vector<8x384xf32> to vector<8x128xf32>
    %266 = vector.extract_strided_slice %256 {offsets = [0, 128], sizes = [8, 128], strides = [1, 1]} : vector<8x384xf32> to vector<8x128xf32>
    %267 = arith.addf %265, %266 : vector<8x128xf32>
    %268 = arith.negf %267 : vector<8x128xf32>
    %269 = math.exp %268 : vector<8x128xf32>
    %cst_73 = arith.constant 1.000000e+00 : f32
    %270 = vector.broadcast %cst_73 : f32 to vector<8x128xf32>
    %271 = arith.addf %270, %269 : vector<8x128xf32>
    %272 = arith.divf %270, %271 : vector<8x128xf32>
    %273 = vector.extract_strided_slice %216 {offsets = [0, 256], sizes = [8, 128], strides = [1, 1]} : vector<8x384xf32> to vector<8x128xf32>
    %274 = vector.extract_strided_slice %256 {offsets = [0, 256], sizes = [8, 128], strides = [1, 1]} : vector<8x384xf32> to vector<8x128xf32>
    %275 = arith.mulf %264, %274 : vector<8x128xf32>
    %276 = arith.addf %273, %275 : vector<8x128xf32>
    %277 = math.tanh %276 : vector<8x128xf32>
    %cst_74 = arith.constant 1.000000e+00 : f32
    %278 = vector.broadcast %cst_74 : f32 to vector<8x128xf32>
    %279 = arith.subf %278, %272 : vector<8x128xf32>
    %280 = arith.mulf %279, %277 : vector<8x128xf32>
    %281 = arith.mulf %272, %207 : vector<8x128xf32>
    %282 = arith.addf %280, %281 : vector<8x128xf32>
    %283 = vector.broadcast %219 : vector<8x1xf32> to vector<8x128xf32>
    %284 = arith.mulf %283, %252 : vector<8x128xf32>
    %285 = arith.index_cast %c2_i32 : i32 to index
    %c0_75 = arith.constant 0 : index
    %c0_76 = arith.constant 0 : index
    %286 = vector.load %arg6[%285, %c0_75, %c0_76] : memref<8x8x256xf32, #tpu.memory_space<vmem>>, vector<1x8x128xf32>
    %287 = vector.shape_cast %286 : vector<1x8x128xf32> to vector<8x128xf32>
    %288 = vector.shape_cast %284 : vector<8x128xf32> to vector<1x8x128xf32>
    tpu.vector_store %arg6[%285, %c0_75, %c0_76], %288 {strides = array<i32>} : memref<8x8x256xf32, #tpu.memory_space<vmem>>, vector<1x8x128xf32>,
    %289 = vector.broadcast %222 : vector<8x1xf32> to vector<8x128xf32>
    %290 = arith.mulf %289, %282 : vector<8x128xf32>
    %291 = arith.index_cast %208 : i32 to index
    %c0_77 = arith.constant 0 : index
    %c128_78 = arith.constant 128 : index
    %292 = vector.load %arg6[%291, %c0_77, %c128_78] : memref<8x8x256xf32, #tpu.memory_space<vmem>>, vector<1x8x128xf32>
    %293 = vector.shape_cast %292 : vector<1x8x128xf32> to vector<8x128xf32>
    %294 = vector.shape_cast %290 : vector<8x128xf32> to vector<1x8x128xf32>
    tpu.vector_store %arg6[%291, %c0_77, %c128_78], %294 {strides = array<i32>} : memref<8x8x256xf32, #tpu.memory_space<vmem>>, vector<1x8x128xf32>,
    %295 = arith.subf %252, %203 : vector<8x128xf32>
    %296 = vector.broadcast %219 : vector<8x1xf32> to vector<8x128xf32>
    %297 = arith.mulf %296, %295 : vector<8x128xf32>
    %298 = arith.addf %203, %297 : vector<8x128xf32>
    %299 = arith.subf %282, %207 : vector<8x128xf32>
    %300 = vector.broadcast %222 : vector<8x1xf32> to vector<8x128xf32>
    %301 = arith.mulf %300, %299 : vector<8x128xf32>
    %302 = arith.addf %207, %301 : vector<8x128xf32>
    %c3_i32 = arith.constant 3 : i32
    %c7_i32_79 = arith.constant 7 : i32
    %303 = arith.subi %c7_i32_79, %c3_i32 : i32
    %c8_i32_80 = arith.constant 8 : i32
    %304 = arith.muli %c3_i32, %c8_i32_80 : i32
    %305 = tpu.assume_multiple %304, 8 : i32
    %c8_i32_81 = arith.constant 8 : i32
    %306 = arith.muli %303, %c8_i32_81 : i32
    %307 = tpu.assume_multiple %306, 8 : i32
    %308 = arith.index_cast %305 : i32 to index
    %c0_82 = arith.constant 0 : index
    %309 = vector.load %arg8[%308, %c0_82] : memref<64x768xf32, #tpu.memory_space<vmem>>, vector<8x384xf32>
    %310 = arith.index_cast %307 : i32 to index
    %c384_83 = arith.constant 384 : index
    %311 = vector.load %arg8[%310, %c384_83] : memref<64x768xf32, #tpu.memory_space<vmem>>, vector<8x384xf32>
    %312 = arith.index_cast %c3_i32 : i32 to index
    %c0_84 = arith.constant 0 : index
    %c0_85 = arith.constant 0 : index
    %313 = vector.load %arg1[%312, %c0_84, %c0_85] : memref<8x8x1xf32, #tpu.memory_space<vmem>>, vector<1x8x1xf32>
    %314 = vector.shape_cast %313 : vector<1x8x1xf32> to vector<8x1xf32>
    %315 = arith.index_cast %303 : i32 to index
    %c0_86 = arith.constant 0 : index
    %c0_87 = arith.constant 0 : index
    %316 = vector.load %arg1[%315, %c0_86, %c0_87] : memref<8x8x1xf32, #tpu.memory_space<vmem>>, vector<1x8x1xf32>
    %317 = vector.shape_cast %316 : vector<1x8x1xf32> to vector<8x1xf32>
    %318 = arith.truncf %298 : vector<8x128xf32> to vector<8x128xbf16>
    %cst_88 = arith.constant dense<0.000000e+00> : vector<8x384xf32>
    %319 = tpu.matmul %318, %10, %cst_88 {dimension_numbers = #tpu.dot_dimension_numbers<[1], [0], [0], [1], [0, 0, 1, 1], [], []>} : vector<8x128xbf16>, vector<128x384xbf16>, vector<8x384xf32> -> vector<8x384xf32>
    %320 = vector.broadcast %14 : vector<1x384xf32> to vector<8x384xf32>
    %321 = arith.addf %319, %320 : vector<8x384xf32>
    %322 = vector.extract_strided_slice %309 {offsets = [0, 0], sizes = [8, 128], strides = [1, 1]} : vector<8x384xf32> to vector<8x128xf32>
    %323 = vector.extract_strided_slice %321 {offsets = [0, 0], sizes = [8, 128], strides = [1, 1]} : vector<8x384xf32> to vector<8x128xf32>
    %324 = arith.addf %322, %323 : vector<8x128xf32>
    %325 = arith.negf %324 : vector<8x128xf32>
    %326 = math.exp %325 : vector<8x128xf32>
    %cst_89 = arith.constant 1.000000e+00 : f32
    %327 = vector.broadcast %cst_89 : f32 to vector<8x128xf32>
    %328 = arith.addf %327, %326 : vector<8x128xf32>
    %329 = arith.divf %327, %328 : vector<8x128xf32>
    %330 = vector.extract_strided_slice %309 {offsets = [0, 128], sizes = [8, 128], strides = [1, 1]} : vector<8x384xf32> to vector<8x128xf32>
    %331 = vector.extract_strided_slice %321 {offsets = [0, 128], sizes = [8, 128], strides = [1, 1]} : vector<8x384xf32> to vector<8x128xf32>
    %332 = arith.addf %330, %331 : vector<8x128xf32>
    %333 = arith.negf %332 : vector<8x128xf32>
    %334 = math.exp %333 : vector<8x128xf32>
    %cst_90 = arith.constant 1.000000e+00 : f32
    %335 = vector.broadcast %cst_90 : f32 to vector<8x128xf32>
    %336 = arith.addf %335, %334 : vector<8x128xf32>
    %337 = arith.divf %335, %336 : vector<8x128xf32>
    %338 = vector.extract_strided_slice %309 {offsets = [0, 256], sizes = [8, 128], strides = [1, 1]} : vector<8x384xf32> to vector<8x128xf32>
    %339 = vector.extract_strided_slice %321 {offsets = [0, 256], sizes = [8, 128], strides = [1, 1]} : vector<8x384xf32> to vector<8x128xf32>
    %340 = arith.mulf %329, %339 : vector<8x128xf32>
    %341 = arith.addf %338, %340 : vector<8x128xf32>
    %342 = math.tanh %341 : vector<8x128xf32>
    %cst_91 = arith.constant 1.000000e+00 : f32
    %343 = vector.broadcast %cst_91 : f32 to vector<8x128xf32>
    %344 = arith.subf %343, %337 : vector<8x128xf32>
    %345 = arith.mulf %344, %342 : vector<8x128xf32>
    %346 = arith.mulf %337, %298 : vector<8x128xf32>
    %347 = arith.addf %345, %346 : vector<8x128xf32>
    %348 = arith.truncf %302 : vector<8x128xf32> to vector<8x128xbf16>
    %cst_92 = arith.constant dense<0.000000e+00> : vector<8x384xf32>
    %349 = tpu.matmul %348, %12, %cst_92 {dimension_numbers = #tpu.dot_dimension_numbers<[1], [0], [0], [1], [0, 0, 1, 1], [], []>} : vector<8x128xbf16>, vector<128x384xbf16>, vector<8x384xf32> -> vector<8x384xf32>
    %350 = vector.broadcast %16 : vector<1x384xf32> to vector<8x384xf32>
    %351 = arith.addf %349, %350 : vector<8x384xf32>
    %352 = vector.extract_strided_slice %311 {offsets = [0, 0], sizes = [8, 128], strides = [1, 1]} : vector<8x384xf32> to vector<8x128xf32>
    %353 = vector.extract_strided_slice %351 {offsets = [0, 0], sizes = [8, 128], strides = [1, 1]} : vector<8x384xf32> to vector<8x128xf32>
    %354 = arith.addf %352, %353 : vector<8x128xf32>
    %355 = arith.negf %354 : vector<8x128xf32>
    %356 = math.exp %355 : vector<8x128xf32>
    %cst_93 = arith.constant 1.000000e+00 : f32
    %357 = vector.broadcast %cst_93 : f32 to vector<8x128xf32>
    %358 = arith.addf %357, %356 : vector<8x128xf32>
    %359 = arith.divf %357, %358 : vector<8x128xf32>
    %360 = vector.extract_strided_slice %311 {offsets = [0, 128], sizes = [8, 128], strides = [1, 1]} : vector<8x384xf32> to vector<8x128xf32>
    %361 = vector.extract_strided_slice %351 {offsets = [0, 128], sizes = [8, 128], strides = [1, 1]} : vector<8x384xf32> to vector<8x128xf32>
    %362 = arith.addf %360, %361 : vector<8x128xf32>
    %363 = arith.negf %362 : vector<8x128xf32>
    %364 = math.exp %363 : vector<8x128xf32>
    %cst_94 = arith.constant 1.000000e+00 : f32
    %365 = vector.broadcast %cst_94 : f32 to vector<8x128xf32>
    %366 = arith.addf %365, %364 : vector<8x128xf32>
    %367 = arith.divf %365, %366 : vector<8x128xf32>
    %368 = vector.extract_strided_slice %311 {offsets = [0, 256], sizes = [8, 128], strides = [1, 1]} : vector<8x384xf32> to vector<8x128xf32>
    %369 = vector.extract_strided_slice %351 {offsets = [0, 256], sizes = [8, 128], strides = [1, 1]} : vector<8x384xf32> to vector<8x128xf32>
    %370 = arith.mulf %359, %369 : vector<8x128xf32>
    %371 = arith.addf %368, %370 : vector<8x128xf32>
    %372 = math.tanh %371 : vector<8x128xf32>
    %cst_95 = arith.constant 1.000000e+00 : f32
    %373 = vector.broadcast %cst_95 : f32 to vector<8x128xf32>
    %374 = arith.subf %373, %367 : vector<8x128xf32>
    %375 = arith.mulf %374, %372 : vector<8x128xf32>
    %376 = arith.mulf %367, %302 : vector<8x128xf32>
    %377 = arith.addf %375, %376 : vector<8x128xf32>
    %378 = vector.broadcast %314 : vector<8x1xf32> to vector<8x128xf32>
    %379 = arith.mulf %378, %347 : vector<8x128xf32>
    %380 = arith.index_cast %c3_i32 : i32 to index
    %c0_96 = arith.constant 0 : index
    %c0_97 = arith.constant 0 : index
    %381 = vector.load %arg6[%380, %c0_96, %c0_97] : memref<8x8x256xf32, #tpu.memory_space<vmem>>, vector<1x8x128xf32>
    %382 = vector.shape_cast %381 : vector<1x8x128xf32> to vector<8x128xf32>
    %383 = vector.shape_cast %379 : vector<8x128xf32> to vector<1x8x128xf32>
    tpu.vector_store %arg6[%380, %c0_96, %c0_97], %383 {strides = array<i32>} : memref<8x8x256xf32, #tpu.memory_space<vmem>>, vector<1x8x128xf32>,
    %384 = vector.broadcast %317 : vector<8x1xf32> to vector<8x128xf32>
    %385 = arith.mulf %384, %377 : vector<8x128xf32>
    %386 = arith.index_cast %303 : i32 to index
    %c0_98 = arith.constant 0 : index
    %c128_99 = arith.constant 128 : index
    %387 = vector.load %arg6[%386, %c0_98, %c128_99] : memref<8x8x256xf32, #tpu.memory_space<vmem>>, vector<1x8x128xf32>
    %388 = vector.shape_cast %387 : vector<1x8x128xf32> to vector<8x128xf32>
    %389 = vector.shape_cast %385 : vector<8x128xf32> to vector<1x8x128xf32>
    tpu.vector_store %arg6[%386, %c0_98, %c128_99], %389 {strides = array<i32>} : memref<8x8x256xf32, #tpu.memory_space<vmem>>, vector<1x8x128xf32>,
    %390 = arith.subf %347, %298 : vector<8x128xf32>
    %391 = vector.broadcast %314 : vector<8x1xf32> to vector<8x128xf32>
    %392 = arith.mulf %391, %390 : vector<8x128xf32>
    %393 = arith.addf %298, %392 : vector<8x128xf32>
    %394 = arith.subf %377, %302 : vector<8x128xf32>
    %395 = vector.broadcast %317 : vector<8x1xf32> to vector<8x128xf32>
    %396 = arith.mulf %395, %394 : vector<8x128xf32>
    %397 = arith.addf %302, %396 : vector<8x128xf32>
    %c4_i32 = arith.constant 4 : i32
    %c7_i32_100 = arith.constant 7 : i32
    %398 = arith.subi %c7_i32_100, %c4_i32 : i32
    %c8_i32_101 = arith.constant 8 : i32
    %399 = arith.muli %c4_i32, %c8_i32_101 : i32
    %400 = tpu.assume_multiple %399, 8 : i32
    %c8_i32_102 = arith.constant 8 : i32
    %401 = arith.muli %398, %c8_i32_102 : i32
    %402 = tpu.assume_multiple %401, 8 : i32
    %403 = arith.index_cast %400 : i32 to index
    %c0_103 = arith.constant 0 : index
    %404 = vector.load %arg8[%403, %c0_103] : memref<64x768xf32, #tpu.memory_space<vmem>>, vector<8x384xf32>
    %405 = arith.index_cast %402 : i32 to index
    %c384_104 = arith.constant 384 : index
    %406 = vector.load %arg8[%405, %c384_104] : memref<64x768xf32, #tpu.memory_space<vmem>>, vector<8x384xf32>
    %407 = arith.index_cast %c4_i32 : i32 to index
    %c0_105 = arith.constant 0 : index
    %c0_106 = arith.constant 0 : index
    %408 = vector.load %arg1[%407, %c0_105, %c0_106] : memref<8x8x1xf32, #tpu.memory_space<vmem>>, vector<1x8x1xf32>
    %409 = vector.shape_cast %408 : vector<1x8x1xf32> to vector<8x1xf32>
    %410 = arith.index_cast %398 : i32 to index
    %c0_107 = arith.constant 0 : index
    %c0_108 = arith.constant 0 : index
    %411 = vector.load %arg1[%410, %c0_107, %c0_108] : memref<8x8x1xf32, #tpu.memory_space<vmem>>, vector<1x8x1xf32>
    %412 = vector.shape_cast %411 : vector<1x8x1xf32> to vector<8x1xf32>
    %413 = arith.truncf %393 : vector<8x128xf32> to vector<8x128xbf16>
    %cst_109 = arith.constant dense<0.000000e+00> : vector<8x384xf32>
    %414 = tpu.matmul %413, %10, %cst_109 {dimension_numbers = #tpu.dot_dimension_numbers<[1], [0], [0], [1], [0, 0, 1, 1], [], []>} : vector<8x128xbf16>, vector<128x384xbf16>, vector<8x384xf32> -> vector<8x384xf32>
    %415 = vector.broadcast %14 : vector<1x384xf32> to vector<8x384xf32>
    %416 = arith.addf %414, %415 : vector<8x384xf32>
    %417 = vector.extract_strided_slice %404 {offsets = [0, 0], sizes = [8, 128], strides = [1, 1]} : vector<8x384xf32> to vector<8x128xf32>
    %418 = vector.extract_strided_slice %416 {offsets = [0, 0], sizes = [8, 128], strides = [1, 1]} : vector<8x384xf32> to vector<8x128xf32>
    %419 = arith.addf %417, %418 : vector<8x128xf32>
    %420 = arith.negf %419 : vector<8x128xf32>
    %421 = math.exp %420 : vector<8x128xf32>
    %cst_110 = arith.constant 1.000000e+00 : f32
    %422 = vector.broadcast %cst_110 : f32 to vector<8x128xf32>
    %423 = arith.addf %422, %421 : vector<8x128xf32>
    %424 = arith.divf %422, %423 : vector<8x128xf32>
    %425 = vector.extract_strided_slice %404 {offsets = [0, 128], sizes = [8, 128], strides = [1, 1]} : vector<8x384xf32> to vector<8x128xf32>
    %426 = vector.extract_strided_slice %416 {offsets = [0, 128], sizes = [8, 128], strides = [1, 1]} : vector<8x384xf32> to vector<8x128xf32>
    %427 = arith.addf %425, %426 : vector<8x128xf32>
    %428 = arith.negf %427 : vector<8x128xf32>
    %429 = math.exp %428 : vector<8x128xf32>
    %cst_111 = arith.constant 1.000000e+00 : f32
    %430 = vector.broadcast %cst_111 : f32 to vector<8x128xf32>
    %431 = arith.addf %430, %429 : vector<8x128xf32>
    %432 = arith.divf %430, %431 : vector<8x128xf32>
    %433 = vector.extract_strided_slice %404 {offsets = [0, 256], sizes = [8, 128], strides = [1, 1]} : vector<8x384xf32> to vector<8x128xf32>
    %434 = vector.extract_strided_slice %416 {offsets = [0, 256], sizes = [8, 128], strides = [1, 1]} : vector<8x384xf32> to vector<8x128xf32>
    %435 = arith.mulf %424, %434 : vector<8x128xf32>
    %436 = arith.addf %433, %435 : vector<8x128xf32>
    %437 = math.tanh %436 : vector<8x128xf32>
    %cst_112 = arith.constant 1.000000e+00 : f32
    %438 = vector.broadcast %cst_112 : f32 to vector<8x128xf32>
    %439 = arith.subf %438, %432 : vector<8x128xf32>
    %440 = arith.mulf %439, %437 : vector<8x128xf32>
    %441 = arith.mulf %432, %393 : vector<8x128xf32>
    %442 = arith.addf %440, %441 : vector<8x128xf32>
    %443 = arith.truncf %397 : vector<8x128xf32> to vector<8x128xbf16>
    %cst_113 = arith.constant dense<0.000000e+00> : vector<8x384xf32>
    %444 = tpu.matmul %443, %12, %cst_113 {dimension_numbers = #tpu.dot_dimension_numbers<[1], [0], [0], [1], [0, 0, 1, 1], [], []>} : vector<8x128xbf16>, vector<128x384xbf16>, vector<8x384xf32> -> vector<8x384xf32>
    %445 = vector.broadcast %16 : vector<1x384xf32> to vector<8x384xf32>
    %446 = arith.addf %444, %445 : vector<8x384xf32>
    %447 = vector.extract_strided_slice %406 {offsets = [0, 0], sizes = [8, 128], strides = [1, 1]} : vector<8x384xf32> to vector<8x128xf32>
    %448 = vector.extract_strided_slice %446 {offsets = [0, 0], sizes = [8, 128], strides = [1, 1]} : vector<8x384xf32> to vector<8x128xf32>
    %449 = arith.addf %447, %448 : vector<8x128xf32>
    %450 = arith.negf %449 : vector<8x128xf32>
    %451 = math.exp %450 : vector<8x128xf32>
    %cst_114 = arith.constant 1.000000e+00 : f32
    %452 = vector.broadcast %cst_114 : f32 to vector<8x128xf32>
    %453 = arith.addf %452, %451 : vector<8x128xf32>
    %454 = arith.divf %452, %453 : vector<8x128xf32>
    %455 = vector.extract_strided_slice %406 {offsets = [0, 128], sizes = [8, 128], strides = [1, 1]} : vector<8x384xf32> to vector<8x128xf32>
    %456 = vector.extract_strided_slice %446 {offsets = [0, 128], sizes = [8, 128], strides = [1, 1]} : vector<8x384xf32> to vector<8x128xf32>
    %457 = arith.addf %455, %456 : vector<8x128xf32>
    %458 = arith.negf %457 : vector<8x128xf32>
    %459 = math.exp %458 : vector<8x128xf32>
    %cst_115 = arith.constant 1.000000e+00 : f32
    %460 = vector.broadcast %cst_115 : f32 to vector<8x128xf32>
    %461 = arith.addf %460, %459 : vector<8x128xf32>
    %462 = arith.divf %460, %461 : vector<8x128xf32>
    %463 = vector.extract_strided_slice %406 {offsets = [0, 256], sizes = [8, 128], strides = [1, 1]} : vector<8x384xf32> to vector<8x128xf32>
    %464 = vector.extract_strided_slice %446 {offsets = [0, 256], sizes = [8, 128], strides = [1, 1]} : vector<8x384xf32> to vector<8x128xf32>
    %465 = arith.mulf %454, %464 : vector<8x128xf32>
    %466 = arith.addf %463, %465 : vector<8x128xf32>
    %467 = math.tanh %466 : vector<8x128xf32>
    %cst_116 = arith.constant 1.000000e+00 : f32
    %468 = vector.broadcast %cst_116 : f32 to vector<8x128xf32>
    %469 = arith.subf %468, %462 : vector<8x128xf32>
    %470 = arith.mulf %469, %467 : vector<8x128xf32>
    %471 = arith.mulf %462, %397 : vector<8x128xf32>
    %472 = arith.addf %470, %471 : vector<8x128xf32>
    %473 = vector.broadcast %409 : vector<8x1xf32> to vector<8x128xf32>
    %474 = arith.mulf %473, %442 : vector<8x128xf32>
    %475 = arith.index_cast %c4_i32 : i32 to index
    %c0_117 = arith.constant 0 : index
    %c0_118 = arith.constant 0 : index
    %476 = vector.load %arg6[%475, %c0_117, %c0_118] : memref<8x8x256xf32, #tpu.memory_space<vmem>>, vector<1x8x128xf32>
    %477 = vector.shape_cast %476 : vector<1x8x128xf32> to vector<8x128xf32>
    %478 = vector.shape_cast %474 : vector<8x128xf32> to vector<1x8x128xf32>
    tpu.vector_store %arg6[%475, %c0_117, %c0_118], %478 {strides = array<i32>} : memref<8x8x256xf32, #tpu.memory_space<vmem>>, vector<1x8x128xf32>,
    %479 = vector.broadcast %412 : vector<8x1xf32> to vector<8x128xf32>
    %480 = arith.mulf %479, %472 : vector<8x128xf32>
    %481 = arith.index_cast %398 : i32 to index
    %c0_119 = arith.constant 0 : index
    %c128_120 = arith.constant 128 : index
    %482 = vector.load %arg6[%481, %c0_119, %c128_120] : memref<8x8x256xf32, #tpu.memory_space<vmem>>, vector<1x8x128xf32>
    %483 = vector.shape_cast %482 : vector<1x8x128xf32> to vector<8x128xf32>
    %484 = vector.shape_cast %480 : vector<8x128xf32> to vector<1x8x128xf32>
    tpu.vector_store %arg6[%481, %c0_119, %c128_120], %484 {strides = array<i32>} : memref<8x8x256xf32, #tpu.memory_space<vmem>>, vector<1x8x128xf32>,
    %485 = arith.subf %442, %393 : vector<8x128xf32>
    %486 = vector.broadcast %409 : vector<8x1xf32> to vector<8x128xf32>
    %487 = arith.mulf %486, %485 : vector<8x128xf32>
    %488 = arith.addf %393, %487 : vector<8x128xf32>
    %489 = arith.subf %472, %397 : vector<8x128xf32>
    %490 = vector.broadcast %412 : vector<8x1xf32> to vector<8x128xf32>
    %491 = arith.mulf %490, %489 : vector<8x128xf32>
    %492 = arith.addf %397, %491 : vector<8x128xf32>
    %c5_i32 = arith.constant 5 : i32
    %c7_i32_121 = arith.constant 7 : i32
    %493 = arith.subi %c7_i32_121, %c5_i32 : i32
    %c8_i32_122 = arith.constant 8 : i32
    %494 = arith.muli %c5_i32, %c8_i32_122 : i32
    %495 = tpu.assume_multiple %494, 8 : i32
    %c8_i32_123 = arith.constant 8 : i32
    %496 = arith.muli %493, %c8_i32_123 : i32
    %497 = tpu.assume_multiple %496, 8 : i32
    %498 = arith.index_cast %495 : i32 to index
    %c0_124 = arith.constant 0 : index
    %499 = vector.load %arg8[%498, %c0_124] : memref<64x768xf32, #tpu.memory_space<vmem>>, vector<8x384xf32>
    %500 = arith.index_cast %497 : i32 to index
    %c384_125 = arith.constant 384 : index
    %501 = vector.load %arg8[%500, %c384_125] : memref<64x768xf32, #tpu.memory_space<vmem>>, vector<8x384xf32>
    %502 = arith.index_cast %c5_i32 : i32 to index
    %c0_126 = arith.constant 0 : index
    %c0_127 = arith.constant 0 : index
    %503 = vector.load %arg1[%502, %c0_126, %c0_127] : memref<8x8x1xf32, #tpu.memory_space<vmem>>, vector<1x8x1xf32>
    %504 = vector.shape_cast %503 : vector<1x8x1xf32> to vector<8x1xf32>
    %505 = arith.index_cast %493 : i32 to index
    %c0_128 = arith.constant 0 : index
    %c0_129 = arith.constant 0 : index
    %506 = vector.load %arg1[%505, %c0_128, %c0_129] : memref<8x8x1xf32, #tpu.memory_space<vmem>>, vector<1x8x1xf32>
    %507 = vector.shape_cast %506 : vector<1x8x1xf32> to vector<8x1xf32>
    %508 = arith.truncf %488 : vector<8x128xf32> to vector<8x128xbf16>
    %cst_130 = arith.constant dense<0.000000e+00> : vector<8x384xf32>
    %509 = tpu.matmul %508, %10, %cst_130 {dimension_numbers = #tpu.dot_dimension_numbers<[1], [0], [0], [1], [0, 0, 1, 1], [], []>} : vector<8x128xbf16>, vector<128x384xbf16>, vector<8x384xf32> -> vector<8x384xf32>
    %510 = vector.broadcast %14 : vector<1x384xf32> to vector<8x384xf32>
    %511 = arith.addf %509, %510 : vector<8x384xf32>
    %512 = vector.extract_strided_slice %499 {offsets = [0, 0], sizes = [8, 128], strides = [1, 1]} : vector<8x384xf32> to vector<8x128xf32>
    %513 = vector.extract_strided_slice %511 {offsets = [0, 0], sizes = [8, 128], strides = [1, 1]} : vector<8x384xf32> to vector<8x128xf32>
    %514 = arith.addf %512, %513 : vector<8x128xf32>
    %515 = arith.negf %514 : vector<8x128xf32>
    %516 = math.exp %515 : vector<8x128xf32>
    %cst_131 = arith.constant 1.000000e+00 : f32
    %517 = vector.broadcast %cst_131 : f32 to vector<8x128xf32>
    %518 = arith.addf %517, %516 : vector<8x128xf32>
    %519 = arith.divf %517, %518 : vector<8x128xf32>
    %520 = vector.extract_strided_slice %499 {offsets = [0, 128], sizes = [8, 128], strides = [1, 1]} : vector<8x384xf32> to vector<8x128xf32>
    %521 = vector.extract_strided_slice %511 {offsets = [0, 128], sizes = [8, 128], strides = [1, 1]} : vector<8x384xf32> to vector<8x128xf32>
    %522 = arith.addf %520, %521 : vector<8x128xf32>
    %523 = arith.negf %522 : vector<8x128xf32>
    %524 = math.exp %523 : vector<8x128xf32>
    %cst_132 = arith.constant 1.000000e+00 : f32
    %525 = vector.broadcast %cst_132 : f32 to vector<8x128xf32>
    %526 = arith.addf %525, %524 : vector<8x128xf32>
    %527 = arith.divf %525, %526 : vector<8x128xf32>
    %528 = vector.extract_strided_slice %499 {offsets = [0, 256], sizes = [8, 128], strides = [1, 1]} : vector<8x384xf32> to vector<8x128xf32>
    %529 = vector.extract_strided_slice %511 {offsets = [0, 256], sizes = [8, 128], strides = [1, 1]} : vector<8x384xf32> to vector<8x128xf32>
    %530 = arith.mulf %519, %529 : vector<8x128xf32>
    %531 = arith.addf %528, %530 : vector<8x128xf32>
    %532 = math.tanh %531 : vector<8x128xf32>
    %cst_133 = arith.constant 1.000000e+00 : f32
    %533 = vector.broadcast %cst_133 : f32 to vector<8x128xf32>
    %534 = arith.subf %533, %527 : vector<8x128xf32>
    %535 = arith.mulf %534, %532 : vector<8x128xf32>
    %536 = arith.mulf %527, %488 : vector<8x128xf32>
    %537 = arith.addf %535, %536 : vector<8x128xf32>
    %538 = arith.truncf %492 : vector<8x128xf32> to vector<8x128xbf16>
    %cst_134 = arith.constant dense<0.000000e+00> : vector<8x384xf32>
    %539 = tpu.matmul %538, %12, %cst_134 {dimension_numbers = #tpu.dot_dimension_numbers<[1], [0], [0], [1], [0, 0, 1, 1], [], []>} : vector<8x128xbf16>, vector<128x384xbf16>, vector<8x384xf32> -> vector<8x384xf32>
    %540 = vector.broadcast %16 : vector<1x384xf32> to vector<8x384xf32>
    %541 = arith.addf %539, %540 : vector<8x384xf32>
    %542 = vector.extract_strided_slice %501 {offsets = [0, 0], sizes = [8, 128], strides = [1, 1]} : vector<8x384xf32> to vector<8x128xf32>
    %543 = vector.extract_strided_slice %541 {offsets = [0, 0], sizes = [8, 128], strides = [1, 1]} : vector<8x384xf32> to vector<8x128xf32>
    %544 = arith.addf %542, %543 : vector<8x128xf32>
    %545 = arith.negf %544 : vector<8x128xf32>
    %546 = math.exp %545 : vector<8x128xf32>
    %cst_135 = arith.constant 1.000000e+00 : f32
    %547 = vector.broadcast %cst_135 : f32 to vector<8x128xf32>
    %548 = arith.addf %547, %546 : vector<8x128xf32>
    %549 = arith.divf %547, %548 : vector<8x128xf32>
    %550 = vector.extract_strided_slice %501 {offsets = [0, 128], sizes = [8, 128], strides = [1, 1]} : vector<8x384xf32> to vector<8x128xf32>
    %551 = vector.extract_strided_slice %541 {offsets = [0, 128], sizes = [8, 128], strides = [1, 1]} : vector<8x384xf32> to vector<8x128xf32>
    %552 = arith.addf %550, %551 : vector<8x128xf32>
    %553 = arith.negf %552 : vector<8x128xf32>
    %554 = math.exp %553 : vector<8x128xf32>
    %cst_136 = arith.constant 1.000000e+00 : f32
    %555 = vector.broadcast %cst_136 : f32 to vector<8x128xf32>
    %556 = arith.addf %555, %554 : vector<8x128xf32>
    %557 = arith.divf %555, %556 : vector<8x128xf32>
    %558 = vector.extract_strided_slice %501 {offsets = [0, 256], sizes = [8, 128], strides = [1, 1]} : vector<8x384xf32> to vector<8x128xf32>
    %559 = vector.extract_strided_slice %541 {offsets = [0, 256], sizes = [8, 128], strides = [1, 1]} : vector<8x384xf32> to vector<8x128xf32>
    %560 = arith.mulf %549, %559 : vector<8x128xf32>
    %561 = arith.addf %558, %560 : vector<8x128xf32>
    %562 = math.tanh %561 : vector<8x128xf32>
    %cst_137 = arith.constant 1.000000e+00 : f32
    %563 = vector.broadcast %cst_137 : f32 to vector<8x128xf32>
    %564 = arith.subf %563, %557 : vector<8x128xf32>
    %565 = arith.mulf %564, %562 : vector<8x128xf32>
    %566 = arith.mulf %557, %492 : vector<8x128xf32>
    %567 = arith.addf %565, %566 : vector<8x128xf32>
    %568 = vector.broadcast %504 : vector<8x1xf32> to vector<8x128xf32>
    %569 = arith.mulf %568, %537 : vector<8x128xf32>
    %570 = arith.index_cast %c5_i32 : i32 to index
    %c0_138 = arith.constant 0 : index
    %c0_139 = arith.constant 0 : index
    %571 = vector.load %arg6[%570, %c0_138, %c0_139] : memref<8x8x256xf32, #tpu.memory_space<vmem>>, vector<1x8x128xf32>
    %572 = vector.shape_cast %571 : vector<1x8x128xf32> to vector<8x128xf32>
    %573 = vector.shape_cast %569 : vector<8x128xf32> to vector<1x8x128xf32>
    tpu.vector_store %arg6[%570, %c0_138, %c0_139], %573 {strides = array<i32>} : memref<8x8x256xf32, #tpu.memory_space<vmem>>, vector<1x8x128xf32>,
    %574 = vector.broadcast %507 : vector<8x1xf32> to vector<8x128xf32>
    %575 = arith.mulf %574, %567 : vector<8x128xf32>
    %576 = arith.index_cast %493 : i32 to index
    %c0_140 = arith.constant 0 : index
    %c128_141 = arith.constant 128 : index
    %577 = vector.load %arg6[%576, %c0_140, %c128_141] : memref<8x8x256xf32, #tpu.memory_space<vmem>>, vector<1x8x128xf32>
    %578 = vector.shape_cast %577 : vector<1x8x128xf32> to vector<8x128xf32>
    %579 = vector.shape_cast %575 : vector<8x128xf32> to vector<1x8x128xf32>
    tpu.vector_store %arg6[%576, %c0_140, %c128_141], %579 {strides = array<i32>} : memref<8x8x256xf32, #tpu.memory_space<vmem>>, vector<1x8x128xf32>,
    %580 = arith.subf %537, %488 : vector<8x128xf32>
    %581 = vector.broadcast %504 : vector<8x1xf32> to vector<8x128xf32>
    %582 = arith.mulf %581, %580 : vector<8x128xf32>
    %583 = arith.addf %488, %582 : vector<8x128xf32>
    %584 = arith.subf %567, %492 : vector<8x128xf32>
    %585 = vector.broadcast %507 : vector<8x1xf32> to vector<8x128xf32>
    %586 = arith.mulf %585, %584 : vector<8x128xf32>
    %587 = arith.addf %492, %586 : vector<8x128xf32>
    %c6_i32 = arith.constant 6 : i32
    %c7_i32_142 = arith.constant 7 : i32
    %588 = arith.subi %c7_i32_142, %c6_i32 : i32
    %c8_i32_143 = arith.constant 8 : i32
    %589 = arith.muli %c6_i32, %c8_i32_143 : i32
    %590 = tpu.assume_multiple %589, 8 : i32
    %c8_i32_144 = arith.constant 8 : i32
    %591 = arith.muli %588, %c8_i32_144 : i32
    %592 = tpu.assume_multiple %591, 8 : i32
    %593 = arith.index_cast %590 : i32 to index
    %c0_145 = arith.constant 0 : index
    %594 = vector.load %arg8[%593, %c0_145] : memref<64x768xf32, #tpu.memory_space<vmem>>, vector<8x384xf32>
    %595 = arith.index_cast %592 : i32 to index
    %c384_146 = arith.constant 384 : index
    %596 = vector.load %arg8[%595, %c384_146] : memref<64x768xf32, #tpu.memory_space<vmem>>, vector<8x384xf32>
    %597 = arith.index_cast %c6_i32 : i32 to index
    %c0_147 = arith.constant 0 : index
    %c0_148 = arith.constant 0 : index
    %598 = vector.load %arg1[%597, %c0_147, %c0_148] : memref<8x8x1xf32, #tpu.memory_space<vmem>>, vector<1x8x1xf32>
    %599 = vector.shape_cast %598 : vector<1x8x1xf32> to vector<8x1xf32>
    %600 = arith.index_cast %588 : i32 to index
    %c0_149 = arith.constant 0 : index
    %c0_150 = arith.constant 0 : index
    %601 = vector.load %arg1[%600, %c0_149, %c0_150] : memref<8x8x1xf32, #tpu.memory_space<vmem>>, vector<1x8x1xf32>
    %602 = vector.shape_cast %601 : vector<1x8x1xf32> to vector<8x1xf32>
    %603 = arith.truncf %583 : vector<8x128xf32> to vector<8x128xbf16>
    %cst_151 = arith.constant dense<0.000000e+00> : vector<8x384xf32>
    %604 = tpu.matmul %603, %10, %cst_151 {dimension_numbers = #tpu.dot_dimension_numbers<[1], [0], [0], [1], [0, 0, 1, 1], [], []>} : vector<8x128xbf16>, vector<128x384xbf16>, vector<8x384xf32> -> vector<8x384xf32>
    %605 = vector.broadcast %14 : vector<1x384xf32> to vector<8x384xf32>
    %606 = arith.addf %604, %605 : vector<8x384xf32>
    %607 = vector.extract_strided_slice %594 {offsets = [0, 0], sizes = [8, 128], strides = [1, 1]} : vector<8x384xf32> to vector<8x128xf32>
    %608 = vector.extract_strided_slice %606 {offsets = [0, 0], sizes = [8, 128], strides = [1, 1]} : vector<8x384xf32> to vector<8x128xf32>
    %609 = arith.addf %607, %608 : vector<8x128xf32>
    %610 = arith.negf %609 : vector<8x128xf32>
    %611 = math.exp %610 : vector<8x128xf32>
    %cst_152 = arith.constant 1.000000e+00 : f32
    %612 = vector.broadcast %cst_152 : f32 to vector<8x128xf32>
    %613 = arith.addf %612, %611 : vector<8x128xf32>
    %614 = arith.divf %612, %613 : vector<8x128xf32>
    %615 = vector.extract_strided_slice %594 {offsets = [0, 128], sizes = [8, 128], strides = [1, 1]} : vector<8x384xf32> to vector<8x128xf32>
    %616 = vector.extract_strided_slice %606 {offsets = [0, 128], sizes = [8, 128], strides = [1, 1]} : vector<8x384xf32> to vector<8x128xf32>
    %617 = arith.addf %615, %616 : vector<8x128xf32>
    %618 = arith.negf %617 : vector<8x128xf32>
    %619 = math.exp %618 : vector<8x128xf32>
    %cst_153 = arith.constant 1.000000e+00 : f32
    %620 = vector.broadcast %cst_153 : f32 to vector<8x128xf32>
    %621 = arith.addf %620, %619 : vector<8x128xf32>
    %622 = arith.divf %620, %621 : vector<8x128xf32>
    %623 = vector.extract_strided_slice %594 {offsets = [0, 256], sizes = [8, 128], strides = [1, 1]} : vector<8x384xf32> to vector<8x128xf32>
    %624 = vector.extract_strided_slice %606 {offsets = [0, 256], sizes = [8, 128], strides = [1, 1]} : vector<8x384xf32> to vector<8x128xf32>
    %625 = arith.mulf %614, %624 : vector<8x128xf32>
    %626 = arith.addf %623, %625 : vector<8x128xf32>
    %627 = math.tanh %626 : vector<8x128xf32>
    %cst_154 = arith.constant 1.000000e+00 : f32
    %628 = vector.broadcast %cst_154 : f32 to vector<8x128xf32>
    %629 = arith.subf %628, %622 : vector<8x128xf32>
    %630 = arith.mulf %629, %627 : vector<8x128xf32>
    %631 = arith.mulf %622, %583 : vector<8x128xf32>
    %632 = arith.addf %630, %631 : vector<8x128xf32>
    %633 = arith.truncf %587 : vector<8x128xf32> to vector<8x128xbf16>
    %cst_155 = arith.constant dense<0.000000e+00> : vector<8x384xf32>
    %634 = tpu.matmul %633, %12, %cst_155 {dimension_numbers = #tpu.dot_dimension_numbers<[1], [0], [0], [1], [0, 0, 1, 1], [], []>} : vector<8x128xbf16>, vector<128x384xbf16>, vector<8x384xf32> -> vector<8x384xf32>
    %635 = vector.broadcast %16 : vector<1x384xf32> to vector<8x384xf32>
    %636 = arith.addf %634, %635 : vector<8x384xf32>
    %637 = vector.extract_strided_slice %596 {offsets = [0, 0], sizes = [8, 128], strides = [1, 1]} : vector<8x384xf32> to vector<8x128xf32>
    %638 = vector.extract_strided_slice %636 {offsets = [0, 0], sizes = [8, 128], strides = [1, 1]} : vector<8x384xf32> to vector<8x128xf32>
    %639 = arith.addf %637, %638 : vector<8x128xf32>
    %640 = arith.negf %639 : vector<8x128xf32>
    %641 = math.exp %640 : vector<8x128xf32>
    %cst_156 = arith.constant 1.000000e+00 : f32
    %642 = vector.broadcast %cst_156 : f32 to vector<8x128xf32>
    %643 = arith.addf %642, %641 : vector<8x128xf32>
    %644 = arith.divf %642, %643 : vector<8x128xf32>
    %645 = vector.extract_strided_slice %596 {offsets = [0, 128], sizes = [8, 128], strides = [1, 1]} : vector<8x384xf32> to vector<8x128xf32>
    %646 = vector.extract_strided_slice %636 {offsets = [0, 128], sizes = [8, 128], strides = [1, 1]} : vector<8x384xf32> to vector<8x128xf32>
    %647 = arith.addf %645, %646 : vector<8x128xf32>
    %648 = arith.negf %647 : vector<8x128xf32>
    %649 = math.exp %648 : vector<8x128xf32>
    %cst_157 = arith.constant 1.000000e+00 : f32
    %650 = vector.broadcast %cst_157 : f32 to vector<8x128xf32>
    %651 = arith.addf %650, %649 : vector<8x128xf32>
    %652 = arith.divf %650, %651 : vector<8x128xf32>
    %653 = vector.extract_strided_slice %596 {offsets = [0, 256], sizes = [8, 128], strides = [1, 1]} : vector<8x384xf32> to vector<8x128xf32>
    %654 = vector.extract_strided_slice %636 {offsets = [0, 256], sizes = [8, 128], strides = [1, 1]} : vector<8x384xf32> to vector<8x128xf32>
    %655 = arith.mulf %644, %654 : vector<8x128xf32>
    %656 = arith.addf %653, %655 : vector<8x128xf32>
    %657 = math.tanh %656 : vector<8x128xf32>
    %cst_158 = arith.constant 1.000000e+00 : f32
    %658 = vector.broadcast %cst_158 : f32 to vector<8x128xf32>
    %659 = arith.subf %658, %652 : vector<8x128xf32>
    %660 = arith.mulf %659, %657 : vector<8x128xf32>
    %661 = arith.mulf %652, %587 : vector<8x128xf32>
    %662 = arith.addf %660, %661 : vector<8x128xf32>
    %663 = vector.broadcast %599 : vector<8x1xf32> to vector<8x128xf32>
    %664 = arith.mulf %663, %632 : vector<8x128xf32>
    %665 = arith.index_cast %c6_i32 : i32 to index
    %c0_159 = arith.constant 0 : index
    %c0_160 = arith.constant 0 : index
    %666 = vector.load %arg6[%665, %c0_159, %c0_160] : memref<8x8x256xf32, #tpu.memory_space<vmem>>, vector<1x8x128xf32>
    %667 = vector.shape_cast %666 : vector<1x8x128xf32> to vector<8x128xf32>
    %668 = vector.shape_cast %664 : vector<8x128xf32> to vector<1x8x128xf32>
    tpu.vector_store %arg6[%665, %c0_159, %c0_160], %668 {strides = array<i32>} : memref<8x8x256xf32, #tpu.memory_space<vmem>>, vector<1x8x128xf32>,
    %669 = vector.broadcast %602 : vector<8x1xf32> to vector<8x128xf32>
    %670 = arith.mulf %669, %662 : vector<8x128xf32>
    %671 = arith.index_cast %588 : i32 to index
    %c0_161 = arith.constant 0 : index
    %c128_162 = arith.constant 128 : index
    %672 = vector.load %arg6[%671, %c0_161, %c128_162] : memref<8x8x256xf32, #tpu.memory_space<vmem>>, vector<1x8x128xf32>
    %673 = vector.shape_cast %672 : vector<1x8x128xf32> to vector<8x128xf32>
    %674 = vector.shape_cast %670 : vector<8x128xf32> to vector<1x8x128xf32>
    tpu.vector_store %arg6[%671, %c0_161, %c128_162], %674 {strides = array<i32>} : memref<8x8x256xf32, #tpu.memory_space<vmem>>, vector<1x8x128xf32>,
    %675 = arith.subf %632, %583 : vector<8x128xf32>
    %676 = vector.broadcast %599 : vector<8x1xf32> to vector<8x128xf32>
    %677 = arith.mulf %676, %675 : vector<8x128xf32>
    %678 = arith.addf %583, %677 : vector<8x128xf32>
    %679 = arith.subf %662, %587 : vector<8x128xf32>
    %680 = vector.broadcast %602 : vector<8x1xf32> to vector<8x128xf32>
    %681 = arith.mulf %680, %679 : vector<8x128xf32>
    %682 = arith.addf %587, %681 : vector<8x128xf32>
    %c7_i32_163 = arith.constant 7 : i32
    %c7_i32_164 = arith.constant 7 : i32
    %683 = arith.subi %c7_i32_164, %c7_i32_163 : i32
    %c8_i32_165 = arith.constant 8 : i32
    %684 = arith.muli %c7_i32_163, %c8_i32_165 : i32
    %685 = tpu.assume_multiple %684, 8 : i32
    %c8_i32_166 = arith.constant 8 : i32
    %686 = arith.muli %683, %c8_i32_166 : i32
    %687 = tpu.assume_multiple %686, 8 : i32
    %688 = arith.index_cast %685 : i32 to index
    %c0_167 = arith.constant 0 : index
    %689 = vector.load %arg8[%688, %c0_167] : memref<64x768xf32, #tpu.memory_space<vmem>>, vector<8x384xf32>
    %690 = arith.index_cast %687 : i32 to index
    %c384_168 = arith.constant 384 : index
    %691 = vector.load %arg8[%690, %c384_168] : memref<64x768xf32, #tpu.memory_space<vmem>>, vector<8x384xf32>
    %692 = arith.index_cast %c7_i32_163 : i32 to index
    %c0_169 = arith.constant 0 : index
    %c0_170 = arith.constant 0 : index
    %693 = vector.load %arg1[%692, %c0_169, %c0_170] : memref<8x8x1xf32, #tpu.memory_space<vmem>>, vector<1x8x1xf32>
    %694 = vector.shape_cast %693 : vector<1x8x1xf32> to vector<8x1xf32>
    %695 = arith.index_cast %683 : i32 to index
    %c0_171 = arith.constant 0 : index
    %c0_172 = arith.constant 0 : index
    %696 = vector.load %arg1[%695, %c0_171, %c0_172] : memref<8x8x1xf32, #tpu.memory_space<vmem>>, vector<1x8x1xf32>
    %697 = vector.shape_cast %696 : vector<1x8x1xf32> to vector<8x1xf32>
    %698 = arith.truncf %678 : vector<8x128xf32> to vector<8x128xbf16>
    %cst_173 = arith.constant dense<0.000000e+00> : vector<8x384xf32>
    %699 = tpu.matmul %698, %10, %cst_173 {dimension_numbers = #tpu.dot_dimension_numbers<[1], [0], [0], [1], [0, 0, 1, 1], [], []>} : vector<8x128xbf16>, vector<128x384xbf16>, vector<8x384xf32> -> vector<8x384xf32>
    %700 = vector.broadcast %14 : vector<1x384xf32> to vector<8x384xf32>
    %701 = arith.addf %699, %700 : vector<8x384xf32>
    %702 = vector.extract_strided_slice %689 {offsets = [0, 0], sizes = [8, 128], strides = [1, 1]} : vector<8x384xf32> to vector<8x128xf32>
    %703 = vector.extract_strided_slice %701 {offsets = [0, 0], sizes = [8, 128], strides = [1, 1]} : vector<8x384xf32> to vector<8x128xf32>
    %704 = arith.addf %702, %703 : vector<8x128xf32>
    %705 = arith.negf %704 : vector<8x128xf32>
    %706 = math.exp %705 : vector<8x128xf32>
    %cst_174 = arith.constant 1.000000e+00 : f32
    %707 = vector.broadcast %cst_174 : f32 to vector<8x128xf32>
    %708 = arith.addf %707, %706 : vector<8x128xf32>
    %709 = arith.divf %707, %708 : vector<8x128xf32>
    %710 = vector.extract_strided_slice %689 {offsets = [0, 128], sizes = [8, 128], strides = [1, 1]} : vector<8x384xf32> to vector<8x128xf32>
    %711 = vector.extract_strided_slice %701 {offsets = [0, 128], sizes = [8, 128], strides = [1, 1]} : vector<8x384xf32> to vector<8x128xf32>
    %712 = arith.addf %710, %711 : vector<8x128xf32>
    %713 = arith.negf %712 : vector<8x128xf32>
    %714 = math.exp %713 : vector<8x128xf32>
    %cst_175 = arith.constant 1.000000e+00 : f32
    %715 = vector.broadcast %cst_175 : f32 to vector<8x128xf32>
    %716 = arith.addf %715, %714 : vector<8x128xf32>
    %717 = arith.divf %715, %716 : vector<8x128xf32>
    %718 = vector.extract_strided_slice %689 {offsets = [0, 256], sizes = [8, 128], strides = [1, 1]} : vector<8x384xf32> to vector<8x128xf32>
    %719 = vector.extract_strided_slice %701 {offsets = [0, 256], sizes = [8, 128], strides = [1, 1]} : vector<8x384xf32> to vector<8x128xf32>
    %720 = arith.mulf %709, %719 : vector<8x128xf32>
    %721 = arith.addf %718, %720 : vector<8x128xf32>
    %722 = math.tanh %721 : vector<8x128xf32>
    %cst_176 = arith.constant 1.000000e+00 : f32
    %723 = vector.broadcast %cst_176 : f32 to vector<8x128xf32>
    %724 = arith.subf %723, %717 : vector<8x128xf32>
    %725 = arith.mulf %724, %722 : vector<8x128xf32>
    %726 = arith.mulf %717, %678 : vector<8x128xf32>
    %727 = arith.addf %725, %726 : vector<8x128xf32>
    %728 = arith.truncf %682 : vector<8x128xf32> to vector<8x128xbf16>
    %cst_177 = arith.constant dense<0.000000e+00> : vector<8x384xf32>
    %729 = tpu.matmul %728, %12, %cst_177 {dimension_numbers = #tpu.dot_dimension_numbers<[1], [0], [0], [1], [0, 0, 1, 1], [], []>} : vector<8x128xbf16>, vector<128x384xbf16>, vector<8x384xf32> -> vector<8x384xf32>
    %730 = vector.broadcast %16 : vector<1x384xf32> to vector<8x384xf32>
    %731 = arith.addf %729, %730 : vector<8x384xf32>
    %732 = vector.extract_strided_slice %691 {offsets = [0, 0], sizes = [8, 128], strides = [1, 1]} : vector<8x384xf32> to vector<8x128xf32>
    %733 = vector.extract_strided_slice %731 {offsets = [0, 0], sizes = [8, 128], strides = [1, 1]} : vector<8x384xf32> to vector<8x128xf32>
    %734 = arith.addf %732, %733 : vector<8x128xf32>
    %735 = arith.negf %734 : vector<8x128xf32>
    %736 = math.exp %735 : vector<8x128xf32>
    %cst_178 = arith.constant 1.000000e+00 : f32
    %737 = vector.broadcast %cst_178 : f32 to vector<8x128xf32>
    %738 = arith.addf %737, %736 : vector<8x128xf32>
    %739 = arith.divf %737, %738 : vector<8x128xf32>
    %740 = vector.extract_strided_slice %691 {offsets = [0, 128], sizes = [8, 128], strides = [1, 1]} : vector<8x384xf32> to vector<8x128xf32>
    %741 = vector.extract_strided_slice %731 {offsets = [0, 128], sizes = [8, 128], strides = [1, 1]} : vector<8x384xf32> to vector<8x128xf32>
    %742 = arith.addf %740, %741 : vector<8x128xf32>
    %743 = arith.negf %742 : vector<8x128xf32>
    %744 = math.exp %743 : vector<8x128xf32>
    %cst_179 = arith.constant 1.000000e+00 : f32
    %745 = vector.broadcast %cst_179 : f32 to vector<8x128xf32>
    %746 = arith.addf %745, %744 : vector<8x128xf32>
    %747 = arith.divf %745, %746 : vector<8x128xf32>
    %748 = vector.extract_strided_slice %691 {offsets = [0, 256], sizes = [8, 128], strides = [1, 1]} : vector<8x384xf32> to vector<8x128xf32>
    %749 = vector.extract_strided_slice %731 {offsets = [0, 256], sizes = [8, 128], strides = [1, 1]} : vector<8x384xf32> to vector<8x128xf32>
    %750 = arith.mulf %739, %749 : vector<8x128xf32>
    %751 = arith.addf %748, %750 : vector<8x128xf32>
    %752 = math.tanh %751 : vector<8x128xf32>
    %cst_180 = arith.constant 1.000000e+00 : f32
    %753 = vector.broadcast %cst_180 : f32 to vector<8x128xf32>
    %754 = arith.subf %753, %747 : vector<8x128xf32>
    %755 = arith.mulf %754, %752 : vector<8x128xf32>
    %756 = arith.mulf %747, %682 : vector<8x128xf32>
    %757 = arith.addf %755, %756 : vector<8x128xf32>
    %758 = vector.broadcast %694 : vector<8x1xf32> to vector<8x128xf32>
    %759 = arith.mulf %758, %727 : vector<8x128xf32>
    %760 = arith.index_cast %c7_i32_163 : i32 to index
    %c0_181 = arith.constant 0 : index
    %c0_182 = arith.constant 0 : index
    %761 = vector.load %arg6[%760, %c0_181, %c0_182] : memref<8x8x256xf32, #tpu.memory_space<vmem>>, vector<1x8x128xf32>
    %762 = vector.shape_cast %761 : vector<1x8x128xf32> to vector<8x128xf32>
    %763 = vector.shape_cast %759 : vector<8x128xf32> to vector<1x8x128xf32>
    tpu.vector_store %arg6[%760, %c0_181, %c0_182], %763 {strides = array<i32>} : memref<8x8x256xf32, #tpu.memory_space<vmem>>, vector<1x8x128xf32>,
    %764 = vector.broadcast %697 : vector<8x1xf32> to vector<8x128xf32>
    %765 = arith.mulf %764, %757 : vector<8x128xf32>
    %766 = arith.index_cast %683 : i32 to index
    %c0_183 = arith.constant 0 : index
    %c128_184 = arith.constant 128 : index
    %767 = vector.load %arg6[%766, %c0_183, %c128_184] : memref<8x8x256xf32, #tpu.memory_space<vmem>>, vector<1x8x128xf32>
    %768 = vector.shape_cast %767 : vector<1x8x128xf32> to vector<8x128xf32>
    %769 = vector.shape_cast %765 : vector<8x128xf32> to vector<1x8x128xf32>
    tpu.vector_store %arg6[%766, %c0_183, %c128_184], %769 {strides = array<i32>} : memref<8x8x256xf32, #tpu.memory_space<vmem>>, vector<1x8x128xf32>,
    %770 = arith.subf %727, %678 : vector<8x128xf32>
    %771 = vector.broadcast %694 : vector<8x1xf32> to vector<8x128xf32>
    %772 = arith.mulf %771, %770 : vector<8x128xf32>
    %773 = arith.addf %678, %772 : vector<8x128xf32>
    %774 = arith.subf %757, %682 : vector<8x128xf32>
    %775 = vector.broadcast %697 : vector<8x1xf32> to vector<8x128xf32>
    %776 = arith.mulf %775, %774 : vector<8x128xf32>
    %777 = arith.addf %682, %776 : vector<8x128xf32>
    %c8_i32_185 = arith.constant 8 : i32
    %c0_186 = arith.constant 0 : index
    %c0_187 = arith.constant 0 : index
    %c0_188 = arith.constant 0 : index
    %778 = vector.load %arg7[%c0_186, %c0_187, %c0_188] : memref<2x8x128xf32, #tpu.memory_space<vmem>>, vector<1x8x128xf32>
    %779 = vector.shape_cast %778 : vector<1x8x128xf32> to vector<8x128xf32>
    %780 = vector.shape_cast %773 : vector<8x128xf32> to vector<1x8x128xf32>
    tpu.vector_store %arg7[%c0_186, %c0_187, %c0_188], %780 {strides = array<i32>} : memref<2x8x128xf32, #tpu.memory_space<vmem>>, vector<1x8x128xf32>,
    %c1_189 = arith.constant 1 : index
    %c0_190 = arith.constant 0 : index
    %c0_191 = arith.constant 0 : index
    %781 = vector.load %arg7[%c1_189, %c0_190, %c0_191] : memref<2x8x128xf32, #tpu.memory_space<vmem>>, vector<1x8x128xf32>
    %782 = vector.shape_cast %781 : vector<1x8x128xf32> to vector<8x128xf32>
    %783 = vector.shape_cast %777 : vector<8x128xf32> to vector<1x8x128xf32>
    tpu.vector_store %arg7[%c1_189, %c0_190, %c0_191], %783 {strides = array<i32>} : memref<2x8x128xf32, #tpu.memory_space<vmem>>, vector<1x8x128xf32>,
    return
  }
}

</mosaic_0001>

<bundles_post_ra>
// kernel: tpu_custom_call.1
= control target key start
LH: loop header
LB: loop body
LE: loop exit
PB: predicated region body
PF: predicated region fallthrough
CT: control target
= control target key end

     0   :  { %13 = vsyncpa [#allocation4], 0  ;;  %s5411_s0 = inlined_call_operand.vmem [shape: f32[8,8,128], index: 0, kind: input, shape index: {}]   ;;  %s5412_s1 = inlined_call_operand.vmem [shape: f32[8,8,1], index: 1, kind: input, shape index: {}]   ;;  %s5413_s2 = inlined_call_operand.hbm [shape: bf16[128,768], index: 2, kind: input, shape index: {}]   ;;  %s5414_s3 = inlined_call_operand.hbm [shape: bf16[2,128,384], index: 3, kind: input, shape index: {}]   ;;  %s5415_s4 = inlined_call_operand.vmem [shape: f32[1,768], index: 4, kind: input, shape index: {}]   ;;  %s5416_s5 = inlined_call_operand.vmem [shape: f32[2,1,384], index: 5, kind: input, shape index: {}]   ;;  %s5417_s6 = inlined_call_operand.hbm [shape: f32[8,8,256], index: 6, kind: output, shape index: {0}]   ;;  %s5418_s7 = inlined_call_operand.hbm [shape: f32[2,8,128], index: 7, kind: output, shape index: {1}]  }
   0x1   :  { %14 = vsyncpa [#allocation7], 0 }
   0x2   :  { %15 = vsyncpa [#allocation5], 0 }
   0x3   :  { %16 = vsyncpa [#allocation10], 0  ;;  %s4068_s24 = smov [#allocation3]   ;;  %s3972_s28 = scalar_lea.hbm %s5413_s2, 6144 }
   0x4   :  { %s26_s25 = sshll.u32 %s4068_s24, 4  ;;  %p3973_p0 = scmp.ne.s32.totalorder %s5413_s2, %s3972_s28  ;;  %s27_s25 = int_to_ptr.vmem [resolvable:$true] %s26_s25 }
   0x5   :  { %p3976_p1 = scmp.lt.u32.totalorder %s3972_s28, %s5413_s2 }
   0x7   :  { %p3978_p2 = pnand %p3976_p1, %p3973_p0 }
   0x9   :  { %3981 = shalt.err (!%p3978_p2)
}
   0xa   :  { %s3982_s10 = scalar_lea.vmem %s27_s25, 6144  ;;  %p3987_p4 = scmp.lt.s32.totalorder %s27_s25, %s27_s25 }
   0xb   :  { %p3983_p3 = scmp.ne.s32.totalorder %s27_s25, %s3982_s10  ;;  %p3988_p5 = scmp.lt.s32.totalorder %s3982_s10, %s3982_s10 }
   0xd   :  { %p3989_p6 = por %p3988_p5, %p3987_p4 }
   0xf   :  { %p3990_p7 = pnand %p3989_p6, %p3983_p3 }
  0x11   :  { %3993 = shalt.err (!%p3990_p7)
}
  0x12   :  { %s4069_s11 = smov 384   ;;  %s4070_s12 = smov 24  }
  0x13   :  { %32 = dma.hbm_to_vmem [thread:$0]  %s5413_s2, 6144, %s27_s25, [#allocation4], %s4069_s11, %s4069_s11, %s4070_s12  }
  0x14   :  { %s4071_s15 = smov [#allocation6]   ;;  %s3994_s19 = scalar_lea.hbm %s5414_s3, 6144 }
  0x15   :  { %s38_s16 = sshll.u32 %s4071_s15, 4  ;;  %p3995_p8 = scmp.ne.s32.totalorder %s5414_s3, %s3994_s19  ;;  %s39_s16 = int_to_ptr.vmem [resolvable:$true] %s38_s16 }
  0x16   :  { %p3998_p9 = scmp.lt.u32.totalorder %s3994_s19, %s5414_s3 }
  0x18   :  { %p4000_p10 = pnand %p3998_p9, %p3995_p8 }
  0x1a   :  { %4003 = shalt.err (!%p4000_p10)
}
  0x1b   :  { %s4004_s24 = scalar_lea.vmem %s39_s16, 6144  ;;  %p4009_p12 = scmp.lt.s32.totalorder %s39_s16, %s39_s16 }
  0x1c   :  { %p4005_p11 = scmp.ne.s32.totalorder %s39_s16, %s4004_s24  ;;  %p4010_p13 = scmp.lt.s32.totalorder %s4004_s24, %s4004_s24 }
  0x1e   :  { %p4011_p0 = por %p4010_p13, %p4009_p12 }
  0x20   :  { %p4012_p1 = pnand %p4011_p0, %p4005_p11 }
  0x22   :  { %4015 = shalt.err (!%p4012_p1)
}
  0x23   :  { %s4072_s2 = smov 192   ;;  %s4073_s25 = smov 12  }
  0x24   :  { %44 = dma.hbm_to_vmem [thread:$0]  %s5414_s3, 6144, %s39_s16, [#allocation7], %s4072_s2, %s4072_s2, %s4073_s25  }
  0x25   :  { %4060 = dma.done.wait [#allocation4], 6144  }
  0x26   :  { %4061 = vsyncadd [#allocation4], 4294961152 }
  0x27   :  { %4062 = dma.done.wait [#allocation7], 6144  }
  0x28   :  { %4063 = vsyncadd [#allocation7], 4294961152  ;;  %v5419_v0 = vmov 0   ;;  %v3583_v1 = vld [vmem:[#allocation3 + $0x4] ss:$24 sps:$4 sm:$0xff]   ;;  %v57_v34 = vld [vmem:[%s5411_s0 + $0x8] sm:$0xff] }
  0x29   :  { %420 = vmatprep.mubr.bf16.mxu0 %v5419_v0  ;;  %493 = vmatprep.mubr.bf16.mxu1 %v5419_v0  ;;  %v3585_v2 = vld [vmem:[#allocation3 + $0xc] ss:$24 sps:$4 sm:$0xff]   ;;  %v3587_v3 = vld [vmem:[#allocation3] ss:$24 sps:$4 sm:$0xff]   ;;  %v3591_v6 = vld [vmem:[#allocation3 + $0x3c] ss:$24 sps:$4 sm:$0xff]  }
  0x2a   :  { %3581 = vset.pattern.permute.xlu0 %v5419_v0  ;;  %3582 = vset.pattern.permute.xlu1 %v5419_v0  ;;  %v3588_v4 = vld [vmem:[#allocation3 + $0x8] ss:$24 sps:$4 sm:$0xff]   ;;  %v3589_v5 = vld [vmem:[#allocation3 + $0x34] ss:$24 sps:$4 sm:$0xff]   ;;  %v3594_v8 = vld [vmem:[#allocation3 + $0x38] ss:$24 sps:$4 sm:$0xff]  }
  0x2b   :  { %388 = vmatprep.subr.bf16.mxu0 %v3583_v1  ;;  %461 = vmatprep.subr.bf16.mxu1 %v3585_v2  ;;  %v3593_v7 = vld [vmem:[#allocation3 + $0x30] ss:$24 sps:$4 sm:$0xff]   ;;  %v3595_v9 = vld [vmem:[#allocation3 + $0x64] ss:$24 sps:$4 sm:$0xff]   ;;  %v3599_v11 = vld [vmem:[#allocation3 + $0x60] ss:$24 sps:$4 sm:$0xff]  }
  0x2c   :  { %389 = vmatpush1.bf16.msra.mxu0 %v3587_v3  ;;  %462 = vmatpush1.bf16.msra.mxu1 %v3588_v4  ;;  %v3597_v10 = vld [vmem:[#allocation3 + $0x6c] ss:$24 sps:$4 sm:$0xff]   ;;  %v3600_v12 = vld [vmem:[#allocation3 + $0x68] ss:$24 sps:$4 sm:$0xff]   ;;  %v3603_v14 = vld [vmem:[#allocation3 + $0x9c] ss:$24 sps:$4 sm:$0xff]  }
  0x2d   :  { %390 = vmatprep.subr.bf16.mxu0 %v3589_v5  ;;  %463 = vmatprep.subr.bf16.mxu1 %v3591_v6  ;;  %v3601_v13 = vld [vmem:[#allocation3 + $0x94] ss:$24 sps:$4 sm:$0xff]   ;;  %v3605_v15 = vld [vmem:[#allocation3 + $0x90] ss:$24 sps:$4 sm:$0xff]   ;;  %v3607_v17 = vld [vmem:[#allocation3 + $0xc4] ss:$24 sps:$4 sm:$0xff]  }
  0x2e   :  { %v3606_v16 = vld [vmem:[#allocation3 + $0x98] ss:$24 sps:$4 sm:$0xff]   ;;  %v3609_v18 = vld [vmem:[#allocation3 + $0xcc] ss:$24 sps:$4 sm:$0xff]   ;;  %v3612_v20 = vld [vmem:[#allocation3 + $0xc8] ss:$24 sps:$4 sm:$0xff]  }
  0x2f   :  { %v3611_v19 = vld [vmem:[#allocation3 + $0xc0] ss:$24 sps:$4 sm:$0xff]   ;;  %v3613_v21 = vld [vmem:[#allocation3 + $0xf4] ss:$24 sps:$4 sm:$0xff]   ;;  %v3617_v23 = vld [vmem:[#allocation3 + $0xf0] ss:$24 sps:$4 sm:$0xff]  }
  0x30   :  { %391 = vmatpush1.bf16.msra.mxu0 %v3593_v7  ;;  %464 = vmatpush1.bf16.msra.mxu1 %v3594_v8  ;;  %v3615_v22 = vld [vmem:[#allocation3 + $0xfc] ss:$24 sps:$4 sm:$0xff]   ;;  %v3618_v24 = vld [vmem:[#allocation3 + $0xf8] ss:$24 sps:$4 sm:$0xff]   ;;  %v3621_v26 = vld [vmem:[#allocation3 + $0x12c] ss:$24 sps:$4 sm:$0xff]  }
  0x31   :  { %392 = vmatprep.subr.bf16.mxu0 %v3595_v9  ;;  %465 = vmatprep.subr.bf16.mxu1 %v3597_v10  ;;  %v3619_v25 = vld [vmem:[#allocation3 + $0x124] ss:$24 sps:$4 sm:$0xff]   ;;  %v3623_v27 = vld [vmem:[#allocation3 + $0x120] ss:$24 sps:$4 sm:$0xff]   ;;  %v3625_v29 = vld [vmem:[#allocation3 + $0x154] ss:$24 sps:$4 sm:$0xff]  }
  0x32   :  { %v3624_v28 = vld [vmem:[#allocation3 + $0x128] ss:$24 sps:$4 sm:$0xff]   ;;  %v3627_v30 = vld [vmem:[#allocation3 + $0x15c] ss:$24 sps:$4 sm:$0xff]   ;;  %v3630_v32 = vld [vmem:[#allocation3 + $0x158] ss:$24 sps:$4 sm:$0xff]  }
  0x33   :  { %v3629_v31 = vld [vmem:[#allocation3 + $0x150] ss:$24 sps:$4 sm:$0xff]   ;;  %v56_v33 = vld [vmem:[%s5411_s0] sm:$0xff]  ;;  %v3633_v35 = vld [vmem:[#allocation3 + $0x14] ss:$24 sps:$4 sm:$0xff]   ;;  %vm4076_vm0 = vmmov 0  }
  0x34   :  { %393 = vmatpush1.bf16.msra.mxu0 %v3599_v11  ;;  %466 = vmatpush1.bf16.msra.mxu1 %v3600_v12  ;;  %v4157_v36 = vld [vmem:[#allocation6 + $0x4] ss:$12 sps:$4 sm:$0xff]   ;;  %v4159_v37 = vpack.c.bf16 %v57_v34, %v56_v33  ;;  %v4161_v39 = vld [vmem:[#allocation6] ss:$12 sps:$4 sm:$0xff]   ;;  %v4164_v41 = vld [vmem:[#allocation6 + $0x1c] ss:$12 sps:$4 sm:$0xff]  }
  0x35   :  { %394 = vmatprep.subr.bf16.mxu0 %v3601_v13  ;;  %467 = vmatprep.subr.bf16.mxu1 %v3603_v14  ;;  %v3631_v38 = vld [vmem:[#allocation3 + $0x10] ss:$24 sps:$4 sm:$0xff]   ;;  %v3639_v40 = vld [vmem:[#allocation3 + $0x44] ss:$24 sps:$4 sm:$0xff]   ;;  %v3637_v42 = vld [vmem:[#allocation3 + $0x40] ss:$24 sps:$4 sm:$0xff]  }
  0x36   :  { %v4168_v43 = vld [vmem:[#allocation6 + $0x18] ss:$12 sps:$4 sm:$0xff]   ;;  %v58_v44 = vld [vmem:[%s5411_s0 + $0x10] sm:$0xff]  ;;  %v61_v56 = vld [vmem:[%s5411_s0 + $0x28] sm:$0xff]  ;;  %s4078_s15 = smov [#allocation9]  }
  0x37   :  { %v59_v45 = vld [vmem:[%s5411_s0 + $0x18] sm:$0xff]  ;;  %v3645_v46 = vld [vmem:[#allocation3 + $0x74] ss:$24 sps:$4 sm:$0xff]   ;;  %v3643_v49 = vld [vmem:[#allocation3 + $0x70] ss:$24 sps:$4 sm:$0xff]   ;;  %s2935_s16 = sshll.u32 %s4078_s15, 4  ;;  %s2936_s16 = int_to_ptr.vmem [resolvable:$true] %s2935_s16 }
  0x38   :  { %395 = vmatpush1.bf16.msra.mxu0 %v3605_v15  ;;  %468 = vmatpush1.bf16.msra.mxu1 %v3606_v16  ;;  %v4178_v47 = vld [vmem:[#allocation6 + $0x34] ss:$12 sps:$4 sm:$0xff]   ;;  %v4182_v48 = vpack.c.bf16 %v59_v45, %v58_v44  ;;  %v4184_v50 = vld [vmem:[#allocation6 + $0x30] ss:$12 sps:$4 sm:$0xff]   ;;  %v4188_v52 = vld [vmem:[#allocation6 + $0x4c] ss:$12 sps:$4 sm:$0xff]  }
  0x39   :  { %396 = vmatprep.subr.bf16.mxu0 %v3607_v17  ;;  %469 = vmatprep.subr.bf16.mxu1 %v3609_v18  ;;  %v3651_v51 = vld [vmem:[#allocation3 + $0xa4] ss:$24 sps:$4 sm:$0xff]   ;;  %v3649_v53 = vld [vmem:[#allocation3 + $0xa0] ss:$24 sps:$4 sm:$0xff]   ;;  %v4190_v54 = vld [vmem:[#allocation6 + $0x48] ss:$12 sps:$4 sm:$0xff]  }
  0x3a   :  { %v60_v55 = vld [vmem:[%s5411_s0 + $0x20] sm:$0xff]  ;;  %v3657_v57 = vld [vmem:[#allocation3 + $0xd4] ss:$24 sps:$4 sm:$0xff]   ;;  %v3655_v60 = vld [vmem:[#allocation3 + $0xd0] ss:$24 sps:$4 sm:$0xff]   ;;  %v5421_v17 = vmov 0.0  }
  0x3b   :  { %v4202_v58 = vld [vmem:[#allocation6 + $0x64] ss:$12 sps:$4 sm:$0xff]   ;;  %v4206_v59 = vpack.c.bf16 %v61_v56, %v60_v55  ;;  %v4209_v61 = vld [vmem:[#allocation6 + $0x60] ss:$12 sps:$4 sm:$0xff]   ;;  %v4212_v63 = vld [vmem:[#allocation6 + $0x7c] ss:$12 sps:$4 sm:$0xff]  }
  0x3c   :  { %397 = vmatpush1.bf16.msra.mxu0 %v3611_v19  ;;  %470 = vmatpush1.bf16.msra.mxu1 %v3612_v20  ;;  %v3663_v62 = vld [vmem:[#allocation3 + $0x104] ss:$24 sps:$4 sm:$0xff]   ;;  %v3661_v1 = vld [vmem:[#allocation3 + $0x100] ss:$24 sps:$4 sm:$0xff]   ;;  %v62_v3 = vld [vmem:[%s5411_s0 + $0x30] sm:$0xff] }
  0x3d   :  { %398 = vmatprep.subr.bf16.mxu0 %v3613_v21  ;;  %471 = vmatprep.subr.bf16.mxu1 %v3615_v22  ;;  %v4214_v2 = vld [vmem:[#allocation6 + $0x78] ss:$12 sps:$4 sm:$0xff]   ;;  %v3669_v5 = vld [vmem:[#allocation3 + $0x134] ss:$24 sps:$4 sm:$0xff]   ;;  %v3667_v8 = vld [vmem:[#allocation3 + $0x130] ss:$24 sps:$4 sm:$0xff]  }
  0x3e   :  { %v63_v4 = vld [vmem:[%s5411_s0 + $0x38] sm:$0xff]  ;;  %v4226_v6 = vld [vmem:[#allocation6 + $0x94] ss:$12 sps:$4 sm:$0xff]   ;;  %v4244_v14 = vld [vmem:[#allocation6 + $0xc4] ss:$12 sps:$4 sm:$0xff]  }
  0x3f   :  { %v4230_v7 = vpack.c.bf16 %v63_v4, %v62_v3  ;;  %v4233_v9 = vld [vmem:[#allocation6 + $0x90] ss:$12 sps:$4 sm:$0xff]   ;;  %v4236_v11 = vld [vmem:[#allocation6 + $0xac] ss:$12 sps:$4 sm:$0xff]   ;;  %v4241_v13 = vld [vmem:[#allocation6 + $0xa8] ss:$12 sps:$4 sm:$0xff]  }
  0x40   :  { %399 = vmatpush1.bf16.msra.mxu0 %v3617_v23  ;;  %472 = vmatpush1.bf16.msra.mxu1 %v3618_v24  ;;  %5469 = vst [vmem:[#allocation15_spill] sm:$0xff] %v4233_v9  ;;  %v3675_v10 = vld [vmem:[#allocation3 + $0x164] ss:$24 sps:$4 sm:$0xff]   ;;  %5470 = vst [vmem:[#allocation16_spill] sm:$0xff] %v4236_v11  ;;  %v3673_v12 = vld [vmem:[#allocation3 + $0x160] ss:$24 sps:$4 sm:$0xff]  }
  0x41   :  { %400 = vmatprep.subr.bf16.mxu0 %v3619_v25  ;;  %473 = vmatprep.subr.bf16.mxu1 %v3621_v26  ;;  %5471 = vst [vmem:[#allocation17_spill] sm:$0xff] %v4241_v13  ;;  %5472 = vst [vmem:[#allocation18_spill] sm:$0xff] %v4244_v14  ;;  %v4248_v15 = vld [vmem:[#allocation6 + $0x8] ss:$12 sps:$4 sm:$0xff]   ;;  %v4251_v16 = vld [vmem:[#allocation6 + $0xc0] ss:$12 sps:$4 sm:$0xff]  }
  0x42   :  { %v4255_v18 = vld [vmem:[#allocation6 + $0xdc] ss:$12 sps:$4 sm:$0xff]   ;;  %v4259_v19 = vld [vmem:[#allocation6 + $0x20] ss:$12 sps:$4 sm:$0xff]   ;;  %v4263_v20 = vld [vmem:[#allocation6 + $0xd8] ss:$12 sps:$4 sm:$0xff]  }
  0x43   :  { %v4267_v21 = vld [vmem:[#allocation6 + $0xf4] ss:$12 sps:$4 sm:$0xff]   ;;  %v4273_v22 = vld [vmem:[#allocation6 + $0x38] ss:$12 sps:$4 sm:$0xff]   ;;  %v4275_v23 = vld [vmem:[#allocation6 + $0xf0] ss:$12 sps:$4 sm:$0xff]  }
  0x44   :  { %401 = vmatpush1.bf16.msra.mxu0 %v3623_v27  ;;  %474 = vmatpush1.bf16.msra.mxu1 %v3624_v28  ;;  %v4280_v24 = vld [vmem:[%s5412_s1] sm:$0xff]  ;;  %v4284_v25 = vld [vmem:[#allocation6 + $0x10c] ss:$12 sps:$4 sm:$0xff]   ;;  %v4295_v27 = vld [vmem:[#allocation6 + $0x50] ss:$12 sps:$4 sm:$0xff]  }
  0x45   :  { %402 = vmatprep.subr.bf16.mxu0 %v3625_v29  ;;  %475 = vmatprep.subr.bf16.mxu1 %v3627_v30  ;;  %v4291_v26 = vld [vmem:[%s5412_s1 + $0x38] sm:$0xff]  ;;  %v4297_v28 = vld [vmem:[#allocation6 + $0x108] ss:$12 sps:$4 sm:$0xff]   ;;  %v4301_v29 = vld [vmem:[#allocation6 + $0x124] ss:$12 sps:$4 sm:$0xff]  }
  0x46   :  { %1232 = vperm.xlu0 %3581, %v4280_v24   ;;  %v4308_v30 = vld [vmem:[%s5412_s1 + $0x10] sm:$0xff]  ;;  %v4318_v33 = vld [vmem:[#allocation6 + $0x13c] ss:$12 sps:$4 sm:$0xff]   ;;  %v4352_v45 = vld [vmem:[#allocation6 + $0x16c] ss:$12 sps:$4 sm:$0xff]  }
  0x47   :  { %v4325_v34 = vld [vmem:[%s5412_s1 + $0x18] sm:$0xff]  ;;  %v4387_v55 = vld [vmem:[#allocation6 + $0xe0] ss:$12 sps:$4 sm:$0xff]  }
  0x48   :  { %403 = vmatpush1.bf16.msra.mxu0 %v3629_v31  ;;  %476 = vmatpush1.bf16.msra.mxu1 %v3630_v32  ;;  %v4312_v31 = vld [vmem:[#allocation6 + $0x68] ss:$12 sps:$4 sm:$0xff]   ;;  %v4314_v32 = vld [vmem:[#allocation6 + $0x120] ss:$12 sps:$4 sm:$0xff]   ;;  %v4348_v44 = vld [vmem:[#allocation6 + $0x150] ss:$12 sps:$4 sm:$0xff]  }
  0x49   :  { %534 = vmatprep.subr.bf16.mxu0 %v3633_v35  ;;  %882 = vmatprep.subr.bf16.mxu1 %v4157_v36  ;;  %v4329_v35 = vld [vmem:[#allocation6 + $0x80] ss:$12 sps:$4 sm:$0xff]   ;;  %v4403_v56 = vld [vmem:[#allocation6 + $0x110] ss:$12 sps:$4 sm:$0xff]  }
  0x4a   :  { %1239 = vperm.xlu0 %3581, %v4291_v26  }
  0x4b   :  { %421 = vmatmul.mubr.bf16.vlgmr.msra.gmra.mrb[0].mxu0 %v4159_v37  ;;  %494 = vmatmul.mubr.bf16.vlgmr.msra.gmra.mrb[0].mxu1 %v4159_v37 }
  0x4c   :  { %535 = vmatpush1.bf16.msra.mxu0 %v3631_v38  ;;  %883 = vmatpush1.bf16.msra.mxu1 %v4161_v39  ;;  %v4335_v38 = vld [vmem:[#allocation6 + $0x154] ss:$12 sps:$4 sm:$0xff]  }
  0x4d   :  { %536 = vmatprep.subr.bf16.mxu0 %v3639_v40  ;;  %884 = vmatprep.subr.bf16.mxu1 %v4164_v41  ;;  %v4342_v40 = vld [vmem:[%s5412_s1 + $0x20] sm:$0xff] }
  0x4e   :  { %430 = vmatprep.mubr.bf16.mxu0 %v5419_v0  ;;  %503 = vmatprep.mubr.bf16.mxu1 %v5419_v0 }
  0x4f   :  { %1715 = vperm.xlu0 %3581, %v4308_v30  }
  0x50   :  { %537 = vmatpush1.bf16.msra.mxu0 %v3637_v42  ;;  %885 = vmatpush1.bf16.msra.mxu1 %v4168_v43  ;;  %v4346_v42 = vld [vmem:[#allocation6 + $0x98] ss:$12 sps:$4 sm:$0xff]  }
  0x51   :  { %538 = vmatprep.subr.bf16.mxu0 %v3645_v46  ;;  %886 = vmatprep.subr.bf16.mxu1 %v4178_v47  ;;  %5473 = vst [vmem:[#allocation19_spill] sm:$0xff] %v4346_v42  ;;  %v4359_v46 = vld [vmem:[%s5412_s1 + $0x28] sm:$0xff] }
  0x53   :  { %431 = vmatmul.mubr.bf16.gmra.mrb[4].mxu0 %v4182_v48  ;;  %504 = vmatmul.mubr.bf16.gmra.mrb[4].mxu1 %v4182_v48 }
  0x54   :  { %539 = vmatpush1.bf16.msra.mxu0 %v3643_v49  ;;  %887 = vmatpush1.bf16.msra.mxu1 %v4184_v50  ;;  %v4365_v49 = vld [vmem:[#allocation6 + $0x168] ss:$12 sps:$4 sm:$0xff]  }
  0x55   :  { %540 = vmatprep.subr.bf16.mxu0 %v3651_v51  ;;  %888 = vmatprep.subr.bf16.mxu1 %v4188_v52  ;;  %v4375_v51 = vld [vmem:[%s5412_s1 + $0x30] sm:$0xff] }
  0x56   :  { %440 = vmatprep.mubr.bf16.mxu0 %v5419_v0  ;;  %513 = vmatprep.mubr.bf16.mxu1 %v5419_v0 }
  0x57   :  { %1959 = vperm.xlu0 %3581, %v4325_v34  }
  0x58   :  { %541 = vmatpush1.bf16.msra.mxu0 %v3649_v53  ;;  %889 = vmatpush1.bf16.msra.mxu1 %v4190_v54  ;;  %v4379_v53 = vld [vmem:[#allocation6 + $0xc8] ss:$12 sps:$4 sm:$0xff]  }
  0x59   :  { %542 = vmatprep.subr.bf16.mxu0 %v3657_v57  ;;  %890 = vmatprep.subr.bf16.mxu1 %v4202_v58 }
  0x5b   :  { %441 = vmatmul.mubr.bf16.gmra.mrb[8].mxu0 %v4206_v59  ;;  %514 = vmatmul.mubr.bf16.gmra.mrb[8].mxu1 %v4206_v59 }
  0x5c   :  { %543 = vmatpush1.bf16.msra.mxu0 %v3655_v60  ;;  %891 = vmatpush1.bf16.msra.mxu1 %v4209_v61 }
  0x5d   :  { %544 = vmatprep.subr.bf16.mxu0 %v3663_v62  ;;  %892 = vmatprep.subr.bf16.mxu1 %v4212_v63 }
  0x5e   :  { %450 = vmatprep.mubr.bf16.mxu0 %v5419_v0  ;;  %523 = vmatprep.mubr.bf16.mxu1 %v5419_v0 }
  0x5f   :  { %2195 = vperm.xlu0 %3581, %v4342_v40  }
  0x60   :  { %545 = vmatpush1.bf16.msra.mxu0 %v3661_v1  ;;  %893 = vmatpush1.bf16.msra.mxu1 %v4214_v2  ;;  %v4470_v1 = vld [vmem:[%s5415_s4] sm:$0x3f] }
  0x61   :  { %546 = vmatprep.subr.bf16.mxu0 %v3669_v5  ;;  %894 = vmatprep.subr.bf16.mxu1 %v4226_v6 }
  0x63   :  { %451 = vmatmul.mubr.bf16.gmra.mrb[12].mxu0 %v4230_v7  ;;  %524 = vmatmul.mubr.bf16.gmra.mrb[12].mxu1 %v4230_v7 }
  0x64   :  { %547 = vmatpush1.bf16.msra.mxu0 %v3667_v8  ;;  %895 = vmatpush1.bf16.msra.mxu1 %v4233_v9 }
  0x65   :  { %548 = vmatprep.subr.bf16.mxu0 %v3675_v10  ;;  %896 = vmatprep.subr.bf16.mxu1 %v4236_v11 }
  0x66   :  { %566 = vmatprep.mubr.bf16.mxu0 %v5419_v0  ;;  %914 = vmatprep.mubr.bf16.mxu1 %v5419_v0 }
  0x67   :  { %2429 = vperm.xlu0 %3581, %v4359_v46  }
  0x68   :  { %549 = vmatpush1.bf16.msra.mxu0 %v3673_v12  ;;  %897 = vmatpush1.bf16.msra.mxu1 %v4241_v13 }
  0x69   :  { %3246 = vmatprep.subr.bf16.mxu0 %v5421_v17  ;;  %1128 = vmatprep.subr.bf16.mxu1 %v4244_v14 }
  0x6b   :  { %567 = vmatmul.mubr.bf16.vlgmr.msra.gmra.mrb[16].mxu0 %v4159_v37  ;;  %915 = vmatmul.mubr.bf16.vlgmr.msra.gmra.mrb[16].mxu1 %v5419_v0  ;;  %v4331_v37 = vld [vmem:[#allocation6 + $0x138] ss:$12 sps:$4 sm:$0xff]  }
  0x6c   :  { %3247 = vmatpush3.bf16.msra.mxu0 %v4248_v15  ;;  %1129 = vmatpush1.bf16.msra.mxu1 %v4251_v16 }
  0x6d   :  { %3248 = vmatprep.subr.bf16.mxu0 %v5421_v17  ;;  %1130 = vmatprep.subr.bf16.mxu1 %v4255_v18 }
  0x6e   :  { %576 = vmatprep.mubr.bf16.mxu0 %v5419_v0  ;;  %1160 = vmatprep.mubr.bf16.mxu1 %v5419_v0 }
  0x6f   :  { %2663 = vperm.xlu0 %3581, %v4375_v51  }
  0x70   :  { %3249 = vmatpush3.bf16.msra.mxu0 %v4259_v19  ;;  %1131 = vmatpush1.bf16.msra.mxu1 %v4263_v20 }
  0x71   :  { %3250 = vmatprep.subr.bf16.mxu0 %v5421_v17  ;;  %1132 = vmatprep.subr.bf16.mxu1 %v4267_v21 }
  0x73   :  { %577 = vmatmul.mubr.bf16.gmra.mrb[20].mxu0 %v4182_v48  ;;  %v4363_v48 = vld [vmem:[#allocation6 + $0xb0] ss:$12 sps:$4 sm:$0xff]   ;;  %2897 = vperm.xlu0 %3581, %v4291_v26  }
  0x74   :  { %3251 = vmatpush3.bf16.msra.mxu0 %v4273_v22  ;;  %1133 = vmatpush1.bf16.msra.mxu1 %v4275_v23  ;;  %5474 = vst [vmem:[#allocation20_spill] sm:$0xff] %v4363_v48 }
  0x75   :  { %3252 = vmatprep.subr.bf16.mxu0 %v5421_v17  ;;  %1134 = vmatprep.subr.bf16.mxu1 %v4284_v25 }
  0x76   :  { %586 = vmatprep.mubr.bf16.mxu0 %v5419_v0 }
  0x78   :  { %3253 = vmatpush3.bf16.msra.mxu0 %v4295_v27  ;;  %1135 = vmatpush1.bf16.msra.mxu1 %v4297_v28 }
  0x79   :  { %3254 = vmatprep.subr.bf16.mxu0 %v5421_v17  ;;  %1136 = vmatprep.subr.bf16.mxu1 %v4301_v29 }
  0x7b   :  { %587 = vmatmul.mubr.bf16.gmra.mrb[24].mxu0 %v4206_v59  ;;  %v3061_v59 = vld [vmem:[%s5412_s1 + $0x8] sm:$0xff] }
  0x7c   :  { %3255 = vmatpush3.bf16.msra.mxu0 %v4312_v31  ;;  %1137 = vmatpush1.bf16.msra.mxu1 %v4314_v32 }
  0x7d   :  { %3256 = vmatprep.subr.bf16.mxu0 %v5421_v17  ;;  %1138 = vmatprep.subr.bf16.mxu1 %v4318_v33 }
  0x7e   :  { %596 = vmatprep.mubr.bf16.mxu0 %v5419_v0  ;;  %1471 = vperm.xlu1 %3582, %v3061_v59  }
  0x80   :  { %3257 = vmatpush3.bf16.msra.mxu0 %v4329_v35  ;;  %1139 = vmatpush1.bf16.msra.mxu1 %v4331_v37 }
  0x81   :  { %3258 = vmatprep.subr.bf16.mxu0 %v5421_v17  ;;  %1140 = vmatprep.subr.bf16.mxu1 %v4335_v38 }
  0x82   :  { %1479 = vperm.xlu1 %3582, %v4375_v51  }
  0x83   :  { %597 = vmatmul.mubr.bf16.gmra.mrb[28].mxu0 %v4230_v7 }
  0x84   :  { %3259 = vmatpush3.bf16.msra.mxu0 %v4346_v42  ;;  %1141 = vmatpush1.bf16.msra.mxu1 %v4348_v44 }
  0x85   :  { %3260 = vmatprep.subr.bf16.mxu0 %v5421_v17  ;;  %1142 = vmatprep.subr.bf16.mxu1 %v4352_v45 }
  0x86   :  { %3262 = vmatprep.mubr.msk.bf16.mxu0 %vm4076_vm0, %v5421_v17  ;;  %1723 = vperm.xlu1 %3582, %v4359_v46  }
  0x88   :  { %3261 = vmatpush3.bf16.msra.mxu0 %v4363_v48  ;;  %1143 = vmatpush1.bf16.msra.mxu1 %v4365_v49 }
  0x89   :  { %3266 = vmatprep.subr.bf16.mxu0 %v5421_v17  ;;  %1264 = vmatprep.subr.bf16.mxu1 %v4157_v36  ;;  %v4397_v36 = vld [vmem:[#allocation6 + $0xf8] ss:$12 sps:$4 sm:$0xff]  }
  0x8a   :  { %1967 = vperm.xlu1 %3582, %v4342_v40  }
  0x8b   :  { %3263 = vmatmul.mubr.bf16.vlgmr.msra.gmra.mrb[32].mxu0 %v5419_v0  ;;  %1161 = vmatmul.mubr.bf16.vlgmr.msra.gmra.mrb[20].mxu1 %v5419_v0 }
  0x8c   :  { %3267 = vmatpush3.bf16.msra.mxu0 %v4379_v53  ;;  %3282 = vmatprep.mubr.msk.bf16.mxu0 %vm4076_vm0, %v5421_v17 }
  0x8d   :  { %3268 = vmatprep.subr.bf16.mxu0 %v5421_v17  ;;  %1265 = vmatpush1.bf16.msra.mxu1 %v4161_v39  ;;  %v4409_v39 = vld [vmem:[#allocation6 + $0x128] ss:$12 sps:$4 sm:$0xff]  }
  0x8e   :  { %1266 = vmatprep.subr.bf16.mxu1 %v4164_v41  ;;  %1296 = vmatprep.mubr.bf16.mxu1 %v5419_v0  ;;  %v4415_v41 = vld [vmem:[#allocation6 + $0x140] ss:$12 sps:$4 sm:$0xff]  }
  0x8f   :  { %2202 = vperm.xlu1 %3582, %v4325_v34  }
  0x90   :  { %3269 = vmatpush3.bf16.msra.mxu0 %v4387_v55 }
  0x91   :  { %3270 = vmatprep.subr.bf16.mxu0 %v5421_v17  ;;  %1267 = vmatpush1.bf16.msra.mxu1 %v4168_v43  ;;  %v4421_v43 = vld [vmem:[#allocation6 + $0x158] ss:$12 sps:$4 sm:$0xff]  }
  0x92   :  { %1268 = vmatprep.subr.bf16.mxu1 %v4178_v47  ;;  %v4427_v47 = vld [vmem:[#allocation6 + $0x170] ss:$12 sps:$4 sm:$0xff]  }
  0x93   :  { %2436 = vperm.xlu1 %3582, %v4308_v30  }
  0x94   :  { %3271 = vmatpush3.bf16.msra.mxu0 %v4397_v36 }
  0x95   :  { %3272 = vmatprep.subr.bf16.mxu0 %v5421_v17  ;;  %1269 = vmatpush1.bf16.msra.mxu1 %v4184_v50  ;;  %v118_v50 = vlaneseq }
  0x96   :  { %1270 = vmatprep.subr.bf16.mxu1 %v4188_v52 }
  0x97   :  { %v4455_v52 = vshrl.u32 %v118_v50, 7  ;;  %2670 = vperm.xlu1 %3582, %v3061_v59  }
  0x98   :  { %3273 = vmatpush3.bf16.msra.mxu0 %v4403_v56 }
  0x99   :  { %3274 = vmatprep.subr.bf16.mxu0 %v5421_v17  ;;  %1271 = vmatpush1.bf16.msra.mxu1 %v4190_v54  ;;  %v132_v57 = vsub.s32 3, %v4455_v52  ;;  %v4462_v60 = vsub.s32 0, %v4455_v52  ;;  %v4465_v62 = vsub.s32 2, %v4455_v52  ;;  %v4473_v3 = vsub.s32 1, %v4455_v52 }
  0x9a   :  { %1272 = vmatprep.subr.bf16.mxu1 %v4202_v58  ;;  %v136_v59 = vsub.s32 4, %v4455_v52 }
  0x9b   :  { %v4476_v4 = vrot.slane %v4470_v1, %v132_v57  ;;  %v4480_v5 = vrot.slane %v4470_v1, %v4462_v60  ;;  %v4484_v7 = vrot.slane %v4470_v1, %v4465_v62  ;;  %v4495_v50 = vrot.slane %v4470_v1, %v4473_v3  ;;  %2904 = vperm.xlu1 %3582, %v4280_v24  }
  0x9c   :  { %3275 = vmatpush3.bf16.msra.mxu0 %v4409_v39 }
  0x9d   :  { %3276 = vmatprep.subr.bf16.mxu0 %v5421_v17  ;;  %1273 = vmatpush1.bf16.msra.mxu1 %v4209_v61 }
  0x9e   :  { %1274 = vmatprep.subr.bf16.mxu1 %v4212_v63 }
  0xa0   :  { %3277 = vmatpush3.bf16.msra.mxu0 %v4415_v41 }
  0xa1   :  { %3278 = vmatprep.subr.bf16.mxu0 %v5421_v17  ;;  %1275 = vmatpush1.bf16.msra.mxu1 %v4214_v2 }
  0xa2   :  { %1276 = vmatprep.subr.bf16.mxu1 %v4226_v6 }
  0xa4   :  { %3279 = vmatpush3.bf16.msra.mxu0 %v4421_v43 }
  0xa5   :  { %3280 = vmatprep.subr.bf16.mxu0 %v5421_v17  ;;  %1277 = vmatpush1.bf16.msra.mxu1 %v4233_v9 }
  0xa6   :  { %1278 = vmatprep.subr.bf16.mxu1 %v4236_v11 }
  0xa8   :  { %3281 = vmatpush3.bf16.msra.mxu0 %v4427_v47 }
  0xa9   :  { %3286 = vmatprep.subr.bf16.mxu0 %v5421_v17  ;;  %1279 = vmatpush1.bf16.msra.mxu1 %v4241_v13 }
  0xaa   :  { %1367 = vmatprep.subr.bf16.mxu1 %v4244_v14 }
  0xab   :  { %3283 = vmatmul.mubr.bf16.vlgmr.msra.gmra.mrb[36].mxu0 %v5419_v0 }
  0xac   :  { %3287 = vmatpush3.bf16.msra.mxu0 %v4248_v15  ;;  %3302 = vmatprep.mubr.msk.bf16.mxu0 %vm4076_vm0, %v5421_v17 }
  0xad   :  { %3288 = vmatprep.subr.bf16.mxu0 %v5421_v17 }
  0xb0   :  { %3289 = vmatpush3.bf16.msra.mxu0 %v4259_v19 }
  0xb1   :  { %3290 = vmatprep.subr.bf16.mxu0 %v5421_v17 }
  0xb4   :  { %3291 = vmatpush3.bf16.msra.mxu0 %v4273_v22 }
  0xb5   :  { %3292 = vmatprep.subr.bf16.mxu0 %v5421_v17 }
  0xb8   :  { %3293 = vmatpush3.bf16.msra.mxu0 %v4295_v27 }
  0xb9   :  { %3294 = vmatprep.subr.bf16.mxu0 %v5421_v17 }
  0xbc   :  { %3295 = vmatpush3.bf16.msra.mxu0 %v4312_v31 }
  0xbd   :  { %3296 = vmatprep.subr.bf16.mxu0 %v5421_v17 }
  0xc0   :  { %3297 = vmatpush3.bf16.msra.mxu0 %v4329_v35 }
  0xc1   :  { %3298 = vmatprep.subr.bf16.mxu0 %v5421_v17 }
  0xc4   :  { %3299 = vmatpush3.bf16.msra.mxu0 %v4346_v42 }
  0xc5   :  { %3300 = vmatprep.subr.bf16.mxu0 %v5421_v17 }
  0xc8   :  { %3301 = vmatpush3.bf16.msra.mxu0 %v4363_v48 }
  0xc9   :  { %3306 = vmatprep.subr.bf16.mxu0 %v5421_v17 }
 0x11e   :  { %v4487_v8 = vpop.f32.mrb[0].mxu0  ;;  %v4489_v10 = vpop.f32.mrb[0].mxu1 }
 0x11f   :  { %v4491_v12 = vpop.f32.mrb[1].mxu0  ;;  %v497_v26 = vpop.f32.mrb[1].mxu1 }
 0x120   :  { %v426_v57 = vpop.f32.mrb[2].mxu0  ;;  %v4498_v0 = vadd.f32 %v497_v26, %v4476_v4  ;;  %v499_v17 = vpop.f32.mrb[2].mxu1 }
 0x121   :  { %v4501_v14 = vadd.f32 %v426_v57, %v4480_v5  ;;  %v428_v51 = vpop.f32.mrb[3].mxu0  ;;  %v4504_v48 = vadd.f32 %v499_v17, %v4484_v7  ;;  %v501_v13 = vpop.f32.mrb[3].mxu1 }
 0x122   :  { %5475 = vst [vmem:[#allocation21_spill] sm:$0xff] %v4498_v0  ;;  %v4508_v11 = vadd.f32 %v428_v51, %v4495_v50  ;;  %v4511_v42 = vadd.f32 %v501_v13, %v4476_v4 }
 0x123   :  { %5476 = vst [vmem:[#allocation22_spill] sm:$0xff] %v4501_v14  ;;  %5477 = vst [vmem:[#allocation23_spill] sm:$0xff] %v4504_v48 }
 0x124   :  { %5478 = vst [vmem:[#allocation24_spill] sm:$0xff] %v4508_v11  ;;  %5479 = vst [vmem:[#allocation25_spill] sm:$0xff] %v4511_v42 }
 0x126   :  { %v432_v26 = vpop.f32.mrb[4].mxu0  ;;  %v505_v0 = vpop.f32.mrb[4].mxu1 }
 0x127   :  { %v4515_v57 = vadd.f32 %v432_v26, %v4480_v5  ;;  %v434_v14 = vpop.f32.mrb[5].mxu0  ;;  %v4518_v17 = vadd.f32 %v505_v0, %v4484_v7  ;;  %v507_v48 = vpop.f32.mrb[5].mxu1 }
 0x128   :  { %v4521_v46 = vadd.f32 %v434_v14, %v4495_v50  ;;  %v436_v51 = vpop.f32.mrb[6].mxu0  ;;  %v4524_v11 = vadd.f32 %v507_v48, %v4476_v4  ;;  %v509_v13 = vpop.f32.mrb[6].mxu1 }
 0x129   :  { %5480 = vst [vmem:[#allocation26_spill] sm:$0xff] %v4515_v57  ;;  %5481 = vst [vmem:[#allocation27_spill] sm:$0xff] %v4518_v17  ;;  %v4527_v40 = vadd.f32 %v436_v51, %v4480_v5  ;;  %v438_v42 = vpop.f32.mrb[7].mxu0  ;;  %v4530_v26 = vadd.f32 %v509_v13, %v4484_v7  ;;  %v511_v57 = vpop.f32.mrb[7].mxu1  ;;  %v425_v17 = vadd.f32 %v4491_v12, %v4495_v50 }
 0x12a   :  { %5482 = vst [vmem:[#allocation28_spill] sm:$0xff] %v4521_v46  ;;  %5483 = vst [vmem:[#allocation29_spill] sm:$0xff] %v4524_v11  ;;  %v4534_v0 = vadd.f32 %v438_v42, %v4495_v50  ;;  %v4537_v14 = vadd.f32 %v511_v57, %v4476_v4 }
 0x12b   :  { %5484 = vst [vmem:[#allocation30_spill] sm:$0xff] %v4527_v40  ;;  %5485 = vst [vmem:[#allocation31_spill] sm:$0xff] %v4530_v26 }
 0x12c   :  { %5486 = vst [vmem:[#allocation32_spill] sm:$0xff] %v4534_v0  ;;  %5487 = vst [vmem:[#allocation33_spill] sm:$0xff] %v4537_v14 }
 0x12e   :  { %v442_v48 = vpop.f32.mrb[8].mxu0  ;;  %v515_v11 = vpop.f32.mrb[8].mxu1 }
 0x12f   :  { %v4541_v51 = vadd.f32 %v442_v48, %v4480_v5  ;;  %v444_v40 = vpop.f32.mrb[9].mxu0  ;;  %v4544_v13 = vadd.f32 %v515_v11, %v4484_v7  ;;  %v517_v26 = vpop.f32.mrb[9].mxu1 }
 0x130   :  { %v4547_v34 = vadd.f32 %v444_v40, %v4495_v50  ;;  %v446_v42 = vpop.f32.mrb[10].mxu0  ;;  %v4550_v0 = vadd.f32 %v517_v26, %v4476_v4  ;;  %v519_v57 = vpop.f32.mrb[10].mxu1 }
 0x131   :  { %5488 = vst [vmem:[#allocation34_spill] sm:$0xff] %v4541_v51  ;;  %5489 = vst [vmem:[#allocation35_spill] sm:$0xff] %v4544_v13  ;;  %v4553_v30 = vadd.f32 %v446_v42, %v4480_v5  ;;  %v448_v14 = vpop.f32.mrb[11].mxu0  ;;  %v4556_v48 = vadd.f32 %v519_v57, %v4484_v7  ;;  %v521_v51 = vpop.f32.mrb[11].mxu1 }
 0x132   :  { %5490 = vst [vmem:[#allocation36_spill] sm:$0xff] %v4547_v34  ;;  %5491 = vst [vmem:[#allocation37_spill] sm:$0xff] %v4550_v0  ;;  %v4559_v11 = vadd.f32 %v448_v14, %v4495_v50  ;;  %v4562_v40 = vadd.f32 %v521_v51, %v4476_v4 }
 0x133   :  { %5492 = vst [vmem:[#allocation38_spill] sm:$0xff] %v4553_v30  ;;  %5493 = vst [vmem:[#allocation39_spill] sm:$0xff] %v4556_v48 }
 0x134   :  { %5494 = vst [vmem:[#allocation40_spill] sm:$0xff] %v4559_v11  ;;  %5495 = vst [vmem:[#allocation41_spill] sm:$0xff] %v4562_v40 }
 0x136   :  { %v452_v26 = vpop.f32.mrb[12].mxu0  ;;  %v525_v13 = vpop.f32.mrb[12].mxu1 }
 0x137   :  { %v4566_v34 = vadd.f32 %v452_v26, %v4480_v5  ;;  %v454_v42 = vpop.f32.mrb[13].mxu0  ;;  %v4569_v30 = vadd.f32 %v525_v13, %v4484_v7  ;;  %v527_v57 = vpop.f32.mrb[13].mxu1  ;;  %v720_v26 = vld [vmem:[%s5416_s5] sm:$0x7] }
 0x138   :  { %v4573_v14 = vadd.f32 %v454_v42, %v4495_v50  ;;  %v456_v48 = vpop.f32.mrb[14].mxu0  ;;  %v4576_v51 = vadd.f32 %v527_v57, %v4476_v4  ;;  %v529_v24 = vpop.f32.mrb[14].mxu1  ;;  %v4592_v57 = vrot.slane %v4470_v1, %v136_v59  ;;  %v4595_v0 = vrot.slane %v720_v26, %v4462_v60 }
 0x139   :  { %5496 = vst [vmem:[#allocation42_spill] sm:$0xff] %v4566_v34  ;;  %5497 = vst [vmem:[#allocation43_spill] sm:$0xff] %v4569_v30  ;;  %v140_v34 = vsub.s32 5, %v4455_v52  ;;  %v4583_v13 = vadd.f32 %v456_v48, %v4480_v5  ;;  %v458_v30 = vpop.f32.mrb[15].mxu0  ;;  %v4586_v11 = vadd.f32 %v529_v24, %v4484_v7  ;;  %v531_v42 = vpop.f32.mrb[15].mxu1  ;;  %v4601_v52 = vrot.slane %v720_v26, %v4473_v3 }
 0x13a   :  { %5498 = vst [vmem:[#allocation44_spill] sm:$0xff] %v4573_v14  ;;  %5499 = vst [vmem:[#allocation45_spill] sm:$0xff] %v4576_v51  ;;  %v4589_v14 = vadd.f32 %v458_v30, %v4495_v50  ;;  %v423_v24 = vadd.f32 %v4487_v8, %v4480_v5 }
 0x13b   :  { %5500 = vst [vmem:[#allocation46_spill] sm:$0xff] %v4583_v13  ;;  %5501 = vst [vmem:[#allocation47_spill] sm:$0xff] %v4586_v11  ;;  %v4598_v40 = vrot.slane %v4470_v1, %v140_v34 }
 0x13c   :  { %5502 = vst [vmem:[#allocation48_spill] sm:$0xff] %v4589_v14  ;;  %5503 = vst [vmem:[#allocation49_spill] sm:$0xff] %v4595_v0 }
 0x13d   :  { %5504 = vst [vmem:[#allocation50_spill] sm:$0xff] %v4601_v52 }
 0x13e   :  { %v568_v48 = vpop.f32.mrb[16].mxu0  ;;  %v916_v13 = vpop.f32.mrb[16].mxu1 }
 0x13f   :  { %v4606_v30 = vadd.f32 %v568_v48, %v4592_v57  ;;  %v917_v59 = vadd.f32 %v916_v13, %v4595_v0  ;;  %v570_v11 = vpop.f32.mrb[17].mxu0  ;;  %v918_v14 = vpop.f32.mrb[17].mxu1 }
 0x140   :  { %v4612_v1 = vadd.f32 %v570_v11, %v4598_v40  ;;  %v919_v34 = vadd.f32 %v918_v14, %v4601_v52  ;;  %v572_v46 = vpop.f32.mrb[18].mxu0  ;;  %v920_v51 = vpop.f32.mrb[18].mxu1 }
 0x141   :  { %5505 = vst [vmem:[#allocation51_spill] sm:$0xff] %v4606_v30  ;;  %v963_v9 = vadd.f32 %v917_v59, %v423_v24  ;;  %v4616_v5 = vadd.f32 %v572_v46, %v4592_v57  ;;  %v574_v8 = vpop.f32.mrb[19].mxu0  ;;  %v921_v48 = vpop.f32.mrb[19].mxu1 }
 0x142   :  { %5506 = vst [vmem:[#allocation52_spill] sm:$0xff] %v4612_v1  ;;  %v970_v30 = vadd.f32 %v919_v34, %v425_v17  ;;  %v4619_v13 = vadd.f32 %v574_v8, %v4598_v40 }
 0x143   :  { %5507 = vst [vmem:[#allocation53_spill] sm:$0xff] %v4616_v5  ;;  %v3033_v0 = vmul.f32 -1.442695, %v963_v9 }
 0x144   :  { %5508 = vst [vmem:[#allocation54_spill] sm:$0xff] %v4619_v13  ;;  %v3034_v59 = vmul.f32 -1.442695, %v970_v30 }
 0x145   :  { %3719 = vpow2.f32 %v3033_v0 }
 0x146   :  { %v578_v12 = vpop.f32.mrb[20].mxu0  ;;  %3721 = vpow2.f32 %v3034_v59 }
 0x147   :  { %v4622_v50 = vadd.f32 %v578_v12, %v4592_v57  ;;  %v580_v11 = vpop.f32.mrb[21].mxu0 }
 0x148   :  { %v4625_v14 = vadd.f32 %v580_v11, %v4598_v40  ;;  %v582_v51 = vpop.f32.mrb[22].mxu0 }
 0x149   :  { %5509 = vst [vmem:[#allocation55_spill] sm:$0xff] %v4622_v50  ;;  %v4628_v46 = vadd.f32 %v582_v51, %v4592_v57  ;;  %v584_v24 = vpop.f32.mrb[23].mxu0 }
 0x14a   :  { %5510 = vst [vmem:[#allocation56_spill] sm:$0xff] %v4625_v14  ;;  %v4631_v17 = vadd.f32 %v584_v24, %v4598_v40 }
 0x14b   :  { %5511 = vst [vmem:[#allocation57_spill] sm:$0xff] %v4628_v46 }
 0x14c   :  { %5512 = vst [vmem:[#allocation58_spill] sm:$0xff] %v4631_v17  ;;  %v532_v17 = vadd.f32 %v531_v42, %v4476_v4 }
 0x14e   :  { %v588_v34 = vpop.f32.mrb[24].mxu0 }
 0x14f   :  { %v3720_v9 = vpop.eup %3719  ;;  %v4634_v0 = vadd.f32 %v588_v34, %v4592_v57  ;;  %v590_v8 = vpop.f32.mrb[25].mxu0 }
 0x150   :  { %v4637_v48 = vadd.f32 %v590_v8, %v4598_v40  ;;  %v592_v12 = vpop.f32.mrb[26].mxu0  ;;  %v967_v1 = vadd.f32 1.0, %v3720_v9  ;;  %v3722_v9 = vpop.eup %3721 }
 0x151   :  { %5513 = vst [vmem:[#allocation59_spill] sm:$0xff] %v4634_v0  ;;  %v4640_v11 = vadd.f32 %v592_v12, %v4592_v57  ;;  %v594_v51 = vpop.f32.mrb[27].mxu0  ;;  %v3007_v12 = vld [vmem:[%s5416_s5 + $0x3] sm:$0x7]  ;;  %v974_v14 = vadd.f32 1.0, %v3722_v9  ;;  %s4077_s5 = smov [#allocation8]  }
 0x152   :  { %5514 = vst [vmem:[#allocation60_spill] sm:$0xff] %v4637_v48  ;;  %v4643_v24 = vadd.f32 %v594_v51, %v4598_v40  ;;  %3723 = vrcp.f32 %v967_v1  ;;  %v4657_v51 = vrot.slane %v720_v26, %v4465_v62  ;;  %v4660_v1 = vrot.slane %v3007_v12, %v4462_v60  ;;  %s2923_s14 = sshll.u32 %s4077_s5, 4  ;;  %s2924_s14 = int_to_ptr.vmem [resolvable:$true] %s2923_s14 }
 0x153   :  { %5515 = vst [vmem:[#allocation61_spill] sm:$0xff] %v4640_v11  ;;  %3725 = vrcp.f32 %v974_v14  ;;  %s4016_s17 = scalar_lea.vmem %s2924_s14, 2048  ;;  %p4021_p3 = scmp.lt.s32.totalorder %s2924_s14, %s2924_s14 }
 0x154   :  { %5516 = vst [vmem:[#allocation62_spill] sm:$0xff] %v4643_v24  ;;  %5519 = vst [vmem:[#allocation65_spill] sm:$0xff] %v4657_v51  ;;  %p4017_p2 = scmp.ne.s32.totalorder %s2924_s14, %s4016_s17  ;;  %p4022_p4 = scmp.lt.s32.totalorder %s4016_s17, %s4016_s17 }
 0x155   :  { %5520 = vst [vmem:[#allocation66_spill] sm:$0xff] %v4660_v1 }
 0x156   :  { %v598_v30 = vpop.f32.mrb[28].mxu0  ;;  %p4023_p5 = por %p4022_p4, %p4021_p3 }
 0x157   :  { %v4646_v13 = vadd.f32 %v598_v30, %v4592_v57  ;;  %v600_v34 = vpop.f32.mrb[29].mxu0  ;;  %v4663_v30 = vrot.slane %v3007_v12, %v4473_v3  ;;  %v496_v3 = vadd.f32 %v4489_v10, %v4484_v7  ;;  %v1233_v10 = vpop.permute.xlu0 %1232 }
 0x158   :  { %v4649_v59 = vadd.f32 %v600_v34, %v4598_v40  ;;  %v602_v8 = vpop.f32.mrb[30].mxu0  ;;  %p4024_p6 = pnand %p4023_p5, %p4017_p2 }
 0x159   :  { %5517 = vst [vmem:[#allocation63_spill] sm:$0xff] %v4646_v13  ;;  %v4654_v5 = vpop.f32.mrb[31].mxu0  ;;  %5521 = vst [vmem:[#allocation67_spill] sm:$0xff] %v4663_v30  ;;  %v603_v26 = vadd.f32 %v602_v8, %v4592_v57 }
 0x15a   :  { %5518 = vst [vmem:[#allocation64_spill] sm:$0xff] %v4649_v59 }
 0x15c   :  { %v3724_v11 = vpop.eup %3723 }
 0x15e   :  { %v957_v34 = vpop.f32.mrb[32].mxu0  ;;  %v1162_v50 = vpop.f32.mrb[20].mxu1 }
 0x15f   :  { %v958_v46 = vadd.f32 %v957_v34, %v4657_v51  ;;  %v1163_v48 = vadd.f32 %v1162_v50, %v4660_v1  ;;  %v3264_v0 = vpop.f32.mrb[33].mxu0  ;;  %v1164_v24 = vpop.f32.mrb[21].mxu1 }
 0x160   :  { %v1165_v60 = vadd.f32 %v1164_v24, %v4663_v30  ;;  %v960_v59 = vpop.f32.mrb[34].mxu0  ;;  %v1166_v13 = vpop.f32.mrb[22].mxu1 }
 0x161   :  { %v977_v9 = vmul.f32 %v3724_v11, %v958_v46  ;;  %v1209_v52 = vadd.f32 %v1163_v48, %v532_v17  ;;  %v3265_v4 = vpop.f32.mrb[35].mxu0  ;;  %v1167_v42 = vpop.f32.mrb[23].mxu1  ;;  %v5522_v17 = vmov 0.0   ;;  %v4682_v48 = vrot.slane %v3007_v12, %v4465_v62 }
 0x162   :  { %v1216_v34 = vadd.f32 %v1165_v60, %v603_v26  ;;  %v3726_v0 = vpop.eup %3725  ;;  %v5523_v11 = vmov 0   ;;  %v605_v60 = vadd.f32 %v4654_v5, %v4598_v40 }
 0x163   :  { %v978_v51 = vadd.f32 %v977_v9, %v496_v3  ;;  %v3059_v50 = vmul.f32 -1.442695, %v1209_v52  ;;  %v980_v57 = vsub.f32 1.0, %v3726_v0  ;;  %v982_v59 = vmul.f32 0.0, %v3726_v0 }
 0x164   :  { %v3060_v1 = vmul.f32 -1.442695, %v1216_v34 }
 0x165   :  { %3727 = vtanh.f32 %v978_v51 }
 0x166   :  { %3729 = vpow2.f32 %v3059_v50 }
 0x167   :  { %3731 = vpow2.f32 %v3060_v1 }
 0x16f   :  { %v3728_v8 = vpop.eup %3727 }
 0x170   :  { %v3730_v24 = vpop.eup %3729  ;;  %v981_v13 = vmul.f32 %v3728_v8, %v980_v57  ;;  %v1240_v57 = vpop.permute.xlu0 %1239 }
 0x171   :  { %v1213_v7 = vadd.f32 1.0, %v3730_v24  ;;  %v3732_v46 = vpop.eup %3731 }
 0x172   :  { %v983_v30 = vadd.f32 %v982_v59, %v981_v13  ;;  %v1220_v51 = vadd.f32 1.0, %v3732_v46  ;;  %v4721_v59 = vld [vmem:[#allocation6 + $0x4] ss:$12 sps:$4 sm:$0xff]   ;;  %v4725_v13 = vld [vmem:[#allocation6] ss:$12 sps:$4 sm:$0xff]  }
 0x173   :  { %3733 = vrcp.f32 %v1213_v7  ;;  %v4729_v7 = vld [vmem:[#allocation6 + $0x1c] ss:$12 sps:$4 sm:$0xff]   ;;  %v4748_v46 = vld [vmem:[#allocation6 + $0x4c] ss:$12 sps:$4 sm:$0xff]  }
 0x174   :  { %v4672_v14 = vmul.f32 %v1233_v10, %v983_v30  ;;  %3735 = vrcp.f32 %v1220_v51  ;;  %v4736_v10 = vld [vmem:[#allocation6 + $0x18] ss:$12 sps:$4 sm:$0xff]  }
 0x176   :  { %1236 = vst [vmem:[#allocation8] sm:$0xff] %v4672_v14  ;;  %v1263_v52 = vpack.c.bf16 %v4672_v14, %v4672_v14 }
 0x178   :  { %1297 = vmatmul.mubr.bf16.vlgmr.msra.gmra.mrb[24].mxu1 %v1263_v52  ;;  %3303 = vmatmul.mubr.bf16.vlgmr.msra.gmra.mrb[40].mxu0 %v1263_v52  ;;  %v4740_v52 = vld [vmem:[#allocation6 + $0x34] ss:$12 sps:$4 sm:$0xff]  }
 0x179   :  { %1368 = vmatpush1.bf16.msra.mxu1 %v4251_v16  ;;  %3307 = vmatpush3.bf16.msra.mxu0 %v4379_v53 }
 0x17a   :  { %1369 = vmatprep.subr.bf16.mxu1 %v4255_v18  ;;  %3308 = vmatprep.subr.bf16.mxu0 %v5522_v17 }
 0x17b   :  { %1399 = vmatprep.mubr.bf16.mxu1 %v5523_v11  ;;  %3322 = vmatprep.mubr.msk.bf16.mxu0 %vm4076_vm0, %v5522_v17 }
 0x17d   :  { %1370 = vmatpush1.bf16.msra.mxu1 %v4263_v20  ;;  %3309 = vmatpush3.bf16.msra.mxu0 %v4387_v55  ;;  %v3734_v62 = vpop.eup %3733 }
 0x17e   :  { %v1203_v1 = vpop.f32.mrb[36].mxu0  ;;  %1371 = vmatprep.subr.bf16.mxu1 %v4267_v21  ;;  %3310 = vmatprep.subr.bf16.mxu0 %v5522_v17  ;;  %v3736_v40 = vpop.eup %3735 }
 0x17f   :  { %v1204_v30 = vadd.f32 %v1203_v1, %v4682_v48  ;;  %v3284_v26 = vpop.f32.mrb[37].mxu0  ;;  %v1226_v5 = vsub.f32 1.0, %v3736_v40  ;;  %v1228_v34 = vmul.f32 0.0, %v3736_v40  ;;  %v5533_v40 = vld [vmem:[#allocation24_spill] sm:$0xff] }
 0x180   :  { %v1206_v12 = vpop.f32.mrb[38].mxu0 }
 0x181   :  { %v1223_v3 = vmul.f32 %v3734_v62, %v1204_v30  ;;  %v3285_v9 = vpop.f32.mrb[39].mxu0  ;;  %1372 = vmatpush1.bf16.msra.mxu1 %v4275_v23  ;;  %3311 = vmatpush3.bf16.msra.mxu0 %v4397_v36  ;;  %v5531_v30 = vld [vmem:[#allocation50_spill] sm:$0xff] }
 0x182   :  { %1373 = vmatprep.subr.bf16.mxu1 %v4284_v25  ;;  %3312 = vmatprep.subr.bf16.mxu0 %v5522_v17 }
 0x183   :  { %v1224_v4 = vadd.f32 %v1223_v3, %v605_v60  ;;  %v5532_v60 = vld [vmem:[#allocation22_spill] sm:$0xff] }
 0x185   :  { %3737 = vtanh.f32 %v1224_v4  ;;  %1374 = vmatpush1.bf16.msra.mxu1 %v4297_v28  ;;  %3313 = vmatpush3.bf16.msra.mxu0 %v4403_v56 }
 0x186   :  { %1375 = vmatprep.subr.bf16.mxu1 %v4301_v29  ;;  %3314 = vmatprep.subr.bf16.mxu0 %v5522_v17 }
 0x189   :  { %1376 = vmatpush1.bf16.msra.mxu1 %v4314_v32  ;;  %3315 = vmatpush3.bf16.msra.mxu0 %v4409_v39 }
 0x18a   :  { %1377 = vmatprep.subr.bf16.mxu1 %v4318_v33  ;;  %3316 = vmatprep.subr.bf16.mxu0 %v5522_v17 }
 0x18d   :  { %1378 = vmatpush1.bf16.msra.mxu1 %v4331_v37  ;;  %3317 = vmatpush3.bf16.msra.mxu0 %v4415_v41 }
 0x18e   :  { %1379 = vmatprep.subr.bf16.mxu1 %v4335_v38  ;;  %3318 = vmatprep.subr.bf16.mxu0 %v5522_v17 }
 0x18f   :  { %v3738_v42 = vpop.eup %3737 }
 0x190   :  { %v1227_v50 = vmul.f32 %v3738_v42, %v1226_v5 }
 0x191   :  { %1380 = vmatpush1.bf16.msra.mxu1 %v4348_v44  ;;  %3319 = vmatpush3.bf16.msra.mxu0 %v4421_v43 }
 0x192   :  { %v1229_v0 = vadd.f32 %v1228_v34, %v1227_v50  ;;  %1381 = vmatprep.subr.bf16.mxu1 %v4352_v45  ;;  %3320 = vmatprep.subr.bf16.mxu0 %v5522_v17 }
 0x194   :  { %v4714_v8 = vmul.f32 %v1240_v57, %v1229_v0 }
 0x195   :  { %1382 = vmatpush1.bf16.msra.mxu1 %v4365_v49  ;;  %3321 = vmatpush3.bf16.msra.mxu0 %v4427_v47 }
 0x196   :  { %1244 = vst [vmem:[#allocation8 + $0x78] sm:$0xff] %v4714_v8  ;;  %v1366_v24 = vpack.c.bf16 %v4714_v8, %v4714_v8  ;;  %1508 = vmatprep.subr.bf16.mxu1 %v4721_v59  ;;  %3326 = vmatprep.subr.bf16.mxu0 %v5522_v17 }
 0x198   :  { %1400 = vmatmul.mubr.bf16.vlgmr.msra.gmra.mrb[28].mxu1 %v1366_v24  ;;  %3323 = vmatmul.mubr.bf16.vlgmr.msra.gmra.mrb[44].mxu0 %v1366_v24 }
 0x199   :  { %1509 = vmatpush1.bf16.msra.mxu1 %v4725_v13  ;;  %3327 = vmatpush3.bf16.msra.mxu0 %v4248_v15  ;;  %v4744_v15 = vld [vmem:[#allocation6 + $0x30] ss:$12 sps:$4 sm:$0xff]  }
 0x19a   :  { %1510 = vmatprep.subr.bf16.mxu1 %v4729_v7  ;;  %3328 = vmatprep.subr.bf16.mxu0 %v5522_v17 }
 0x19b   :  { %1540 = vmatprep.mubr.bf16.mxu1 %v5523_v11  ;;  %3342 = vmatprep.mubr.msk.bf16.mxu0 %vm4076_vm0, %v5522_v17 }
 0x19d   :  { %1511 = vmatpush1.bf16.msra.mxu1 %v4736_v10  ;;  %3329 = vmatpush3.bf16.msra.mxu0 %v4259_v19  ;;  %v5526_v19 = vld [vmem:[#allocation16_spill] sm:$0xff] }
 0x19e   :  { %1512 = vmatprep.subr.bf16.mxu1 %v4740_v52  ;;  %3330 = vmatprep.subr.bf16.mxu0 %v5522_v17 }
 0x1a1   :  { %1513 = vmatpush1.bf16.msra.mxu1 %v4744_v15  ;;  %3331 = vmatpush3.bf16.msra.mxu0 %v4273_v22  ;;  %v5529_v22 = vld [vmem:[#allocation18_spill] sm:$0xff] }
 0x1a2   :  { %1514 = vmatprep.subr.bf16.mxu1 %v4748_v46  ;;  %3332 = vmatprep.subr.bf16.mxu0 %v5522_v17 }
 0x1a5   :  { %1515 = vmatpush1.bf16.msra.mxu1 %v4190_v54  ;;  %3333 = vmatpush3.bf16.msra.mxu0 %v4295_v27  ;;  %v5524_v54 = vld [vmem:[#allocation15_spill] sm:$0xff]  ;;  %v5530_v27 = vld [vmem:[#allocation49_spill] sm:$0xff] }
 0x1a6   :  { %1516 = vmatprep.subr.bf16.mxu1 %v4202_v58  ;;  %3334 = vmatprep.subr.bf16.mxu0 %v5522_v17  ;;  %v5525_v58 = vld [vmem:[#allocation19_spill] sm:$0xff] }
 0x1a9   :  { %1517 = vmatpush1.bf16.msra.mxu1 %v4209_v61  ;;  %3335 = vmatpush3.bf16.msra.mxu0 %v4312_v31  ;;  %v5527_v61 = vld [vmem:[#allocation17_spill] sm:$0xff] }
 0x1aa   :  { %1518 = vmatprep.subr.bf16.mxu1 %v4212_v63  ;;  %3336 = vmatprep.subr.bf16.mxu0 %v5522_v17  ;;  %v5528_v63 = vld [vmem:[#allocation20_spill] sm:$0xff] }
 0x1ad   :  { %1519 = vmatpush1.bf16.msra.mxu1 %v4214_v2  ;;  %3337 = vmatpush3.bf16.msra.mxu0 %v4329_v35 }
 0x1ae   :  { %1520 = vmatprep.subr.bf16.mxu1 %v4226_v6  ;;  %3338 = vmatprep.subr.bf16.mxu0 %v5522_v17 }
 0x1b1   :  { %1521 = vmatpush1.bf16.msra.mxu1 %v5524_v54  ;;  %3339 = vmatpush3.bf16.msra.mxu0 %v5525_v58  ;;  %v5534_v54 = vld [vmem:[#allocation65_spill] sm:$0xff] }
 0x1b2   :  { %1522 = vmatprep.subr.bf16.mxu1 %v5526_v19  ;;  %3340 = vmatprep.subr.bf16.mxu0 %v5522_v17 }
 0x1b5   :  { %1523 = vmatpush1.bf16.msra.mxu1 %v5527_v61  ;;  %3341 = vmatpush3.bf16.msra.mxu0 %v5528_v63 }
 0x1b6   :  { %1611 = vmatprep.subr.bf16.mxu1 %v5529_v22  ;;  %3346 = vmatprep.subr.bf16.mxu0 %v5522_v17 }
 0x24b   :  { %v1298_v2 = vpop.f32.mrb[24].mxu1  ;;  %v1339_v6 = vpop.f32.mrb[40].mxu0 }
 0x24c   :  { %v1299_v31 = vadd.f32 %v1298_v2, %v5530_v27  ;;  %v1300_v51 = vpop.f32.mrb[25].mxu1  ;;  %v3304_v1 = vpop.f32.mrb[41].mxu0  ;;  %v1340_v19 = vadd.f32 %v1339_v6, %v5534_v54 }
 0x24d   :  { %v1301_v26 = vadd.f32 %v1300_v51, %v5531_v30  ;;  %v1302_v62 = vpop.f32.mrb[26].mxu1  ;;  %v1342_v12 = vpop.f32.mrb[42].mxu0  ;;  %v5535_v51 = vld [vmem:[#allocation23_spill] sm:$0xff] }
 0x24e   :  { %v1345_v3 = vadd.f32 %v1299_v31, %v5532_v60  ;;  %v1303_v9 = vpop.f32.mrb[27].mxu1  ;;  %v3305_v4 = vpop.f32.mrb[43].mxu0  ;;  %v5536_v62 = vld [vmem:[#allocation66_spill] sm:$0xff] }
 0x24f   :  { %v1352_v5 = vadd.f32 %v1301_v26, %v5533_v40 }
 0x250   :  { %v3063_v42 = vmul.f32 -1.442695, %v1345_v3  ;;  %v5537_v3 = vld [vmem:[#allocation67_spill] sm:$0xff] }
 0x251   :  { %v3064_v34 = vmul.f32 -1.442695, %v1352_v5  ;;  %v5538_v5 = vld [vmem:[#allocation45_spill] sm:$0xff] }
 0x252   :  { %3739 = vpow2.f32 %v3063_v42 }
 0x253   :  { %3741 = vpow2.f32 %v3064_v34 }
 0x25c   :  { %v3740_v50 = vpop.eup %3739 }
 0x25d   :  { %v1349_v0 = vadd.f32 1.0, %v3740_v50  ;;  %v3742_v57 = vpop.eup %3741  ;;  %v5539_v50 = vld [vmem:[#allocation63_spill] sm:$0xff] }
 0x25e   :  { %v1356_v24 = vadd.f32 1.0, %v3742_v57 }
 0x25f   :  { %3743 = vrcp.f32 %v1349_v0 }
 0x260   :  { %3745 = vrcp.f32 %v1356_v24 }
 0x269   :  { %v3744_v61 = vpop.eup %3743 }
 0x26a   :  { %v1359_v22 = vmul.f32 %v3744_v61, %v1340_v19  ;;  %v3746_v24 = vpop.eup %3745 }
 0x26b   :  { %v1401_v2 = vpop.f32.mrb[28].mxu1  ;;  %v1442_v31 = vpop.f32.mrb[44].mxu0  ;;  %v1362_v61 = vsub.f32 1.0, %v3746_v24 }
 0x26c   :  { %v1360_v1 = vadd.f32 %v1359_v22, %v5535_v51  ;;  %v1402_v26 = vadd.f32 %v1401_v2, %v5536_v62  ;;  %v1403_v12 = vpop.f32.mrb[29].mxu1  ;;  %v3324_v60 = vpop.f32.mrb[45].mxu0  ;;  %v1364_v51 = vmul.f32 %v3746_v24, %v4672_v14  ;;  %v4886_v24 = vld [vmem:[#allocation6 + $0xac] ss:$12 sps:$4 sm:$0xff]  }
 0x26d   :  { %v1404_v9 = vadd.f32 %v1403_v12, %v5537_v3  ;;  %v1405_v4 = vpop.f32.mrb[30].mxu1  ;;  %v1445_v40 = vpop.f32.mrb[46].mxu0  ;;  %5547 = vst [vmem:[#allocation22_spill] sm:$0xff] %v4886_v24 }
 0x26e   :  { %3747 = vtanh.f32 %v1360_v1  ;;  %v1448_v42 = vadd.f32 %v1402_v26, %v5538_v5  ;;  %v1406_v34 = vpop.f32.mrb[31].mxu1  ;;  %v3325_v6 = vpop.f32.mrb[47].mxu0 }
 0x26f   :  { %v1455_v0 = vadd.f32 %v1404_v9, %v5539_v50  ;;  %v1472_v4 = vpop.permute.xlu1 %1471  ;;  %v1443_v50 = vadd.f32 %v1442_v31, %v4682_v48  ;;  %v4878_v31 = vld [vmem:[#allocation6 + $0x94] ss:$12 sps:$4 sm:$0xff]  }
 0x270   :  { %v3065_v57 = vmul.f32 -1.442695, %v1448_v42  ;;  %5545 = vst [vmem:[#allocation20_spill] sm:$0xff] %v4878_v31 }
 0x271   :  { %v3066_v19 = vmul.f32 -1.442695, %v1455_v0 }
 0x272   :  { %3749 = vpow2.f32 %v3065_v57  ;;  %v4882_v57 = vld [vmem:[#allocation6 + $0x90] ss:$12 sps:$4 sm:$0xff]  }
 0x273   :  { %3751 = vpow2.f32 %v3066_v19  ;;  %5546 = vst [vmem:[#allocation18_spill] sm:$0xff] %v4882_v57  ;;  %v4890_v19 = vld [vmem:[#allocation6 + $0xa8] ss:$12 sps:$4 sm:$0xff]  }
 0x274   :  { %5548 = vst [vmem:[#allocation24_spill] sm:$0xff] %v4890_v19 }
 0x278   :  { %v3748_v22 = vpop.eup %3747 }
 0x279   :  { %v1363_v2 = vmul.f32 %v3748_v22, %v1362_v61 }
 0x27b   :  { %v1365_v12 = vadd.f32 %v1364_v51, %v1363_v2 }
 0x27c   :  { %v3750_v60 = vpop.eup %3749 }
 0x27d   :  { %v1474_v1 = vmul.f32 %v1472_v4, %v1365_v12  ;;  %v1485_v26 = vsub.f32 %v1365_v12, %v4672_v14  ;;  %v1452_v40 = vadd.f32 1.0, %v3750_v60  ;;  %v3752_v42 = vpop.eup %3751 }
 0x27e   :  { %v1459_v6 = vadd.f32 1.0, %v3752_v42 }
 0x27f   :  { %1476 = vst [vmem:[#allocation8 + $0x10] sm:$0xff] %v1474_v1  ;;  %v1486_v5 = vmul.f32 %v1485_v26, %v1472_v4  ;;  %3753 = vrcp.f32 %v1452_v40  ;;  %v5550_v1 = vld [vmem:[#allocation26_spill] sm:$0xff] }
 0x280   :  { %3755 = vrcp.f32 %v1459_v6 }
 0x281   :  { %v4785_v9 = vadd.f32 %v1486_v5, %v4672_v14  ;;  %v5551_v5 = vld [vmem:[#allocation28_spill] sm:$0xff] }
 0x283   :  { %v1507_v34 = vpack.c.bf16 %v4785_v9, %v4785_v9 }
 0x285   :  { %1541 = vmatmul.mubr.bf16.vlgmr.msra.gmra.mrb[32].mxu1 %v1507_v34  ;;  %3343 = vmatmul.mubr.bf16.vlgmr.msra.gmra.mrb[48].mxu0 %v1507_v34 }
 0x286   :  { %1612 = vmatpush1.bf16.msra.mxu1 %v4251_v16  ;;  %3347 = vmatpush3.bf16.msra.mxu0 %v4379_v53  ;;  %v5540_v16 = vld [vmem:[#allocation64_spill] sm:$0xff] }
 0x287   :  { %1613 = vmatprep.subr.bf16.mxu1 %v4255_v18  ;;  %3348 = vmatprep.subr.bf16.mxu0 %v5522_v17 }
 0x288   :  { %1643 = vmatprep.mubr.bf16.mxu1 %v5523_v11  ;;  %3362 = vmatprep.mubr.msk.bf16.mxu0 %vm4076_vm0, %v5522_v17 }
 0x289   :  { %v3754_v14 = vpop.eup %3753 }
 0x28a   :  { %v1462_v0 = vmul.f32 %v3754_v14, %v1443_v50  ;;  %1614 = vmatpush1.bf16.msra.mxu1 %v4263_v20  ;;  %3349 = vmatpush3.bf16.msra.mxu0 %v4387_v55  ;;  %v3756_v20 = vpop.eup %3755 }
 0x28b   :  { %1615 = vmatprep.subr.bf16.mxu1 %v4267_v21  ;;  %3350 = vmatprep.subr.bf16.mxu0 %v5522_v17  ;;  %v1465_v21 = vsub.f32 1.0, %v3756_v20 }
 0x28c   :  { %v1463_v18 = vadd.f32 %v1462_v0, %v5540_v16 }
 0x28e   :  { %3757 = vtanh.f32 %v1463_v18  ;;  %1616 = vmatpush1.bf16.msra.mxu1 %v4275_v23  ;;  %3351 = vmatpush3.bf16.msra.mxu0 %v4397_v36  ;;  %v4854_v36 = vld [vmem:[#allocation6 + $0x48] ss:$12 sps:$4 sm:$0xff]  }
 0x28f   :  { %1617 = vmatprep.subr.bf16.mxu1 %v4284_v25  ;;  %3352 = vmatprep.subr.bf16.mxu0 %v5522_v17 }
 0x292   :  { %1618 = vmatpush1.bf16.msra.mxu1 %v4297_v28  ;;  %3353 = vmatpush3.bf16.msra.mxu0 %v4403_v56  ;;  %v1467_v28 = vmul.f32 %v3756_v20, %v4714_v8  ;;  %v4857_v56 = vld [vmem:[#allocation6 + $0x50] ss:$12 sps:$4 sm:$0xff]  }
 0x293   :  { %1619 = vmatprep.subr.bf16.mxu1 %v4301_v29  ;;  %3354 = vmatprep.subr.bf16.mxu0 %v5522_v17 }
 0x296   :  { %1620 = vmatpush1.bf16.msra.mxu1 %v4314_v32  ;;  %3355 = vmatpush3.bf16.msra.mxu0 %v4409_v39  ;;  %v1480_v32 = vpop.permute.xlu1 %1479  ;;  %v4860_v39 = vld [vmem:[#allocation6 + $0x64] ss:$12 sps:$4 sm:$0xff]  }
 0x297   :  { %1621 = vmatprep.subr.bf16.mxu1 %v4318_v33  ;;  %3356 = vmatprep.subr.bf16.mxu0 %v5522_v17 }
 0x298   :  { %v3758_v23 = vpop.eup %3757 }
 0x299   :  { %v1466_v25 = vmul.f32 %v3758_v23, %v1465_v21 }
 0x29a   :  { %1622 = vmatpush1.bf16.msra.mxu1 %v4331_v37  ;;  %3357 = vmatpush3.bf16.msra.mxu0 %v4415_v41  ;;  %v4864_v41 = vld [vmem:[#allocation6 + $0x60] ss:$12 sps:$4 sm:$0xff]  }
 0x29b   :  { %v1468_v29 = vadd.f32 %v1467_v28, %v1466_v25  ;;  %1623 = vmatprep.subr.bf16.mxu1 %v4335_v38  ;;  %3358 = vmatprep.subr.bf16.mxu0 %v5522_v17  ;;  %5541 = vst [vmem:[#allocation15_spill] sm:$0xff] %v4864_v41  ;;  %v5552_v28 = vld [vmem:[#allocation27_spill] sm:$0xff] }
 0x29d   :  { %v1482_v53 = vmul.f32 %v1480_v32, %v1468_v29  ;;  %v1488_v55 = vsub.f32 %v1468_v29, %v4714_v8 }
 0x29e   :  { %1624 = vmatpush1.bf16.msra.mxu1 %v4348_v44  ;;  %3359 = vmatpush3.bf16.msra.mxu0 %v4421_v43  ;;  %v4834_v44 = vld [vmem:[#allocation6 + $0x8] ss:$12 sps:$4 sm:$0xff]  }
 0x29f   :  { %1484 = vst [vmem:[#allocation8 + $0x68] sm:$0xff] %v1482_v53  ;;  %1625 = vmatprep.subr.bf16.mxu1 %v4352_v45  ;;  %3360 = vmatprep.subr.bf16.mxu0 %v5522_v17  ;;  %v1489_v33 = vmul.f32 %v1488_v55, %v1480_v32  ;;  %v4843_v45 = vld [vmem:[#allocation6 + $0x20] ss:$12 sps:$4 sm:$0xff]   ;;  %v4867_v43 = vld [vmem:[#allocation6 + $0x68] ss:$12 sps:$4 sm:$0xff]  }
 0x2a0   :  { %5542 = vst [vmem:[#allocation19_spill] sm:$0xff] %v4867_v43 }
 0x2a1   :  { %v4825_v37 = vadd.f32 %v1489_v33, %v4714_v8  ;;  %v4874_v8 = vld [vmem:[#allocation6 + $0x78] ss:$12 sps:$4 sm:$0xff]  }
 0x2a2   :  { %1626 = vmatpush1.bf16.msra.mxu1 %v4365_v49  ;;  %3361 = vmatpush3.bf16.msra.mxu0 %v4427_v47  ;;  %v4849_v49 = vld [vmem:[#allocation6 + $0x38] ss:$12 sps:$4 sm:$0xff]   ;;  %v4870_v47 = vld [vmem:[#allocation6 + $0x7c] ss:$12 sps:$4 sm:$0xff]   ;;  %5544 = vst [vmem:[#allocation17_spill] sm:$0xff] %v4874_v8 }
 0x2a3   :  { %v1610_v38 = vpack.c.bf16 %v4825_v37, %v4825_v37  ;;  %1752 = vmatprep.subr.bf16.mxu1 %v4721_v59  ;;  %3366 = vmatprep.subr.bf16.mxu0 %v5522_v17  ;;  %5543 = vst [vmem:[#allocation16_spill] sm:$0xff] %v4870_v47 }
 0x2a5   :  { %1644 = vmatmul.mubr.bf16.vlgmr.msra.gmra.mrb[36].mxu1 %v1610_v38  ;;  %3363 = vmatmul.mubr.bf16.vlgmr.msra.gmra.mrb[52].mxu0 %v1610_v38 }
 0x2a6   :  { %1753 = vmatpush1.bf16.msra.mxu1 %v4725_v13  ;;  %3367 = vmatpush3.bf16.msra.mxu0 %v4834_v44 }
 0x2a7   :  { %1754 = vmatprep.subr.bf16.mxu1 %v4729_v7  ;;  %3368 = vmatprep.subr.bf16.mxu0 %v5522_v17 }
 0x2a8   :  { %1784 = vmatprep.mubr.bf16.mxu1 %v5523_v11  ;;  %3382 = vmatprep.mubr.msk.bf16.mxu0 %vm4076_vm0, %v5522_v17 }
 0x2aa   :  { %1755 = vmatpush1.bf16.msra.mxu1 %v4736_v10  ;;  %3369 = vmatpush3.bf16.msra.mxu0 %v4843_v45 }
 0x2ab   :  { %1756 = vmatprep.subr.bf16.mxu1 %v4740_v52  ;;  %3370 = vmatprep.subr.bf16.mxu0 %v5522_v17 }
 0x2ae   :  { %1757 = vmatpush1.bf16.msra.mxu1 %v4744_v15  ;;  %3371 = vmatpush3.bf16.msra.mxu0 %v4849_v49 }
 0x2af   :  { %1758 = vmatprep.subr.bf16.mxu1 %v4748_v46  ;;  %3372 = vmatprep.subr.bf16.mxu0 %v5522_v17 }
 0x2b2   :  { %1759 = vmatpush1.bf16.msra.mxu1 %v4854_v36  ;;  %3373 = vmatpush3.bf16.msra.mxu0 %v4857_v56 }
 0x2b3   :  { %1760 = vmatprep.subr.bf16.mxu1 %v4860_v39  ;;  %3374 = vmatprep.subr.bf16.mxu0 %v5522_v17 }
 0x2b6   :  { %1761 = vmatpush1.bf16.msra.mxu1 %v4864_v41  ;;  %3375 = vmatpush3.bf16.msra.mxu0 %v4867_v43 }
 0x2b7   :  { %1762 = vmatprep.subr.bf16.mxu1 %v4870_v47  ;;  %3376 = vmatprep.subr.bf16.mxu0 %v5522_v17 }
 0x2ba   :  { %1763 = vmatpush1.bf16.msra.mxu1 %v4874_v8  ;;  %3377 = vmatpush3.bf16.msra.mxu0 %v4329_v35  ;;  %v4894_v35 = vld [vmem:[#allocation6 + $0xc4] ss:$12 sps:$4 sm:$0xff]  }
 0x2bb   :  { %1764 = vmatprep.subr.bf16.mxu1 %v4878_v31  ;;  %3378 = vmatprep.subr.bf16.mxu0 %v5522_v17  ;;  %5549 = vst [vmem:[#allocation23_spill] sm:$0xff] %v4894_v35 }
 0x2be   :  { %1765 = vmatpush1.bf16.msra.mxu1 %v4882_v57  ;;  %3379 = vmatpush3.bf16.msra.mxu0 %v5525_v58 }
 0x2bf   :  { %1766 = vmatprep.subr.bf16.mxu1 %v4886_v24  ;;  %3380 = vmatprep.subr.bf16.mxu0 %v5522_v17 }
 0x2c2   :  { %1767 = vmatpush1.bf16.msra.mxu1 %v4890_v19  ;;  %3381 = vmatpush3.bf16.msra.mxu0 %v5528_v63 }
 0x2c3   :  { %1855 = vmatprep.subr.bf16.mxu1 %v4894_v35  ;;  %3386 = vmatprep.subr.bf16.mxu0 %v5522_v17 }
 0x358   :  { %v1542_v61 = vpop.f32.mrb[32].mxu1  ;;  %v1583_v58 = vpop.f32.mrb[48].mxu0 }
 0x359   :  { %v1543_v22 = vadd.f32 %v1542_v61, %v5530_v27  ;;  %v1544_v2 = vpop.f32.mrb[33].mxu1  ;;  %v3344_v51 = vpop.f32.mrb[49].mxu0  ;;  %v1584_v18 = vadd.f32 %v1583_v58, %v5534_v54 }
 0x35a   :  { %v1545_v12 = vadd.f32 %v1544_v2, %v5531_v30  ;;  %v1546_v60 = vpop.f32.mrb[34].mxu1  ;;  %v1586_v4 = vpop.f32.mrb[50].mxu0 }
 0x35b   :  { %v1589_v26 = vadd.f32 %v1543_v22, %v5550_v1  ;;  %v1547_v40 = vpop.f32.mrb[35].mxu1  ;;  %v3345_v63 = vpop.f32.mrb[51].mxu0  ;;  %v5553_v22 = vld [vmem:[#allocation41_spill] sm:$0xff] }
 0x35c   :  { %v1596_v42 = vadd.f32 %v1545_v12, %v5551_v5  ;;  %v5554_v12 = vld [vmem:[#allocation61_spill] sm:$0xff] }
 0x35d   :  { %v3069_v34 = vmul.f32 -1.442695, %v1589_v26 }
 0x35e   :  { %v3070_v6 = vmul.f32 -1.442695, %v1596_v42 }
 0x35f   :  { %3759 = vpow2.f32 %v3069_v34 }
 0x360   :  { %3761 = vpow2.f32 %v3070_v6 }
 0x369   :  { %v3760_v50 = vpop.eup %3759 }
 0x36a   :  { %v1593_v14 = vadd.f32 1.0, %v3760_v50  ;;  %v3762_v0 = vpop.eup %3761  ;;  %v1716_v50 = vpop.permute.xlu0 %1715 }
 0x36b   :  { %v1600_v16 = vadd.f32 1.0, %v3762_v0 }
 0x36c   :  { %3763 = vrcp.f32 %v1593_v14 }
 0x36d   :  { %3765 = vrcp.f32 %v1600_v16 }
 0x376   :  { %v3764_v20 = vpop.eup %3763 }
 0x377   :  { %v1603_v21 = vmul.f32 %v3764_v20, %v1584_v18  ;;  %v3766_v1 = vpop.eup %3765 }
 0x378   :  { %v1645_v23 = vpop.f32.mrb[36].mxu1  ;;  %v1686_v25 = vpop.f32.mrb[52].mxu0  ;;  %v1606_v40 = vsub.f32 1.0, %v3766_v1  ;;  %v1608_v42 = vmul.f32 %v3766_v1, %v4785_v9  ;;  %v4956_v1 = vld [vmem:[#allocation6 + $0x124] ss:$12 sps:$4 sm:$0xff]  }
 0x379   :  { %v1604_v29 = vadd.f32 %v1603_v21, %v5552_v28  ;;  %v1646_v32 = vadd.f32 %v1645_v23, %v5536_v62  ;;  %v1647_v53 = vpop.f32.mrb[37].mxu1  ;;  %v3364_v55 = vpop.f32.mrb[53].mxu0 }
 0x37a   :  { %v1648_v33 = vadd.f32 %v1647_v53, %v5537_v3  ;;  %v1649_v38 = vpop.f32.mrb[38].mxu1  ;;  %v1689_v61 = vpop.f32.mrb[54].mxu0  ;;  %v4921_v53 = vld [vmem:[#allocation6 + $0xdc] ss:$12 sps:$4 sm:$0xff]  }
 0x37b   :  { %3767 = vtanh.f32 %v1604_v29  ;;  %v1692_v2 = vadd.f32 %v1646_v32, %v5553_v22  ;;  %v1650_v51 = vpop.f32.mrb[39].mxu1  ;;  %v3365_v58 = vpop.f32.mrb[55].mxu0  ;;  %v4915_v29 = vld [vmem:[#allocation6 + $0xc0] ss:$12 sps:$4 sm:$0xff]   ;;  %v4918_v32 = vld [vmem:[#allocation6 + $0xc8] ss:$12 sps:$4 sm:$0xff]  }
 0x37c   :  { %v1699_v60 = vadd.f32 %v1648_v33, %v5554_v12  ;;  %v4929_v38 = vld [vmem:[#allocation6 + $0xd8] ss:$12 sps:$4 sm:$0xff]   ;;  %v4932_v61 = vld [vmem:[#allocation6 + $0xe0] ss:$12 sps:$4 sm:$0xff]   ;;  %v4940_v51 = vld [vmem:[#allocation6 + $0xf0] ss:$12 sps:$4 sm:$0xff]  }
 0x37d   :  { %v3071_v4 = vmul.f32 -1.442695, %v1692_v2  ;;  %v4935_v22 = vld [vmem:[#allocation6 + $0xf4] ss:$12 sps:$4 sm:$0xff]   ;;  %v4943_v58 = vld [vmem:[#allocation6 + $0xf8] ss:$12 sps:$4 sm:$0xff]  }
 0x37e   :  { %v3072_v26 = vmul.f32 -1.442695, %v1699_v60  ;;  %v4946_v12 = vld [vmem:[#allocation6 + $0x10c] ss:$12 sps:$4 sm:$0xff]   ;;  %v4950_v60 = vld [vmem:[#allocation6 + $0x108] ss:$12 sps:$4 sm:$0xff]  }
 0x37f   :  { %3769 = vpow2.f32 %v3071_v4  ;;  %v4953_v4 = vld [vmem:[#allocation6 + $0x110] ss:$12 sps:$4 sm:$0xff]  }
 0x380   :  { %3771 = vpow2.f32 %v3072_v26 }
 0x385   :  { %v3768_v63 = vpop.eup %3767 }
 0x386   :  { %v1607_v5 = vmul.f32 %v3768_v63, %v1606_v40  ;;  %v4960_v40 = vld [vmem:[#allocation6 + $0x120] ss:$12 sps:$4 sm:$0xff]   ;;  %v4963_v63 = vld [vmem:[#allocation6 + $0x128] ss:$12 sps:$4 sm:$0xff]  }
 0x388   :  { %v1609_v34 = vadd.f32 %v1608_v42, %v1607_v5  ;;  %v4966_v42 = vld [vmem:[#allocation6 + $0x13c] ss:$12 sps:$4 sm:$0xff]  }
 0x389   :  { %v3770_v6 = vpop.eup %3769 }
 0x38a   :  { %v1718_v14 = vmul.f32 %v1716_v50, %v1609_v34  ;;  %v1696_v0 = vadd.f32 1.0, %v3770_v6  ;;  %v1729_v16 = vsub.f32 %v1609_v34, %v4785_v9  ;;  %v3772_v21 = vpop.eup %3771 }
 0x38b   :  { %v1703_v28 = vadd.f32 1.0, %v3772_v21  ;;  %v1724_v21 = vpop.permute.xlu1 %1723 }
 0x38c   :  { %1720 = vst [vmem:[#allocation8 + $0x20] sm:$0xff] %v1718_v14  ;;  %3773 = vrcp.f32 %v1696_v0  ;;  %v1730_v18 = vmul.f32 %v1729_v16, %v1716_v50  ;;  %v4971_v14 = vld [vmem:[#allocation6 + $0x138] ss:$12 sps:$4 sm:$0xff]   ;;  %v4974_v0 = vld [vmem:[#allocation6 + $0x140] ss:$12 sps:$4 sm:$0xff]  }
 0x38d   :  { %3775 = vrcp.f32 %v1703_v28 }
 0x38e   :  { %v4911_v20 = vadd.f32 %v1730_v18, %v4785_v9  ;;  %v1687_v9 = vadd.f32 %v1686_v25, %v4682_v48  ;;  %v5555_v25 = vld [vmem:[#allocation62_spill] sm:$0xff]  ;;  %v4977_v18 = vld [vmem:[#allocation6 + $0x154] ss:$12 sps:$4 sm:$0xff]  }
 0x390   :  { %v1751_v23 = vpack.c.bf16 %v4911_v20, %v4911_v20 }
 0x392   :  { %1785 = vmatmul.mubr.bf16.vlgmr.msra.gmra.mrb[40].mxu1 %v1751_v23  ;;  %3383 = vmatmul.mubr.bf16.vlgmr.msra.gmra.mrb[56].mxu0 %v1751_v23 }
 0x393   :  { %1856 = vmatpush1.bf16.msra.mxu1 %v4915_v29  ;;  %3387 = vmatpush3.bf16.msra.mxu0 %v4918_v32 }
 0x394   :  { %1857 = vmatprep.subr.bf16.mxu1 %v4921_v53  ;;  %3388 = vmatprep.subr.bf16.mxu0 %v5522_v17 }
 0x395   :  { %1887 = vmatprep.mubr.bf16.mxu1 %v5523_v11  ;;  %3402 = vmatprep.mubr.msk.bf16.mxu0 %vm4076_vm0, %v5522_v17 }
 0x396   :  { %v3774_v55 = vpop.eup %3773 }
 0x397   :  { %v1706_v33 = vmul.f32 %v3774_v55, %v1687_v9  ;;  %1858 = vmatpush1.bf16.msra.mxu1 %v4929_v38  ;;  %3389 = vmatpush3.bf16.msra.mxu0 %v4932_v61  ;;  %v3776_v26 = vpop.eup %3775  ;;  %v4982_v9 = vld [vmem:[#allocation6 + $0x150] ss:$12 sps:$4 sm:$0xff]   ;;  %v4985_v55 = vld [vmem:[#allocation6 + $0x158] ss:$12 sps:$4 sm:$0xff]  }
 0x398   :  { %1859 = vmatprep.subr.bf16.mxu1 %v4935_v22  ;;  %3390 = vmatprep.subr.bf16.mxu0 %v5522_v17  ;;  %v1709_v5 = vsub.f32 1.0, %v3776_v26  ;;  %v1711_v50 = vmul.f32 %v3776_v26, %v4825_v37  ;;  %v4995_v26 = vld [vmem:[#allocation6 + $0x168] ss:$12 sps:$4 sm:$0xff]  }
 0x399   :  { %v1707_v2 = vadd.f32 %v1706_v33, %v5555_v25  ;;  %v4988_v33 = vld [vmem:[#allocation6 + $0x16c] ss:$12 sps:$4 sm:$0xff]  }
 0x39b   :  { %3777 = vtanh.f32 %v1707_v2  ;;  %1860 = vmatpush1.bf16.msra.mxu1 %v4940_v51  ;;  %3391 = vmatpush3.bf16.msra.mxu0 %v4943_v58 }
 0x39c   :  { %1861 = vmatprep.subr.bf16.mxu1 %v4946_v12  ;;  %3392 = vmatprep.subr.bf16.mxu0 %v5522_v17 }
 0x39f   :  { %1862 = vmatpush1.bf16.msra.mxu1 %v4950_v60  ;;  %3393 = vmatpush3.bf16.msra.mxu0 %v4953_v4 }
 0x3a0   :  { %1863 = vmatprep.subr.bf16.mxu1 %v4956_v1  ;;  %3394 = vmatprep.subr.bf16.mxu0 %v5522_v17 }
 0x3a3   :  { %1864 = vmatpush1.bf16.msra.mxu1 %v4960_v40  ;;  %3395 = vmatpush3.bf16.msra.mxu0 %v4963_v63 }
 0x3a4   :  { %1865 = vmatprep.subr.bf16.mxu1 %v4966_v42  ;;  %3396 = vmatprep.subr.bf16.mxu0 %v5522_v17 }
 0x3a5   :  { %v3778_v34 = vpop.eup %3777 }
 0x3a6   :  { %v1710_v6 = vmul.f32 %v3778_v34, %v1709_v5  ;;  %v4998_v5 = vld [vmem:[#allocation6 + $0x170] ss:$12 sps:$4 sm:$0xff]  }
 0x3a7   :  { %1866 = vmatpush1.bf16.msra.mxu1 %v4971_v14  ;;  %3397 = vmatpush3.bf16.msra.mxu0 %v4974_v0 }
 0x3a8   :  { %v1712_v16 = vadd.f32 %v1711_v50, %v1710_v6  ;;  %1867 = vmatprep.subr.bf16.mxu1 %v4977_v18  ;;  %3398 = vmatprep.subr.bf16.mxu0 %v5522_v17  ;;  %v5035_v6 = vld [vmem:[#allocation6 + $0x98] ss:$12 sps:$4 sm:$0xff]   ;;  %v5041_v50 = vld [vmem:[#allocation6 + $0xb0] ss:$12 sps:$4 sm:$0xff]  }
 0x3a9   :  { %5557 = vst [vmem:[#allocation45_spill] sm:$0xff] %v5035_v6  ;;  %5558 = vst [vmem:[#allocation63_spill] sm:$0xff] %v5041_v50 }
 0x3aa   :  { %v1726_v23 = vmul.f32 %v1724_v21, %v1712_v16  ;;  %v1732_v28 = vsub.f32 %v1712_v16, %v4825_v37 }
 0x3ab   :  { %1868 = vmatpush1.bf16.msra.mxu1 %v4982_v9  ;;  %3399 = vmatpush3.bf16.msra.mxu0 %v4985_v55 }
 0x3ac   :  { %1728 = vst [vmem:[#allocation8 + $0x58] sm:$0xff] %v1726_v23  ;;  %1869 = vmatprep.subr.bf16.mxu1 %v4988_v33  ;;  %3400 = vmatprep.subr.bf16.mxu0 %v5522_v17  ;;  %v1733_v25 = vmul.f32 %v1732_v28, %v1724_v21 }
 0x3ae   :  { %v4993_v2 = vadd.f32 %v1733_v25, %v4825_v37  ;;  %v5029_v37 = vld [vmem:[#allocation6 + $0x80] ss:$12 sps:$4 sm:$0xff]  }
 0x3af   :  { %1870 = vmatpush1.bf16.msra.mxu1 %v4995_v26  ;;  %3401 = vmatpush3.bf16.msra.mxu0 %v4998_v5  ;;  %5556 = vst [vmem:[#allocation66_spill] sm:$0xff] %v5029_v37 }
 0x3b0   :  { %v1854_v34 = vpack.c.bf16 %v4993_v2, %v4993_v2  ;;  %1988 = vmatprep.subr.bf16.mxu1 %v4721_v59  ;;  %3406 = vmatprep.subr.bf16.mxu0 %v5522_v17 }
 0x3b2   :  { %1888 = vmatmul.mubr.bf16.vlgmr.msra.gmra.mrb[44].mxu1 %v1854_v34  ;;  %3403 = vmatmul.mubr.bf16.vlgmr.msra.gmra.mrb[60].mxu0 %v1854_v34 }
 0x3b3   :  { %1989 = vmatpush1.bf16.msra.mxu1 %v4725_v13  ;;  %3407 = vmatpush3.bf16.msra.mxu0 %v4834_v44 }
 0x3b4   :  { %1990 = vmatprep.subr.bf16.mxu1 %v4729_v7  ;;  %3408 = vmatprep.subr.bf16.mxu0 %v5522_v17 }
 0x3b5   :  { %2020 = vmatprep.mubr.bf16.mxu1 %v5523_v11  ;;  %3422 = vmatprep.mubr.msk.bf16.mxu0 %vm4076_vm0, %v5522_v17 }
 0x3b7   :  { %1991 = vmatpush1.bf16.msra.mxu1 %v4736_v10  ;;  %3409 = vmatpush3.bf16.msra.mxu0 %v4843_v45 }
 0x3b8   :  { %1992 = vmatprep.subr.bf16.mxu1 %v4740_v52  ;;  %3410 = vmatprep.subr.bf16.mxu0 %v5522_v17 }
 0x3bb   :  { %1993 = vmatpush1.bf16.msra.mxu1 %v4744_v15  ;;  %3411 = vmatpush3.bf16.msra.mxu0 %v4849_v49 }
 0x3bc   :  { %1994 = vmatprep.subr.bf16.mxu1 %v4748_v46  ;;  %3412 = vmatprep.subr.bf16.mxu0 %v5522_v17 }
 0x3bf   :  { %1995 = vmatpush1.bf16.msra.mxu1 %v4854_v36  ;;  %3413 = vmatpush3.bf16.msra.mxu0 %v4857_v56 }
 0x3c0   :  { %1996 = vmatprep.subr.bf16.mxu1 %v4860_v39  ;;  %3414 = vmatprep.subr.bf16.mxu0 %v5522_v17 }
 0x3c3   :  { %1997 = vmatpush1.bf16.msra.mxu1 %v4864_v41  ;;  %3415 = vmatpush3.bf16.msra.mxu0 %v4867_v43 }
 0x3c4   :  { %1998 = vmatprep.subr.bf16.mxu1 %v4870_v47  ;;  %3416 = vmatprep.subr.bf16.mxu0 %v5522_v17 }
 0x3c7   :  { %1999 = vmatpush1.bf16.msra.mxu1 %v4874_v8  ;;  %3417 = vmatpush3.bf16.msra.mxu0 %v5029_v37  ;;  %v5560_v8 = vld [vmem:[#allocation32_spill] sm:$0xff] }
 0x3c8   :  { %2000 = vmatprep.subr.bf16.mxu1 %v4878_v31  ;;  %3418 = vmatprep.subr.bf16.mxu0 %v5522_v17 }
 0x3cb   :  { %2001 = vmatpush1.bf16.msra.mxu1 %v4882_v57  ;;  %3419 = vmatpush3.bf16.msra.mxu0 %v5035_v6  ;;  %v5559_v57 = vld [vmem:[#allocation30_spill] sm:$0xff] }
 0x3cc   :  { %2002 = vmatprep.subr.bf16.mxu1 %v4886_v24  ;;  %3420 = vmatprep.subr.bf16.mxu0 %v5522_v17 }
 0x3cf   :  { %2003 = vmatpush1.bf16.msra.mxu1 %v4890_v19  ;;  %3421 = vmatpush3.bf16.msra.mxu0 %v5041_v50 }
 0x3d0   :  { %2091 = vmatprep.subr.bf16.mxu1 %v4894_v35  ;;  %3426 = vmatprep.subr.bf16.mxu0 %v5522_v17 }
 0x465   :  { %v1786_v16 = vpop.f32.mrb[40].mxu1  ;;  %v1827_v21 = vpop.f32.mrb[56].mxu0 }
 0x466   :  { %v1787_v23 = vadd.f32 %v1786_v16, %v5530_v27  ;;  %v1788_v28 = vpop.f32.mrb[41].mxu1  ;;  %v3384_v25 = vpop.f32.mrb[57].mxu0 }
 0x467   :  { %v1789_v34 = vadd.f32 %v1788_v28, %v5531_v30  ;;  %v1790_v24 = vpop.f32.mrb[42].mxu1  ;;  %v1830_v6 = vpop.f32.mrb[58].mxu0  ;;  %v1828_v25 = vadd.f32 %v1827_v21, %v5534_v54 }
 0x468   :  { %v1833_v19 = vadd.f32 %v1787_v23, %v5559_v57  ;;  %v1791_v31 = vpop.f32.mrb[43].mxu1  ;;  %v3385_v37 = vpop.f32.mrb[59].mxu0 }
 0x469   :  { %v1840_v50 = vadd.f32 %v1789_v34, %v5560_v8  ;;  %v5561_v31 = vld [vmem:[#allocation31_spill] sm:$0xff] }
 0x46a   :  { %v3075_v47 = vmul.f32 -1.442695, %v1833_v19 }
 0x46b   :  { %v3076_v35 = vmul.f32 -1.442695, %v1840_v50 }
 0x46c   :  { %3779 = vpow2.f32 %v3075_v47 }
 0x46d   :  { %3781 = vpow2.f32 %v3076_v35 }
 0x476   :  { %v3780_v43 = vpop.eup %3779 }
 0x477   :  { %v1837_v41 = vadd.f32 1.0, %v3780_v43  ;;  %v3782_v16 = vpop.eup %3781 }
 0x478   :  { %v1844_v27 = vadd.f32 1.0, %v3782_v16  ;;  %v5563_v16 = vld [vmem:[#allocation59_spill] sm:$0xff] }
 0x479   :  { %3783 = vrcp.f32 %v1837_v41  ;;  %v5562_v41 = vld [vmem:[#allocation37_spill] sm:$0xff] }
 0x47a   :  { %3785 = vrcp.f32 %v1844_v27 }
 0x483   :  { %v3784_v28 = vpop.eup %3783 }
 0x484   :  { %v1847_v24 = vmul.f32 %v3784_v28, %v1828_v25  ;;  %v3786_v28 = vpop.eup %3785 }
 0x485   :  { %v1889_v6 = vpop.f32.mrb[44].mxu1  ;;  %v1930_v57 = vpop.f32.mrb[60].mxu0 }
 0x486   :  { %v1848_v37 = vadd.f32 %v1847_v24, %v5561_v31  ;;  %v1890_v8 = vadd.f32 %v1889_v6, %v5536_v62  ;;  %v1891_v19 = vpop.f32.mrb[45].mxu1  ;;  %v3404_v47 = vpop.f32.mrb[61].mxu0  ;;  %v1850_v24 = vsub.f32 1.0, %v3786_v28 }
 0x487   :  { %v1892_v35 = vadd.f32 %v1891_v19, %v5537_v3  ;;  %v1893_v50 = vpop.f32.mrb[46].mxu1  ;;  %v1933_v43 = vpop.f32.mrb[62].mxu0  ;;  %v1852_v47 = vmul.f32 %v3786_v28, %v4911_v20 }
 0x488   :  { %3787 = vtanh.f32 %v1848_v37  ;;  %v1936_v23 = vadd.f32 %v1890_v8, %v5562_v41  ;;  %v1894_v34 = vpop.f32.mrb[47].mxu1  ;;  %v3405_v21 = vpop.f32.mrb[63].mxu0 }
 0x489   :  { %v1943_v25 = vadd.f32 %v1892_v35, %v5563_v16  ;;  %v1960_v43 = vpop.permute.xlu0 %1959  ;;  %v5564_v16 = vld [vmem:[#allocation60_spill] sm:$0xff] }
 0x48a   :  { %v3077_v27 = vmul.f32 -1.442695, %v1936_v23 }
 0x48b   :  { %v3078_v54 = vmul.f32 -1.442695, %v1943_v25 }
 0x48c   :  { %3789 = vpow2.f32 %v3077_v27 }
 0x48d   :  { %3791 = vpow2.f32 %v3078_v54 }
 0x492   :  { %v3788_v31 = vpop.eup %3787 }
 0x493   :  { %v1851_v6 = vmul.f32 %v3788_v31, %v1850_v24 }
 0x495   :  { %v1853_v19 = vadd.f32 %v1852_v47, %v1851_v6  ;;  %v1968_v47 = vpop.permute.xlu1 %1967 }
 0x496   :  { %v3790_v50 = vpop.eup %3789 }
 0x497   :  { %v1962_v37 = vmul.f32 %v1960_v43, %v1853_v19  ;;  %v1940_v3 = vadd.f32 1.0, %v3790_v50  ;;  %v1973_v8 = vsub.f32 %v1853_v19, %v4911_v20  ;;  %v3792_v23 = vpop.eup %3791 }
 0x498   :  { %v1947_v54 = vadd.f32 1.0, %v3792_v23  ;;  %v5574_v23 = vld [vmem:[#allocation24_spill] sm:$0xff] }
 0x499   :  { %1964 = vst [vmem:[#allocation8 + $0x30] sm:$0xff] %v1962_v37  ;;  %3793 = vrcp.f32 %v1940_v3  ;;  %v1974_v35 = vmul.f32 %v1973_v8, %v1960_v43  ;;  %v1931_v3 = vadd.f32 %v1930_v57, %v4682_v48 }
 0x49a   :  { %3795 = vrcp.f32 %v1947_v54  ;;  %v5576_v54 = vld [vmem:[#allocation23_spill] sm:$0xff] }
 0x49b   :  { %v5059_v41 = vadd.f32 %v1974_v35, %v4911_v20  ;;  %v5573_v35 = vld [vmem:[#allocation22_spill] sm:$0xff] }
 0x49d   :  { %v1987_v34 = vpack.c.bf16 %v5059_v41, %v5059_v41 }
 0x49f   :  { %2021 = vmatmul.mubr.bf16.vlgmr.msra.gmra.mrb[48].mxu1 %v1987_v34  ;;  %3423 = vmatmul.mubr.bf16.vlgmr.msra.gmra.mrb[64].mxu0 %v1987_v34  ;;  %v5575_v34 = vld [vmem:[#allocation63_spill] sm:$0xff] }
 0x4a0   :  { %2092 = vmatpush1.bf16.msra.mxu1 %v4915_v29  ;;  %3427 = vmatpush3.bf16.msra.mxu0 %v4918_v32 }
 0x4a1   :  { %2093 = vmatprep.subr.bf16.mxu1 %v4921_v53  ;;  %3428 = vmatprep.subr.bf16.mxu0 %v5522_v17 }
 0x4a2   :  { %2123 = vmatprep.mubr.bf16.mxu1 %v5523_v11  ;;  %3442 = vmatprep.mubr.msk.bf16.mxu0 %vm4076_vm0, %v5522_v17 }
 0x4a3   :  { %v3794_v20 = vpop.eup %3793 }
 0x4a4   :  { %v1950_v21 = vmul.f32 %v3794_v20, %v1931_v3  ;;  %2094 = vmatpush1.bf16.msra.mxu1 %v4929_v38  ;;  %3429 = vmatpush3.bf16.msra.mxu0 %v4932_v61  ;;  %v3796_v57 = vpop.eup %3795 }
 0x4a5   :  { %2095 = vmatprep.subr.bf16.mxu1 %v4935_v22  ;;  %3430 = vmatprep.subr.bf16.mxu0 %v5522_v17  ;;  %v1953_v27 = vsub.f32 1.0, %v3796_v57  ;;  %v1955_v31 = vmul.f32 %v3796_v57, %v4993_v2 }
 0x4a6   :  { %v1951_v25 = vadd.f32 %v1950_v21, %v5564_v16  ;;  %v5577_v21 = vld [vmem:[#allocation49_spill] sm:$0xff] }
 0x4a8   :  { %3797 = vtanh.f32 %v1951_v25  ;;  %2096 = vmatpush1.bf16.msra.mxu1 %v4940_v51  ;;  %3431 = vmatpush3.bf16.msra.mxu0 %v4943_v58 }
 0x4a9   :  { %2097 = vmatprep.subr.bf16.mxu1 %v4946_v12  ;;  %3432 = vmatprep.subr.bf16.mxu0 %v5522_v17 }
 0x4ac   :  { %2098 = vmatpush1.bf16.msra.mxu1 %v4950_v60  ;;  %3433 = vmatpush3.bf16.msra.mxu0 %v4953_v4 }
 0x4ad   :  { %2099 = vmatprep.subr.bf16.mxu1 %v4956_v1  ;;  %3434 = vmatprep.subr.bf16.mxu0 %v5522_v17 }
 0x4b0   :  { %2100 = vmatpush1.bf16.msra.mxu1 %v4960_v40  ;;  %3435 = vmatpush3.bf16.msra.mxu0 %v4963_v63 }
 0x4b1   :  { %2101 = vmatprep.subr.bf16.mxu1 %v4966_v42  ;;  %3436 = vmatprep.subr.bf16.mxu0 %v5522_v17 }
 0x4b2   :  { %v3798_v28 = vpop.eup %3797 }
 0x4b3   :  { %v1954_v24 = vmul.f32 %v3798_v28, %v1953_v27 }
 0x4b4   :  { %2102 = vmatpush1.bf16.msra.mxu1 %v4971_v14  ;;  %3437 = vmatpush3.bf16.msra.mxu0 %v4974_v0 }
 0x4b5   :  { %v1956_v6 = vadd.f32 %v1955_v31, %v1954_v24  ;;  %2103 = vmatprep.subr.bf16.mxu1 %v4977_v18  ;;  %3438 = vmatprep.subr.bf16.mxu0 %v5522_v17  ;;  %v5578_v31 = vld [vmem:[#allocation34_spill] sm:$0xff] }
 0x4b7   :  { %v1970_v19 = vmul.f32 %v1968_v47, %v1956_v6  ;;  %v1976_v50 = vsub.f32 %v1956_v6, %v4993_v2 }
 0x4b8   :  { %2104 = vmatpush1.bf16.msra.mxu1 %v4982_v9  ;;  %3439 = vmatpush3.bf16.msra.mxu0 %v4985_v55 }
 0x4b9   :  { %1972 = vst [vmem:[#allocation8 + $0x48] sm:$0xff] %v1970_v19  ;;  %2105 = vmatprep.subr.bf16.mxu1 %v4988_v33  ;;  %3440 = vmatprep.subr.bf16.mxu0 %v5522_v17  ;;  %v1977_v43 = vmul.f32 %v1976_v50, %v1968_v47  ;;  %v5579_v50 = vld [vmem:[#allocation36_spill] sm:$0xff] }
 0x4bb   :  { %v5099_v37 = vadd.f32 %v1977_v43, %v4993_v2  ;;  %v5572_v2 = vld [vmem:[#allocation45_spill] sm:$0xff] }
 0x4bc   :  { %2106 = vmatpush1.bf16.msra.mxu1 %v4995_v26  ;;  %3441 = vmatpush3.bf16.msra.mxu0 %v4998_v5 }
 0x4bd   :  { %v2090_v8 = vpack.c.bf16 %v5099_v37, %v5099_v37  ;;  %2222 = vmatprep.subr.bf16.mxu1 %v4721_v59  ;;  %3446 = vmatprep.subr.bf16.mxu0 %v5522_v17  ;;  %v5565_v59 = vld [vmem:[#allocation15_spill] sm:$0xff] }
 0x4bf   :  { %2124 = vmatmul.mubr.bf16.vlgmr.msra.gmra.mrb[52].mxu1 %v2090_v8  ;;  %3443 = vmatmul.mubr.bf16.vlgmr.msra.gmra.mrb[68].mxu0 %v2090_v8 }
 0x4c0   :  { %2223 = vmatpush1.bf16.msra.mxu1 %v4725_v13  ;;  %3447 = vmatpush3.bf16.msra.mxu0 %v4834_v44  ;;  %v5566_v13 = vld [vmem:[#allocation19_spill] sm:$0xff] }
 0x4c1   :  { %2224 = vmatprep.subr.bf16.mxu1 %v4729_v7  ;;  %3448 = vmatprep.subr.bf16.mxu0 %v5522_v17  ;;  %v5567_v7 = vld [vmem:[#allocation16_spill] sm:$0xff] }
 0x4c2   :  { %2254 = vmatprep.mubr.bf16.mxu1 %v5523_v11  ;;  %3462 = vmatprep.mubr.msk.bf16.mxu0 %vm4076_vm0, %v5522_v17 }
 0x4c4   :  { %2225 = vmatpush1.bf16.msra.mxu1 %v4736_v10  ;;  %3449 = vmatpush3.bf16.msra.mxu0 %v4843_v45  ;;  %v5568_v10 = vld [vmem:[#allocation17_spill] sm:$0xff] }
 0x4c5   :  { %2226 = vmatprep.subr.bf16.mxu1 %v4740_v52  ;;  %3450 = vmatprep.subr.bf16.mxu0 %v5522_v17  ;;  %v5569_v52 = vld [vmem:[#allocation66_spill] sm:$0xff] }
 0x4c8   :  { %2227 = vmatpush1.bf16.msra.mxu1 %v4744_v15  ;;  %3451 = vmatpush3.bf16.msra.mxu0 %v4849_v49  ;;  %v5570_v15 = vld [vmem:[#allocation20_spill] sm:$0xff] }
 0x4c9   :  { %2228 = vmatprep.subr.bf16.mxu1 %v4748_v46  ;;  %3452 = vmatprep.subr.bf16.mxu0 %v5522_v17  ;;  %v5571_v46 = vld [vmem:[#allocation18_spill] sm:$0xff] }
 0x4cc   :  { %2229 = vmatpush1.bf16.msra.mxu1 %v4854_v36  ;;  %3453 = vmatpush3.bf16.msra.mxu0 %v4857_v56 }
 0x4cd   :  { %2230 = vmatprep.subr.bf16.mxu1 %v4860_v39  ;;  %3454 = vmatprep.subr.bf16.mxu0 %v5522_v17 }
 0x4d0   :  { %2231 = vmatpush1.bf16.msra.mxu1 %v5565_v59  ;;  %3455 = vmatpush3.bf16.msra.mxu0 %v5566_v13 }
 0x4d1   :  { %2232 = vmatprep.subr.bf16.mxu1 %v5567_v7  ;;  %3456 = vmatprep.subr.bf16.mxu0 %v5522_v17 }
 0x4d4   :  { %2233 = vmatpush1.bf16.msra.mxu1 %v5568_v10  ;;  %3457 = vmatpush3.bf16.msra.mxu0 %v5569_v52 }
 0x4d5   :  { %2234 = vmatprep.subr.bf16.mxu1 %v5570_v15  ;;  %3458 = vmatprep.subr.bf16.mxu0 %v5522_v17 }
 0x4d8   :  { %2235 = vmatpush1.bf16.msra.mxu1 %v5571_v46  ;;  %3459 = vmatpush3.bf16.msra.mxu0 %v5572_v2 }
 0x4d9   :  { %2236 = vmatprep.subr.bf16.mxu1 %v5573_v35  ;;  %3460 = vmatprep.subr.bf16.mxu0 %v5522_v17 }
 0x4dc   :  { %2237 = vmatpush1.bf16.msra.mxu1 %v5574_v23  ;;  %3461 = vmatpush3.bf16.msra.mxu0 %v5575_v34 }
 0x4dd   :  { %2325 = vmatprep.subr.bf16.mxu1 %v5576_v54  ;;  %3466 = vmatprep.subr.bf16.mxu0 %v5522_v17 }
 0x572   :  { %v2022_v3 = vpop.f32.mrb[48].mxu1  ;;  %v2063_v20 = vpop.f32.mrb[64].mxu0 }
 0x573   :  { %v2023_v16 = vadd.f32 %v2022_v3, %v5577_v21  ;;  %v2024_v25 = vpop.f32.mrb[49].mxu1  ;;  %v3424_v57 = vpop.f32.mrb[65].mxu0 }
 0x574   :  { %v2025_v27 = vadd.f32 %v2024_v25, %v5531_v30  ;;  %v2026_v28 = vpop.f32.mrb[50].mxu1  ;;  %v2066_v24 = vpop.f32.mrb[66].mxu0  ;;  %v5580_v57 = vld [vmem:[#allocation65_spill] sm:$0xff] }
 0x575   :  { %v2069_v6 = vadd.f32 %v2023_v16, %v5578_v31  ;;  %v2027_v47 = vpop.f32.mrb[51].mxu1  ;;  %v3425_v19 = vpop.f32.mrb[67].mxu0  ;;  %v2064_v35 = vadd.f32 %v2063_v20, %v5580_v57  ;;  %v5581_v31 = vld [vmem:[#allocation35_spill] sm:$0xff]  ;;  %v5584_v57 = vld [vmem:[#allocation57_spill] sm:$0xff] }
 0x576   :  { %v2076_v43 = vadd.f32 %v2025_v27, %v5579_v50  ;;  %v5582_v50 = vld [vmem:[#allocation67_spill] sm:$0xff] }
 0x577   :  { %v3081_v8 = vmul.f32 -1.442695, %v2069_v6 }
 0x578   :  { %v3082_v54 = vmul.f32 -1.442695, %v2076_v43 }
 0x579   :  { %3799 = vpow2.f32 %v3081_v8 }
 0x57a   :  { %3801 = vpow2.f32 %v3082_v54 }
 0x583   :  { %v3800_v34 = vpop.eup %3799 }
 0x584   :  { %v2073_v23 = vadd.f32 1.0, %v3800_v34  ;;  %v3802_v3 = vpop.eup %3801 }
 0x585   :  { %v2080_v21 = vadd.f32 1.0, %v3802_v3 }
 0x586   :  { %3803 = vrcp.f32 %v2073_v23  ;;  %v5583_v23 = vld [vmem:[#allocation33_spill] sm:$0xff] }
 0x587   :  { %3805 = vrcp.f32 %v2080_v21 }
 0x590   :  { %v3804_v25 = vpop.eup %3803 }
 0x591   :  { %v2083_v28 = vmul.f32 %v3804_v25, %v2064_v35  ;;  %v3806_v25 = vpop.eup %3805 }
 0x592   :  { %v2125_v24 = vpop.f32.mrb[52].mxu1  ;;  %v2166_v16 = vpop.f32.mrb[68].mxu0 }
 0x593   :  { %v2084_v47 = vadd.f32 %v2083_v28, %v5581_v31  ;;  %v2126_v27 = vadd.f32 %v2125_v24, %v5536_v62  ;;  %v2127_v6 = vpop.f32.mrb[53].mxu1  ;;  %v3444_v19 = vpop.f32.mrb[69].mxu0  ;;  %v2086_v28 = vsub.f32 1.0, %v3806_v25 }
 0x594   :  { %v2128_v54 = vadd.f32 %v2127_v6, %v5582_v50  ;;  %v2129_v43 = vpop.f32.mrb[54].mxu1  ;;  %v2169_v34 = vpop.f32.mrb[70].mxu0  ;;  %v2088_v19 = vmul.f32 %v3806_v25, %v5059_v41 }
 0x595   :  { %3807 = vtanh.f32 %v2084_v47  ;;  %v2172_v8 = vadd.f32 %v2126_v27, %v5583_v23  ;;  %v2130_v3 = vpop.f32.mrb[55].mxu1  ;;  %v3445_v20 = vpop.f32.mrb[71].mxu0 }
 0x596   :  { %v2179_v35 = vadd.f32 %v2128_v54, %v5584_v57  ;;  %v2196_v34 = vpop.permute.xlu0 %2195  ;;  %v5585_v20 = vld [vmem:[#allocation58_spill] sm:$0xff] }
 0x597   :  { %v3083_v21 = vmul.f32 -1.442695, %v2172_v8 }
 0x598   :  { %v3084_v30 = vmul.f32 -1.442695, %v2179_v35 }
 0x599   :  { %3809 = vpow2.f32 %v3083_v21 }
 0x59a   :  { %3811 = vpow2.f32 %v3084_v30 }
 0x59f   :  { %v3808_v31 = vpop.eup %3807 }
 0x5a0   :  { %v2087_v24 = vmul.f32 %v3808_v31, %v2086_v28 }
 0x5a2   :  { %v2089_v6 = vadd.f32 %v2088_v19, %v2087_v24  ;;  %v2203_v19 = vpop.permute.xlu1 %2202 }
 0x5a3   :  { %v3810_v43 = vpop.eup %3809 }
 0x5a4   :  { %v2198_v47 = vmul.f32 %v2196_v34, %v2089_v6  ;;  %v2176_v50 = vadd.f32 1.0, %v3810_v43  ;;  %v2207_v27 = vsub.f32 %v2089_v6, %v5059_v41  ;;  %v3812_v23 = vpop.eup %3811 }
 0x5a5   :  { %v2183_v30 = vadd.f32 1.0, %v3812_v23  ;;  %v5205_v23 = vld [vmem:[#allocation6] ss:$12 sps:$4 sm:$0xff]  }
 0x5a6   :  { %2199 = vst [vmem:[#allocation8 + $0x40] sm:$0xff] %v2198_v47  ;;  %3813 = vrcp.f32 %v2176_v50  ;;  %v2208_v57 = vmul.f32 %v2207_v27, %v2196_v34  ;;  %v2167_v50 = vadd.f32 %v2166_v16, %v4682_v48 }
 0x5a7   :  { %3815 = vrcp.f32 %v2183_v30  ;;  %v5220_v30 = vld [vmem:[#allocation6 + $0x34] ss:$12 sps:$4 sm:$0xff]  }
 0x5a8   :  { %v5155_v54 = vadd.f32 %v2208_v57, %v5059_v41  ;;  %v5201_v57 = vld [vmem:[#allocation6 + $0x4] ss:$12 sps:$4 sm:$0xff]  }
 0x5aa   :  { %v2221_v8 = vpack.c.bf16 %v5155_v54, %v5155_v54 }
 0x5ac   :  { %2255 = vmatmul.mubr.bf16.vlgmr.msra.gmra.mrb[56].mxu1 %v2221_v8  ;;  %3463 = vmatmul.mubr.bf16.vlgmr.msra.gmra.mrb[72].mxu0 %v2221_v8  ;;  %v5216_v8 = vld [vmem:[#allocation6 + $0x18] ss:$12 sps:$4 sm:$0xff]  }
 0x5ad   :  { %2326 = vmatpush1.bf16.msra.mxu1 %v4915_v29  ;;  %3467 = vmatpush3.bf16.msra.mxu0 %v4918_v32 }
 0x5ae   :  { %2327 = vmatprep.subr.bf16.mxu1 %v4921_v53  ;;  %3468 = vmatprep.subr.bf16.mxu0 %v5522_v17 }
 0x5af   :  { %2357 = vmatprep.mubr.bf16.mxu1 %v5523_v11  ;;  %3482 = vmatprep.mubr.msk.bf16.mxu0 %vm4076_vm0, %v5522_v17 }
 0x5b0   :  { %v3814_v41 = vpop.eup %3813 }
 0x5b1   :  { %v2186_v3 = vmul.f32 %v3814_v41, %v2167_v50  ;;  %2328 = vmatpush1.bf16.msra.mxu1 %v4929_v38  ;;  %3469 = vmatpush3.bf16.msra.mxu0 %v4932_v61  ;;  %v3816_v16 = vpop.eup %3815  ;;  %v5228_v50 = vld [vmem:[#allocation6 + $0x4c] ss:$12 sps:$4 sm:$0xff]  }
 0x5b2   :  { %2329 = vmatprep.subr.bf16.mxu1 %v4935_v22  ;;  %3470 = vmatprep.subr.bf16.mxu0 %v5522_v17  ;;  %v2189_v21 = vsub.f32 1.0, %v3816_v16  ;;  %v2191_v31 = vmul.f32 %v3816_v16, %v5099_v37 }
 0x5b3   :  { %v2187_v35 = vadd.f32 %v2186_v3, %v5585_v20 }
 0x5b5   :  { %3817 = vtanh.f32 %v2187_v35  ;;  %2330 = vmatpush1.bf16.msra.mxu1 %v4940_v51  ;;  %3471 = vmatpush3.bf16.msra.mxu0 %v4943_v58  ;;  %v5592_v35 = vld [vmem:[#allocation38_spill] sm:$0xff] }
 0x5b6   :  { %2331 = vmatprep.subr.bf16.mxu1 %v4946_v12  ;;  %3472 = vmatprep.subr.bf16.mxu0 %v5522_v17 }
 0x5b9   :  { %2332 = vmatpush1.bf16.msra.mxu1 %v4950_v60  ;;  %3473 = vmatpush3.bf16.msra.mxu0 %v4953_v4 }
 0x5ba   :  { %2333 = vmatprep.subr.bf16.mxu1 %v4956_v1  ;;  %3474 = vmatprep.subr.bf16.mxu0 %v5522_v17 }
 0x5bd   :  { %2334 = vmatpush1.bf16.msra.mxu1 %v4960_v40  ;;  %3475 = vmatpush3.bf16.msra.mxu0 %v4963_v63 }
 0x5be   :  { %2335 = vmatprep.subr.bf16.mxu1 %v4966_v42  ;;  %3476 = vmatprep.subr.bf16.mxu0 %v5522_v17 }
 0x5bf   :  { %v3818_v25 = vpop.eup %3817 }
 0x5c0   :  { %v2190_v28 = vmul.f32 %v3818_v25, %v2189_v21 }
 0x5c1   :  { %2336 = vmatpush1.bf16.msra.mxu1 %v4971_v14  ;;  %3477 = vmatpush3.bf16.msra.mxu0 %v4974_v0 }
 0x5c2   :  { %v2192_v24 = vadd.f32 %v2191_v31, %v2190_v28  ;;  %2337 = vmatprep.subr.bf16.mxu1 %v4977_v18  ;;  %3478 = vmatprep.subr.bf16.mxu0 %v5522_v17  ;;  %v5593_v28 = vld [vmem:[#allocation40_spill] sm:$0xff] }
 0x5c4   :  { %v2205_v6 = vmul.f32 %v2203_v19, %v2192_v24  ;;  %v2210_v43 = vsub.f32 %v2192_v24, %v5099_v37 }
 0x5c5   :  { %2338 = vmatpush1.bf16.msra.mxu1 %v4982_v9  ;;  %3479 = vmatpush3.bf16.msra.mxu0 %v4985_v55 }
 0x5c6   :  { %2206 = vst [vmem:[#allocation8 + $0x38] sm:$0xff] %v2205_v6  ;;  %2339 = vmatprep.subr.bf16.mxu1 %v4988_v33  ;;  %3480 = vmatprep.subr.bf16.mxu0 %v5522_v17  ;;  %v2211_v34 = vmul.f32 %v2210_v43, %v2203_v19 }
 0x5c8   :  { %v5195_v47 = vadd.f32 %v2211_v34, %v5099_v37  ;;  %v5209_v37 = vld [vmem:[#allocation6 + $0x1c] ss:$12 sps:$4 sm:$0xff]  }
 0x5c9   :  { %2340 = vmatpush1.bf16.msra.mxu1 %v4995_v26  ;;  %3481 = vmatpush3.bf16.msra.mxu0 %v4998_v5 }
 0x5ca   :  { %v2324_v27 = vpack.c.bf16 %v5195_v47, %v5195_v47  ;;  %2456 = vmatprep.subr.bf16.mxu1 %v5201_v57  ;;  %3486 = vmatprep.subr.bf16.mxu0 %v5522_v17 }
 0x5cc   :  { %2358 = vmatmul.mubr.bf16.vlgmr.msra.gmra.mrb[60].mxu1 %v2324_v27  ;;  %3483 = vmatmul.mubr.bf16.vlgmr.msra.gmra.mrb[76].mxu0 %v2324_v27 }
 0x5cd   :  { %2457 = vmatpush1.bf16.msra.mxu1 %v5205_v23  ;;  %3487 = vmatpush3.bf16.msra.mxu0 %v4834_v44  ;;  %v5224_v44 = vld [vmem:[#allocation6 + $0x30] ss:$12 sps:$4 sm:$0xff]  }
 0x5ce   :  { %2458 = vmatprep.subr.bf16.mxu1 %v5209_v37  ;;  %3488 = vmatprep.subr.bf16.mxu0 %v5522_v17 }
 0x5cf   :  { %2488 = vmatprep.mubr.bf16.mxu1 %v5523_v11  ;;  %3502 = vmatprep.mubr.msk.bf16.mxu0 %vm4076_vm0, %v5522_v17 }
 0x5d1   :  { %2459 = vmatpush1.bf16.msra.mxu1 %v5216_v8  ;;  %3489 = vmatpush3.bf16.msra.mxu0 %v4843_v45  ;;  %v5586_v45 = vld [vmem:[#allocation22_spill] sm:$0xff] }
 0x5d2   :  { %2460 = vmatprep.subr.bf16.mxu1 %v5220_v30  ;;  %3490 = vmatprep.subr.bf16.mxu0 %v5522_v17 }
 0x5d5   :  { %2461 = vmatpush1.bf16.msra.mxu1 %v5224_v44  ;;  %3491 = vmatpush3.bf16.msra.mxu0 %v4849_v49  ;;  %v5587_v49 = vld [vmem:[#allocation24_spill] sm:$0xff] }
 0x5d6   :  { %2462 = vmatprep.subr.bf16.mxu1 %v5228_v50  ;;  %3492 = vmatprep.subr.bf16.mxu0 %v5522_v17 }
 0x5d9   :  { %2463 = vmatpush1.bf16.msra.mxu1 %v4854_v36  ;;  %3493 = vmatpush3.bf16.msra.mxu0 %v4857_v56  ;;  %v5588_v36 = vld [vmem:[#allocation63_spill] sm:$0xff] }
 0x5da   :  { %2464 = vmatprep.subr.bf16.mxu1 %v4860_v39  ;;  %3494 = vmatprep.subr.bf16.mxu0 %v5522_v17  ;;  %v5589_v56 = vld [vmem:[#allocation23_spill] sm:$0xff] }
 0x5dd   :  { %2465 = vmatpush1.bf16.msra.mxu1 %v5565_v59  ;;  %3495 = vmatpush3.bf16.msra.mxu0 %v5566_v13  ;;  %v5590_v13 = vld [vmem:[#allocation49_spill] sm:$0xff] }
 0x5de   :  { %2466 = vmatprep.subr.bf16.mxu1 %v5567_v7  ;;  %3496 = vmatprep.subr.bf16.mxu0 %v5522_v17 }
 0x5e1   :  { %2467 = vmatpush1.bf16.msra.mxu1 %v5568_v10  ;;  %3497 = vmatpush3.bf16.msra.mxu0 %v5569_v52 }
 0x5e2   :  { %2468 = vmatprep.subr.bf16.mxu1 %v5570_v15  ;;  %3498 = vmatprep.subr.bf16.mxu0 %v5522_v17 }
 0x5e5   :  { %2469 = vmatpush1.bf16.msra.mxu1 %v5571_v46  ;;  %3499 = vmatpush3.bf16.msra.mxu0 %v5572_v2  ;;  %v5591_v46 = vld [vmem:[#allocation50_spill] sm:$0xff] }
 0x5e6   :  { %2470 = vmatprep.subr.bf16.mxu1 %v5586_v45  ;;  %3500 = vmatprep.subr.bf16.mxu0 %v5522_v17  ;;  %v5594_v45 = vld [vmem:[#allocation65_spill] sm:$0xff] }
 0x5e9   :  { %2471 = vmatpush1.bf16.msra.mxu1 %v5587_v49  ;;  %3501 = vmatpush3.bf16.msra.mxu0 %v5588_v36 }
 0x5ea   :  { %2559 = vmatprep.subr.bf16.mxu1 %v5589_v56  ;;  %3506 = vmatprep.subr.bf16.mxu0 %v5522_v17 }
 0x67f   :  { %v2256_v39 = vpop.f32.mrb[56].mxu1  ;;  %v2297_v59 = vpop.f32.mrb[72].mxu0 }
 0x680   :  { %v2257_v7 = vadd.f32 %v2256_v39, %v5590_v13  ;;  %v2258_v10 = vpop.f32.mrb[57].mxu1  ;;  %v3464_v15 = vpop.f32.mrb[73].mxu0  ;;  %v2298_v49 = vadd.f32 %v2297_v59, %v5594_v45 }
 0x681   :  { %v2259_v41 = vadd.f32 %v2258_v10, %v5591_v46  ;;  %v2260_v3 = vpop.f32.mrb[58].mxu1  ;;  %v2300_v20 = vpop.f32.mrb[74].mxu0  ;;  %v5595_v15 = vld [vmem:[#allocation39_spill] sm:$0xff] }
 0x682   :  { %v2303_v16 = vadd.f32 %v2257_v7, %v5592_v35  ;;  %v2261_v21 = vpop.f32.mrb[59].mxu1  ;;  %v3465_v25 = vpop.f32.mrb[75].mxu0 }
 0x683   :  { %v2310_v31 = vadd.f32 %v2259_v41, %v5593_v28 }
 0x684   :  { %v3087_v24 = vmul.f32 -1.442695, %v2303_v16  ;;  %v5596_v16 = vld [vmem:[#allocation67_spill] sm:$0xff] }
 0x685   :  { %v3088_v19 = vmul.f32 -1.442695, %v2310_v31  ;;  %v5597_v31 = vld [vmem:[#allocation29_spill] sm:$0xff] }
 0x686   :  { %3819 = vpow2.f32 %v3087_v24 }
 0x687   :  { %3821 = vpow2.f32 %v3088_v19 }
 0x690   :  { %v3820_v6 = vpop.eup %3819 }
 0x691   :  { %v2307_v43 = vadd.f32 1.0, %v3820_v6  ;;  %v3822_v34 = vpop.eup %3821  ;;  %v5598_v6 = vld [vmem:[#allocation55_spill] sm:$0xff] }
 0x692   :  { %v2314_v27 = vadd.f32 1.0, %v3822_v34 }
 0x693   :  { %3823 = vrcp.f32 %v2307_v43 }
 0x694   :  { %3825 = vrcp.f32 %v2314_v27 }
 0x69d   :  { %v3824_v56 = vpop.eup %3823 }
 0x69e   :  { %v2317_v39 = vmul.f32 %v3824_v56, %v2298_v49  ;;  %v3826_v27 = vpop.eup %3825 }
 0x69f   :  { %v2359_v10 = vpop.f32.mrb[60].mxu1  ;;  %v2400_v7 = vpop.f32.mrb[76].mxu0  ;;  %v2320_v56 = vsub.f32 1.0, %v3826_v27 }
 0x6a0   :  { %v2318_v3 = vadd.f32 %v2317_v39, %v5595_v15  ;;  %v2360_v41 = vadd.f32 %v2359_v10, %v5536_v62  ;;  %v2361_v20 = vpop.f32.mrb[61].mxu1  ;;  %v3484_v35 = vpop.f32.mrb[77].mxu0  ;;  %v2322_v15 = vmul.f32 %v3826_v27, %v5155_v54 }
 0x6a1   :  { %v2362_v21 = vadd.f32 %v2361_v20, %v5596_v16  ;;  %v2363_v25 = vpop.f32.mrb[62].mxu1  ;;  %v2403_v28 = vpop.f32.mrb[78].mxu0 }
 0x6a2   :  { %3827 = vtanh.f32 %v2318_v3  ;;  %v2406_v24 = vadd.f32 %v2360_v41, %v5597_v31  ;;  %v2364_v19 = vpop.f32.mrb[63].mxu1  ;;  %v3485_v59 = vpop.f32.mrb[79].mxu0 }
 0x6a3   :  { %v2413_v43 = vadd.f32 %v2362_v21, %v5598_v6  ;;  %v2430_v25 = vpop.permute.xlu0 %2429  ;;  %v2401_v6 = vadd.f32 %v2400_v7, %v4682_v48 }
 0x6a4   :  { %v3089_v34 = vmul.f32 -1.442695, %v2406_v24 }
 0x6a5   :  { %v3090_v49 = vmul.f32 -1.442695, %v2413_v43 }
 0x6a6   :  { %3829 = vpow2.f32 %v3089_v34 }
 0x6a7   :  { %3831 = vpow2.f32 %v3090_v49 }
 0x6ac   :  { %v3828_v39 = vpop.eup %3827 }
 0x6ad   :  { %v2321_v10 = vmul.f32 %v3828_v39, %v2320_v56  ;;  %v5600_v56 = vld [vmem:[#allocation42_spill] sm:$0xff] }
 0x6af   :  { %v2323_v20 = vadd.f32 %v2322_v15, %v2321_v10 }
 0x6b0   :  { %v3830_v35 = vpop.eup %3829 }
 0x6b1   :  { %v2432_v3 = vmul.f32 %v2430_v25, %v2323_v20  ;;  %v2410_v28 = vadd.f32 1.0, %v3830_v35  ;;  %v2441_v41 = vsub.f32 %v2323_v20, %v5155_v54  ;;  %v3832_v24 = vpop.eup %3831  ;;  %v5601_v20 = vld [vmem:[#allocation44_spill] sm:$0xff] }
 0x6b2   :  { %v2417_v59 = vadd.f32 1.0, %v3832_v24 }
 0x6b3   :  { %2433 = vst [vmem:[#allocation8 + $0x50] sm:$0xff] %v2432_v3  ;;  %3833 = vrcp.f32 %v2410_v28  ;;  %v2442_v21 = vmul.f32 %v2441_v41, %v2430_v25 }
 0x6b4   :  { %3835 = vrcp.f32 %v2417_v59 }
 0x6b5   :  { %v5265_v31 = vadd.f32 %v2442_v21, %v5155_v54 }
 0x6b7   :  { %v2455_v19 = vpack.c.bf16 %v5265_v31, %v5265_v31 }
 0x6b9   :  { %2489 = vmatmul.mubr.bf16.vlgmr.msra.gmra.mrb[64].mxu1 %v2455_v19  ;;  %3503 = vmatmul.mubr.bf16.vlgmr.msra.gmra.mrb[80].mxu0 %v2455_v19 }
 0x6ba   :  { %2560 = vmatpush1.bf16.msra.mxu1 %v4915_v29  ;;  %3507 = vmatpush3.bf16.msra.mxu0 %v4918_v32  ;;  %v5599_v29 = vld [vmem:[#allocation56_spill] sm:$0xff] }
 0x6bb   :  { %2561 = vmatprep.subr.bf16.mxu1 %v4921_v53  ;;  %3508 = vmatprep.subr.bf16.mxu0 %v5522_v17 }
 0x6bc   :  { %2591 = vmatprep.mubr.bf16.mxu1 %v5523_v11  ;;  %3522 = vmatprep.mubr.msk.bf16.mxu0 %vm4076_vm0, %v5522_v17 }
 0x6bd   :  { %v3834_v54 = vpop.eup %3833 }
 0x6be   :  { %v2420_v43 = vmul.f32 %v3834_v54, %v2401_v6  ;;  %2562 = vmatpush1.bf16.msra.mxu1 %v4929_v38  ;;  %3509 = vmatpush3.bf16.msra.mxu0 %v4932_v61  ;;  %v3836_v53 = vpop.eup %3835 }
 0x6bf   :  { %2563 = vmatprep.subr.bf16.mxu1 %v4935_v22  ;;  %3510 = vmatprep.subr.bf16.mxu0 %v5522_v17  ;;  %v2423_v38 = vsub.f32 1.0, %v3836_v53 }
 0x6c0   :  { %v2421_v32 = vadd.f32 %v2420_v43, %v5599_v29  ;;  %v5602_v43 = vld [vmem:[#allocation43_spill] sm:$0xff] }
 0x6c2   :  { %3837 = vtanh.f32 %v2421_v32  ;;  %2564 = vmatpush1.bf16.msra.mxu1 %v4940_v51  ;;  %3511 = vmatpush3.bf16.msra.mxu0 %v4943_v58  ;;  %v2425_v51 = vmul.f32 %v3836_v53, %v5195_v47 }
 0x6c3   :  { %2565 = vmatprep.subr.bf16.mxu1 %v4946_v12  ;;  %3512 = vmatprep.subr.bf16.mxu0 %v5522_v17  ;;  %v2437_v12 = vpop.permute.xlu1 %2436 }
 0x6c6   :  { %2566 = vmatpush1.bf16.msra.mxu1 %v4950_v60  ;;  %3513 = vmatpush3.bf16.msra.mxu0 %v4953_v4 }
 0x6c7   :  { %2567 = vmatprep.subr.bf16.mxu1 %v4956_v1  ;;  %3514 = vmatprep.subr.bf16.mxu0 %v5522_v17 }
 0x6ca   :  { %2568 = vmatpush1.bf16.msra.mxu1 %v4960_v40  ;;  %3515 = vmatpush3.bf16.msra.mxu0 %v4963_v63 }
 0x6cb   :  { %2569 = vmatprep.subr.bf16.mxu1 %v4966_v42  ;;  %3516 = vmatprep.subr.bf16.mxu0 %v5522_v17  ;;  %v3934_v42 = vld [vmem:[#allocation6 + $0x8] ss:$12 sps:$4 sm:$0xff]  }
 0x6cc   :  { %v3838_v61 = vpop.eup %3837 }
 0x6cd   :  { %v2424_v22 = vmul.f32 %v3838_v61, %v2423_v38 }
 0x6ce   :  { %2570 = vmatpush1.bf16.msra.mxu1 %v4971_v14  ;;  %3517 = vmatpush3.bf16.msra.mxu0 %v4974_v0  ;;  %v3935_v14 = vld [vmem:[#allocation6 + $0x20] ss:$12 sps:$4 sm:$0xff]   ;;  %v3936_v0 = vld [vmem:[#allocation6 + $0x38] ss:$12 sps:$4 sm:$0xff]  }
 0x6cf   :  { %v2426_v58 = vadd.f32 %v2425_v51, %v2424_v22  ;;  %2571 = vmatprep.subr.bf16.mxu1 %v4977_v18  ;;  %3518 = vmatprep.subr.bf16.mxu0 %v5522_v17  ;;  %v3937_v18 = vld [vmem:[#allocation6 + $0x48] ss:$12 sps:$4 sm:$0xff]  }
 0x6d1   :  { %v2439_v60 = vmul.f32 %v2437_v12, %v2426_v58  ;;  %v2444_v4 = vsub.f32 %v2426_v58, %v5195_v47  ;;  %v5603_v58 = vld [vmem:[#allocation25_spill] sm:$0xff] }
 0x6d2   :  { %2572 = vmatpush1.bf16.msra.mxu1 %v4982_v9  ;;  %3519 = vmatpush3.bf16.msra.mxu0 %v4985_v55  ;;  %v3938_v9 = vld [vmem:[#allocation6 + $0x50] ss:$12 sps:$4 sm:$0xff]  }
 0x6d3   :  { %2440 = vst [vmem:[#allocation8 + $0x28] sm:$0xff] %v2439_v60  ;;  %2573 = vmatprep.subr.bf16.mxu1 %v4988_v33  ;;  %3520 = vmatprep.subr.bf16.mxu0 %v5522_v17  ;;  %v2445_v1 = vmul.f32 %v2444_v4, %v2437_v12  ;;  %v3939_v55 = vld [vmem:[#allocation6 + $0x64] ss:$12 sps:$4 sm:$0xff]   ;;  %v3940_v33 = vld [vmem:[#allocation6 + $0x60] ss:$12 sps:$4 sm:$0xff]  }
 0x6d5   :  { %v5305_v40 = vadd.f32 %v2445_v1, %v5195_v47  ;;  %v3943_v47 = vld [vmem:[#allocation6 + $0x78] ss:$12 sps:$4 sm:$0xff]  }
 0x6d6   :  { %2574 = vmatpush1.bf16.msra.mxu1 %v4995_v26  ;;  %3521 = vmatpush3.bf16.msra.mxu0 %v4998_v5  ;;  %v3941_v26 = vld [vmem:[#allocation6 + $0x68] ss:$12 sps:$4 sm:$0xff]   ;;  %v5604_v1 = vld [vmem:[#allocation53_spill] sm:$0xff] }
 0x6d7   :  { %v2558_v63 = vpack.c.bf16 %v5305_v40, %v5305_v40  ;;  %2690 = vmatprep.subr.bf16.mxu1 %v5201_v57  ;;  %3526 = vmatprep.subr.bf16.mxu0 %v5522_v17  ;;  %v3942_v5 = vld [vmem:[#allocation6 + $0x7c] ss:$12 sps:$4 sm:$0xff]   ;;  %v3944_v57 = vld [vmem:[#allocation6 + $0x94] ss:$12 sps:$4 sm:$0xff]  }
 0x6d9   :  { %2592 = vmatmul.mubr.bf16.vlgmr.msra.gmra.mrb[68].mxu1 %v2558_v63  ;;  %3523 = vmatmul.mubr.bf16.vlgmr.msra.gmra.mrb[84].mxu0 %v2558_v63 }
 0x6da   :  { %2691 = vmatpush1.bf16.msra.mxu1 %v5205_v23  ;;  %3527 = vmatpush3.bf16.msra.mxu0 %v3934_v42  ;;  %v3945_v23 = vld [vmem:[#allocation6 + $0x90] ss:$12 sps:$4 sm:$0xff]  }
 0x6db   :  { %2692 = vmatprep.subr.bf16.mxu1 %v5209_v37  ;;  %3528 = vmatprep.subr.bf16.mxu0 %v5522_v17  ;;  %v3946_v37 = vld [vmem:[#allocation6 + $0xac] ss:$12 sps:$4 sm:$0xff]  }
 0x6dc   :  { %2722 = vmatprep.mubr.bf16.mxu1 %v5523_v11  ;;  %3542 = vmatprep.mubr.msk.bf16.mxu0 %vm4076_vm0, %v5522_v17 }
 0x6de   :  { %2693 = vmatpush1.bf16.msra.mxu1 %v5216_v8  ;;  %3529 = vmatpush3.bf16.msra.mxu0 %v3935_v14  ;;  %v3947_v8 = vld [vmem:[#allocation6 + $0xa8] ss:$12 sps:$4 sm:$0xff]  }
 0x6df   :  { %2694 = vmatprep.subr.bf16.mxu1 %v5220_v30  ;;  %3530 = vmatprep.subr.bf16.mxu0 %v5522_v17  ;;  %v3948_v30 = vld [vmem:[#allocation6 + $0xc4] ss:$12 sps:$4 sm:$0xff]  }
 0x6e2   :  { %2695 = vmatpush1.bf16.msra.mxu1 %v5224_v44  ;;  %3531 = vmatpush3.bf16.msra.mxu0 %v3936_v0 }
 0x6e3   :  { %2696 = vmatprep.subr.bf16.mxu1 %v5228_v50  ;;  %3532 = vmatprep.subr.bf16.mxu0 %v5522_v17 }
 0x6e6   :  { %2697 = vmatpush1.bf16.msra.mxu1 %v3937_v18  ;;  %3533 = vmatpush3.bf16.msra.mxu0 %v3938_v9 }
 0x6e7   :  { %2698 = vmatprep.subr.bf16.mxu1 %v3939_v55  ;;  %3534 = vmatprep.subr.bf16.mxu0 %v5522_v17 }
 0x6ea   :  { %2699 = vmatpush1.bf16.msra.mxu1 %v3940_v33  ;;  %3535 = vmatpush3.bf16.msra.mxu0 %v3941_v26 }
 0x6eb   :  { %2700 = vmatprep.subr.bf16.mxu1 %v3942_v5  ;;  %3536 = vmatprep.subr.bf16.mxu0 %v5522_v17 }
 0x6ee   :  { %2701 = vmatpush1.bf16.msra.mxu1 %v3943_v47  ;;  %3537 = vmatpush3.bf16.msra.mxu0 %v5569_v52  ;;  %v2664_v47 = vpop.permute.xlu0 %2663 }
 0x6ef   :  { %2702 = vmatprep.subr.bf16.mxu1 %v3944_v57  ;;  %3538 = vmatprep.subr.bf16.mxu0 %v5522_v17 }
 0x6f2   :  { %2703 = vmatpush1.bf16.msra.mxu1 %v3945_v23  ;;  %3539 = vmatpush3.bf16.msra.mxu0 %v5572_v2 }
 0x6f3   :  { %2704 = vmatprep.subr.bf16.mxu1 %v3946_v37  ;;  %3540 = vmatprep.subr.bf16.mxu0 %v5522_v17 }
 0x6f6   :  { %2705 = vmatpush1.bf16.msra.mxu1 %v3947_v8  ;;  %3541 = vmatpush3.bf16.msra.mxu0 %v5588_v36 }
 0x6f7   :  { %2793 = vmatprep.subr.bf16.mxu1 %v3948_v30  ;;  %3546 = vmatprep.subr.bf16.mxu0 %v5522_v17 }
 0x78c   :  { %v2490_v52 = vpop.f32.mrb[64].mxu1  ;;  %v2531_v44 = vpop.f32.mrb[80].mxu0 }
 0x78d   :  { %v2491_v50 = vadd.f32 %v2490_v52, %v5590_v13  ;;  %v2492_v7 = vpop.f32.mrb[65].mxu1  ;;  %v3504_v34 = vpop.f32.mrb[81].mxu0  ;;  %v2532_v24 = vadd.f32 %v2531_v44, %v5594_v45 }
 0x78e   :  { %v2493_v2 = vadd.f32 %v2492_v7, %v5591_v46  ;;  %v2494_v27 = vpop.f32.mrb[66].mxu1  ;;  %v2534_v49 = vpop.f32.mrb[82].mxu0  ;;  %v3949_v7 = vld [vmem:[#allocation6 + $0xc0] ss:$12 sps:$4 sm:$0xff]   ;;  %v3950_v34 = vld [vmem:[#allocation6 + $0xc8] ss:$12 sps:$4 sm:$0xff]  }
 0x78f   :  { %v2537_v39 = vadd.f32 %v2491_v50, %v5600_v56  ;;  %v2495_v10 = vpop.f32.mrb[67].mxu1  ;;  %v3505_v15 = vpop.f32.mrb[83].mxu0  ;;  %v3952_v56 = vld [vmem:[#allocation6 + $0xd8] ss:$12 sps:$4 sm:$0xff]  }
 0x790   :  { %v2544_v36 = vadd.f32 %v2493_v2, %v5601_v20  ;;  %v3951_v2 = vld [vmem:[#allocation6 + $0xdc] ss:$12 sps:$4 sm:$0xff]   ;;  %v3954_v10 = vld [vmem:[#allocation6 + $0xf4] ss:$12 sps:$4 sm:$0xff]  }
 0x791   :  { %v3093_v35 = vmul.f32 -1.442695, %v2537_v39  ;;  %v3953_v39 = vld [vmem:[#allocation6 + $0xe0] ss:$12 sps:$4 sm:$0xff]  }
 0x792   :  { %v3094_v25 = vmul.f32 -1.442695, %v2544_v36  ;;  %v5605_v15 = vld [vmem:[#allocation54_spill] sm:$0xff]  ;;  %v3955_v36 = vld [vmem:[#allocation6 + $0xf0] ss:$12 sps:$4 sm:$0xff]  }
 0x793   :  { %3839 = vpow2.f32 %v3093_v35  ;;  %v3957_v35 = vld [vmem:[#allocation6 + $0x10c] ss:$12 sps:$4 sm:$0xff]  }
 0x794   :  { %3841 = vpow2.f32 %v3094_v25  ;;  %v3958_v25 = vld [vmem:[#allocation6 + $0x108] ss:$12 sps:$4 sm:$0xff]  }
 0x79d   :  { %v3840_v3 = vpop.eup %3839 }
 0x79e   :  { %v2541_v28 = vadd.f32 1.0, %v3840_v3  ;;  %v3842_v41 = vpop.eup %3841  ;;  %v3959_v3 = vld [vmem:[#allocation6 + $0x110] ss:$12 sps:$4 sm:$0xff]  }
 0x79f   :  { %v2548_v21 = vadd.f32 1.0, %v3842_v41 }
 0x7a0   :  { %3843 = vrcp.f32 %v2541_v28  ;;  %v3960_v28 = vld [vmem:[#allocation6 + $0x124] ss:$12 sps:$4 sm:$0xff]  }
 0x7a1   :  { %3845 = vrcp.f32 %v2548_v21  ;;  %v3961_v21 = vld [vmem:[#allocation6 + $0x120] ss:$12 sps:$4 sm:$0xff]  }
 0x7aa   :  { %v3844_v19 = vpop.eup %3843 }
 0x7ab   :  { %v2551_v59 = vmul.f32 %v3844_v19, %v2532_v24  ;;  %v3846_v14 = vpop.eup %3845  ;;  %v3962_v24 = vld [vmem:[#allocation6 + $0x128] ss:$12 sps:$4 sm:$0xff]  }
 0x7ac   :  { %v2593_v6 = vpop.f32.mrb[68].mxu1  ;;  %v2634_v54 = vpop.f32.mrb[84].mxu0  ;;  %v2554_v18 = vsub.f32 1.0, %v3846_v14  ;;  %v2556_v33 = vmul.f32 %v3846_v14, %v5265_v31 }
 0x7ad   :  { %v2552_v29 = vadd.f32 %v2551_v59, %v5602_v43  ;;  %v2594_v32 = vadd.f32 %v2593_v6, %v5536_v62  ;;  %v2595_v53 = vpop.f32.mrb[69].mxu1  ;;  %v3524_v38 = vpop.f32.mrb[85].mxu0  ;;  %v2635_v27 = vadd.f32 %v2634_v54, %v4682_v48  ;;  %v3963_v59 = vld [vmem:[#allocation6 + $0x13c] ss:$12 sps:$4 sm:$0xff]  }
 0x7ae   :  { %v2596_v61 = vadd.f32 %v2595_v53, %v5596_v16  ;;  %v2597_v22 = vpop.f32.mrb[70].mxu1  ;;  %v2637_v51 = vpop.f32.mrb[86].mxu0  ;;  %v3966_v38 = vld [vmem:[#allocation6 + $0x154] ss:$12 sps:$4 sm:$0xff]  }
 0x7af   :  { %3847 = vtanh.f32 %v2552_v29  ;;  %v2640_v12 = vadd.f32 %v2594_v32, %v5603_v58  ;;  %v2598_v60 = vpop.f32.mrb[71].mxu1  ;;  %v3525_v4 = vpop.f32.mrb[87].mxu0  ;;  %v3964_v29 = vld [vmem:[#allocation6 + $0x138] ss:$12 sps:$4 sm:$0xff]   ;;  %v3965_v32 = vld [vmem:[#allocation6 + $0x140] ss:$12 sps:$4 sm:$0xff]  }
 0x7b0   :  { %v2647_v63 = vadd.f32 %v2596_v61, %v5604_v1  ;;  %v2671_v61 = vpop.permute.xlu1 %2670  ;;  %v3967_v58 = vld [vmem:[#allocation6 + $0x150] ss:$12 sps:$4 sm:$0xff]   ;;  %v3969_v60 = vld [vmem:[#allocation6 + $0x16c] ss:$12 sps:$4 sm:$0xff]  }
 0x7b1   :  { %v3095_v42 = vmul.f32 -1.442695, %v2640_v12  ;;  %v3968_v12 = vld [vmem:[#allocation6 + $0x158] ss:$12 sps:$4 sm:$0xff]  }
 0x7b2   :  { %v3096_v0 = vmul.f32 -1.442695, %v2647_v63  ;;  %v3970_v63 = vld [vmem:[#allocation6 + $0x168] ss:$12 sps:$4 sm:$0xff]  }
 0x7b3   :  { %3849 = vpow2.f32 %v3095_v42  ;;  %v3971_v42 = vld [vmem:[#allocation6 + $0x170] ss:$12 sps:$4 sm:$0xff]  }
 0x7b4   :  { %3851 = vpow2.f32 %v3096_v0 }
 0x7b9   :  { %v3848_v9 = vpop.eup %3847 }
 0x7ba   :  { %v2555_v55 = vmul.f32 %v3848_v9, %v2554_v18 }
 0x7bc   :  { %v2557_v26 = vadd.f32 %v2556_v33, %v2555_v55 }
 0x7bd   :  { %v3850_v5 = vpop.eup %3849 }
 0x7be   :  { %v2666_v57 = vmul.f32 %v2664_v47, %v2557_v26  ;;  %v2644_v23 = vadd.f32 1.0, %v3850_v5  ;;  %v2675_v37 = vsub.f32 %v2557_v26, %v5265_v31  ;;  %v3852_v52 = vpop.eup %3851  ;;  %v5606_v5 = vld [vmem:[#allocation46_spill] sm:$0xff] }
 0x7bf   :  { %v2651_v50 = vadd.f32 1.0, %v3852_v52 }
 0x7c0   :  { %2667 = vst [vmem:[#allocation8 + $0x60] sm:$0xff] %v2666_v57  ;;  %3853 = vrcp.f32 %v2644_v23  ;;  %v2676_v8 = vmul.f32 %v2675_v37, %v2664_v47  ;;  %v5607_v37 = vld [vmem:[#allocation48_spill] sm:$0xff] }
 0x7c1   :  { %3855 = vrcp.f32 %v2651_v50 }
 0x7c2   :  { %v5346_v30 = vadd.f32 %v2676_v8, %v5265_v31 }
 0x7c4   :  { %v2689_v44 = vpack.c.bf16 %v5346_v30, %v5346_v30 }
 0x7c6   :  { %2723 = vmatmul.mubr.bf16.vlgmr.msra.gmra.mrb[72].mxu1 %v2689_v44  ;;  %3543 = vmatmul.mubr.bf16.vlgmr.msra.gmra.mrb[88].mxu0 %v2689_v44 }
 0x7c7   :  { %2794 = vmatpush1.bf16.msra.mxu1 %v3949_v7  ;;  %3547 = vmatpush3.bf16.msra.mxu0 %v3950_v34 }
 0x7c8   :  { %2795 = vmatprep.subr.bf16.mxu1 %v3951_v2  ;;  %3548 = vmatprep.subr.bf16.mxu0 %v5522_v17 }
 0x7c9   :  { %2825 = vmatprep.mubr.bf16.mxu1 %v5523_v11  ;;  %3562 = vmatprep.mubr.msk.bf16.mxu0 %vm4076_vm0, %v5522_v17  ;;  %v3956_v11 = vld [vmem:[#allocation6 + $0xf8] ss:$12 sps:$4 sm:$0xff]  }
 0x7ca   :  { %v3854_v31 = vpop.eup %3853 }
 0x7cb   :  { %v2654_v49 = vmul.f32 %v3854_v31, %v2635_v27  ;;  %2796 = vmatpush1.bf16.msra.mxu1 %v3952_v56  ;;  %3549 = vmatpush3.bf16.msra.mxu0 %v3953_v39  ;;  %v3856_v41 = vpop.eup %3855  ;;  %v5608_v56 = vld [vmem:[#allocation47_spill] sm:$0xff] }
 0x7cc   :  { %2797 = vmatprep.subr.bf16.mxu1 %v3954_v10  ;;  %3550 = vmatprep.subr.bf16.mxu0 %v5522_v17  ;;  %v2657_v19 = vsub.f32 1.0, %v3856_v41  ;;  %v2659_v43 = vmul.f32 %v3856_v41, %v5305_v40  ;;  %v5610_v41 = vld [vmem:[#allocation51_spill] sm:$0xff] }
 0x7cd   :  { %v2655_v20 = vadd.f32 %v2654_v49, %v5605_v15 }
 0x7cf   :  { %3857 = vtanh.f32 %v2655_v20  ;;  %2798 = vmatpush1.bf16.msra.mxu1 %v3955_v36  ;;  %3551 = vmatpush3.bf16.msra.mxu0 %v3956_v11 }
 0x7d0   :  { %2799 = vmatprep.subr.bf16.mxu1 %v3957_v35  ;;  %3552 = vmatprep.subr.bf16.mxu0 %v5522_v17 }
 0x7d3   :  { %2800 = vmatpush1.bf16.msra.mxu1 %v3958_v25  ;;  %3553 = vmatpush3.bf16.msra.mxu0 %v3959_v3  ;;  %v5609_v25 = vld [vmem:[#allocation21_spill] sm:$0xff] }
 0x7d4   :  { %2801 = vmatprep.subr.bf16.mxu1 %v3960_v28  ;;  %3554 = vmatprep.subr.bf16.mxu0 %v5522_v17 }
 0x7d7   :  { %2802 = vmatpush1.bf16.msra.mxu1 %v3961_v21  ;;  %3555 = vmatpush3.bf16.msra.mxu0 %v3962_v24 }
 0x7d8   :  { %2803 = vmatprep.subr.bf16.mxu1 %v3963_v59  ;;  %3556 = vmatprep.subr.bf16.mxu0 %v5522_v17 }
 0x7d9   :  { %v3858_v6 = vpop.eup %3857 }
 0x7da   :  { %v2658_v54 = vmul.f32 %v3858_v6, %v2657_v19 }
 0x7db   :  { %2804 = vmatpush1.bf16.msra.mxu1 %v3964_v29  ;;  %3557 = vmatpush3.bf16.msra.mxu0 %v3965_v32  ;;  %v2898_v32 = vpop.permute.xlu0 %2897 }
 0x7dc   :  { %v2660_v53 = vadd.f32 %v2659_v43, %v2658_v54  ;;  %2805 = vmatprep.subr.bf16.mxu1 %v3966_v38  ;;  %3558 = vmatprep.subr.bf16.mxu0 %v5522_v17 }
 0x7de   :  { %v2673_v22 = vmul.f32 %v2671_v61, %v2660_v53  ;;  %v2678_v51 = vsub.f32 %v2660_v53, %v5305_v40 }
 0x7df   :  { %2806 = vmatpush1.bf16.msra.mxu1 %v3967_v58  ;;  %3559 = vmatpush3.bf16.msra.mxu0 %v3968_v12 }
 0x7e0   :  { %2674 = vst [vmem:[#allocation8 + $0x18] sm:$0xff] %v2673_v22  ;;  %2807 = vmatprep.subr.bf16.mxu1 %v3969_v60  ;;  %3560 = vmatprep.subr.bf16.mxu0 %v5522_v17  ;;  %v2679_v4 = vmul.f32 %v2678_v51, %v2671_v61 }
 0x7e2   :  { %v5365_v1 = vadd.f32 %v2679_v4, %v5305_v40 }
 0x7e3   :  { %2808 = vmatpush1.bf16.msra.mxu1 %v3970_v63  ;;  %3561 = vmatpush3.bf16.msra.mxu0 %v3971_v42  ;;  %v5611_v42 = vld [vmem:[#allocation52_spill] sm:$0xff] }
 0x7e4   :  { %v2792_v14 = vpack.c.bf16 %v5365_v1, %v5365_v1 }
 0x7e6   :  { %2826 = vmatmul.mubr.bf16.vlgmr.msra.gmra.mrb[76].mxu1 %v2792_v14  ;;  %3563 = vmatmul.mubr.bf16.vlgmr.msra.gmra.mrb[92].mxu0 %v2792_v14 }
 0x899   :  { %v2724_v0 = vpop.f32.mrb[72].mxu1  ;;  %v2765_v18 = vpop.f32.mrb[88].mxu0 }
 0x89a   :  { %v2725_v9 = vadd.f32 %v2724_v0, %v5590_v13  ;;  %v2726_v55 = vpop.f32.mrb[73].mxu1  ;;  %v3544_v33 = vpop.f32.mrb[89].mxu0  ;;  %v2766_v2 = vadd.f32 %v2765_v18, %v5594_v45 }
 0x89b   :  { %v2727_v17 = vadd.f32 %v2726_v55, %v5591_v46  ;;  %v2728_v26 = vpop.f32.mrb[74].mxu1  ;;  %v2768_v40 = vpop.f32.mrb[90].mxu0 }
 0x89c   :  { %v2771_v47 = vadd.f32 %v2725_v9, %v5606_v5  ;;  %v2729_v57 = vpop.f32.mrb[75].mxu1  ;;  %v3545_v23 = vpop.f32.mrb[91].mxu0 }
 0x89d   :  { %v2778_v8 = vadd.f32 %v2727_v17, %v5607_v37  ;;  %v2905_v17 = vpop.permute.xlu1 %2904 }
 0x89e   :  { %v3098_v52 = vmul.f32 -1.442695, %v2771_v47 }
 0x89f   :  { %v3099_v44 = vmul.f32 -1.442695, %v2778_v8 }
 0x8a0   :  { %3859 = vpow2.f32 %v3098_v52 }
 0x8a1   :  { %3861 = vpow2.f32 %v3099_v44 }
 0x8aa   :  { %v3860_v50 = vpop.eup %3859 }
 0x8ab   :  { %v2775_v7 = vadd.f32 1.0, %v3860_v50  ;;  %v3862_v13 = vpop.eup %3861 }
 0x8ac   :  { %v2782_v34 = vadd.f32 1.0, %v3862_v13 }
 0x8ad   :  { %3863 = vrcp.f32 %v2775_v7 }
 0x8ae   :  { %3865 = vrcp.f32 %v2782_v34 }
 0x8b7   :  { %v3864_v46 = vpop.eup %3863 }
 0x8b8   :  { %v2785_v27 = vmul.f32 %v3864_v46, %v2766_v2  ;;  %v3866_v19 = vpop.eup %3865 }
 0x8b9   :  { %v2827_v31 = vpop.f32.mrb[76].mxu1  ;;  %v2868_v49 = vpop.f32.mrb[92].mxu0  ;;  %v2788_v6 = vsub.f32 1.0, %v3866_v19  ;;  %v2790_v43 = vmul.f32 %v3866_v19, %v5346_v30 }
 0x8ba   :  { %v2786_v39 = vadd.f32 %v2785_v27, %v5608_v56  ;;  %v2828_v10 = vadd.f32 %v2827_v31, %v5536_v62  ;;  %v2829_v15 = vpop.f32.mrb[77].mxu1  ;;  %v3564_v20 = vpop.f32.mrb[93].mxu0  ;;  %v2869_v60 = vadd.f32 %v2868_v49, %v4682_v48 }
 0x8bb   :  { %v2830_v36 = vadd.f32 %v2829_v15, %v5596_v16  ;;  %v2831_v11 = vpop.f32.mrb[78].mxu1  ;;  %v2871_v35 = vpop.f32.mrb[94].mxu0 }
 0x8bc   :  { %3867 = vtanh.f32 %v2786_v39  ;;  %v2874_v3 = vadd.f32 %v2828_v10, %v5609_v25  ;;  %v2832_v28 = vpop.f32.mrb[79].mxu1  ;;  %v3565_v45 = vpop.f32.mrb[95].mxu0 }
 0x8bd   :  { %v2881_v21 = vadd.f32 %v2830_v36, %v5610_v41 }
 0x8be   :  { %v3100_v24 = vmul.f32 -1.442695, %v2874_v3 }
 0x8bf   :  { %v3101_v59 = vmul.f32 -1.442695, %v2881_v21 }
 0x8c0   :  { %3869 = vpow2.f32 %v3100_v24 }
 0x8c1   :  { %3871 = vpow2.f32 %v3101_v59 }
 0x8c6   :  { %v3868_v54 = vpop.eup %3867 }
 0x8c7   :  { %v2789_v62 = vmul.f32 %v3868_v54, %v2788_v6 }
 0x8c9   :  { %v2791_v16 = vadd.f32 %v2790_v43, %v2789_v62 }
 0x8ca   :  { %v3870_v29 = vpop.eup %3869 }
 0x8cb   :  { %v2900_v53 = vmul.f32 %v2898_v32, %v2791_v16  ;;  %v2878_v38 = vadd.f32 1.0, %v3870_v29  ;;  %v2909_v61 = vsub.f32 %v2791_v16, %v5346_v30  ;;  %v3872_v58 = vpop.eup %3871 }
 0x8cc   :  { %v2885_v12 = vadd.f32 1.0, %v3872_v58 }
 0x8cd   :  { %2901 = vst [vmem:[#allocation8 + $0x70] sm:$0xff] %v2900_v53  ;;  %3873 = vrcp.f32 %v2878_v38  ;;  %v2910_v22 = vmul.f32 %v2909_v61, %v2898_v32 }
 0x8ce   :  { %3875 = vrcp.f32 %v2885_v12 }
 0x8cf   :  { %v2911_v51 = vadd.f32 %v2910_v22, %v5346_v30 }
 0x8d1   :  { %2915 = vst [vmem:[#allocation9] sm:$0xff] %v2911_v51 }
 0x8d7   :  { %v3874_v4 = vpop.eup %3873 }
 0x8d8   :  { %v2888_v63 = vmul.f32 %v3874_v4, %v2869_v60  ;;  %v3876_v0 = vpop.eup %3875 }
 0x8d9   :  { %v2891_v18 = vsub.f32 1.0, %v3876_v0  ;;  %v2893_v33 = vmul.f32 %v3876_v0, %v5365_v1 }
 0x8da   :  { %v2889_v14 = vadd.f32 %v2888_v63, %v5611_v42 }
 0x8dc   :  { %3877 = vtanh.f32 %v2889_v14 }
 0x8e6   :  { %v3878_v9 = vpop.eup %3877 }
 0x8e7   :  { %v2892_v55 = vmul.f32 %v3878_v9, %v2891_v18 }
 0x8e9   :  { %v2894_v30 = vadd.f32 %v2893_v33, %v2892_v55 }
 0x8eb   :  { %v2907_v26 = vmul.f32 %v2905_v17, %v2894_v30  ;;  %v2912_v48 = vsub.f32 %v2894_v30, %v5365_v1 }
 0x8ed   :  { %2908 = vst [vmem:[#allocation8 + $0x8] sm:$0xff] %v2907_v26  ;;  %v2913_v40 = vmul.f32 %v2912_v48, %v2905_v17 }
 0x8ee   :  { %4027 = shalt.err (!%p4024_p6)
}
 0x8ef   :  { %s4028_s0 = scalar_lea.hbm %s5417_s6, 2048 }
 0x8f0   :  { %p4029_p7 = scmp.ne.s32.totalorder %s5417_s6, %s4028_s0  ;;  %p4032_p8 = scmp.lt.u32.totalorder %s4028_s0, %s5417_s6 }
 0x8f2   :  { %p4034_p9 = pnand %p4032_p8, %p4029_p7 }
 0x8f4   :  { %4037 = shalt.err (!%p4034_p9)
}
 0x8f5   :  { %s4079_s24 = smov 256   ;;  %s4080_s2 = smov 16   ;;  %v2914_v5 = vadd.f32 %v2913_v40, %v5365_v1 }
 0x8f6   :  { %2929 = dma.vmem_to_hbm [thread:$0]  %s2924_s14, 2048, %s5417_s6, [#allocation5], %s4079_s24, %s4079_s24, %s4080_s2  }
 0x8f7   :  { %2917 = vst [vmem:[#allocation9 + $0x8] sm:$0xff] %v2914_v5  ;;  %s4038_s27 = scalar_lea.vmem %s2936_s16, 256  ;;  %p4043_p11 = scmp.lt.s32.totalorder %s2936_s16, %s2936_s16 }
 0x8f8   :  { %p4039_p10 = scmp.ne.s32.totalorder %s2936_s16, %s4038_s27  ;;  %p4044_p12 = scmp.lt.s32.totalorder %s4038_s27, %s4038_s27 }
 0x8fa   :  { %p4045_p13 = por %p4044_p12, %p4043_p11 }
 0x8fc   :  { %p4046_p0 = pnand %p4045_p13, %p4039_p10 }
 0x8fe   :  { %4049 = shalt.err (!%p4046_p0)
}
 0x8ff   :  { %s4050_s29 = scalar_lea.hbm %s5418_s7, 256 }
 0x900   :  { %p4051_p1 = scmp.ne.s32.totalorder %s5418_s7, %s4050_s29  ;;  %p4054_p2 = scmp.lt.u32.totalorder %s4050_s29, %s5418_s7 }
 0x902   :  { %p4056_p3 = pnand %p4054_p2, %p4051_p1 }
 0x904   :  { %4059 = shalt.err (!%p4056_p3)
}
 0x905   :  { %s4081_s10 = smov 128   ;;  %s4082_s11 = smov 8  }
 0x906   :  { %2941 = dma.vmem_to_hbm [thread:$0]  %s2936_s16, 256, %s5418_s7, [#allocation10], %s4081_s10, %s4081_s10, %s4082_s11  }
 0x907   :  { %4064 = dma.done.wait [#allocation5], 2048  }
 0x908   :  { %4065 = vsyncadd [#allocation5], 4294965248 }
 0x909   :  { %4066 = dma.done.wait [#allocation10], 256  }
 0x90a   :  { %4067 = vsyncadd [#allocation10], 4294967040 }
 0x90b   :  { %2948 = vsyncpa [#allocation4], 1 }
 0x90c   :  { %2949 = vsyncpa [#allocation7], 1 }
 0x90d   :  { %2950 = vsyncpa [#allocation5], 1 }
 0x90e   :  { %2951 = vsyncpa [#allocation10], 1 }

</bundles_post_ra>
